<compile_context>
chip_gen: v5e
topology: v5e:2x2
jax: 0.10.0
libtpu: 0.0.40
codegen_flags: <defaults>
</compile_context>

<pallas_src>
import jax
import jax.numpy as jnp
from jax.experimental import pallas as pl
from jax.experimental.pallas import tpu as pltpu


def _round_up(x, m):
    return ((x + m - 1) // m) * m


# -----------------------------------------------------------------------------
# Fused Pallas kernel: conv1+relu+pool1 -> conv2+relu+pool2 -> fc -> L2 norm
# -----------------------------------------------------------------------------
def _fused_embed_norm_kernel(x_ref, w1_ref, b1_ref, w2_ref, b2_ref,
                             wfc_ref, bfc_ref, o_ref):
    tb = x_ref.shape[0]

    def conv_relu_pool(h_bf16, w_ref, b_ref):
        # Bias broadcast hoisted once per stage (JAX does not CSE broadcast_in_dim).
        b = jnp.broadcast_to(b_ref[...], (tb, b_ref.shape[-1]))
        acc = None
        for q in range(4):  # the 4 taps of every 2x2 max-pool window
            y = jnp.dot(h_bf16, w_ref[q], preferred_element_type=jnp.float32)
            y = jnp.maximum(y + b, 0.0)              # bias + ReLU (f32)
            acc = y if acc is None else jnp.maximum(acc, y)  # max-pool
        return acc

    x = x_ref[...]                                                   # (tb, 256) bf16
    h1 = conv_relu_pool(x, w1_ref, b1_ref).astype(jnp.bfloat16)      # (tb, 512)
    h2 = conv_relu_pool(h1, w2_ref, b2_ref).astype(jnp.bfloat16)     # (tb, 256)

    # Final Linear(256 -> emb) fused with L2 normalization (F.normalize, eps=1e-12).
    z = jnp.dot(h2, wfc_ref[...], preferred_element_type=jnp.float32)
    z = z + jnp.broadcast_to(bfc_ref[...], z.shape)
    ss = jnp.sum(z * z, axis=-1, keepdims=True)
    scale = jax.lax.rsqrt(jnp.maximum(ss, 1e-24))    # == 1 / max(||z||_2, 1e-12)
    o_ref[...] = (z * scale).astype(o_ref.dtype)


# -----------------------------------------------------------------------------
# Parameter setup / lowering of conv stages to dense per-pool-tap matrices
# -----------------------------------------------------------------------------
def init_params(key, embedding_dim=128, c1=8, c2=16, hw=16):
    k1, k2, k3, k4, k5, k6 = jax.random.split(key, 6)
    return {
        # conv weights in HWIO layout, biases per channel
        "conv1_w": 0.1 * jax.random.normal(k1, (3, 3, 1, c1), jnp.float32),
        "conv1_b": 0.01 * jax.random.normal(k2, (c1,), jnp.float32),
        "conv2_w": 0.1 * jax.random.normal(k3, (3, 3, c1, c2), jnp.float32),
        "conv2_b": 0.01 * jax.random.normal(k4, (c2,), jnp.float32),
        # flatten order is NHWC (i, j, c) — self-consistent with synthetic weights
        "fc_w": 0.1 * jax.random.normal(k5, (c2 * (hw // 4) * (hw // 4), embedding_dim),
                                        jnp.float32),
        "fc_b": 0.01 * jax.random.normal(k6, (1, embedding_dim), jnp.float32),
    }


def _conv_pool_taps_to_dense(w_hwio, H, W):
    """Exact dense matrices of 'conv3x3 SAME' evaluated at the 4 taps of each
    2x2 pooling window.  Returns (4, H*W*Cin, (H//2)*(W//2)*Cout); flatten
    orders are NHWC row-major on both sides."""
    Cin = w_hwio.shape[2]
    n_in = H * W * Cin
    basis = jnp.eye(n_in, dtype=jnp.float32).reshape(n_in, H, W, Cin)
    full = jax.lax.conv_general_dilated(
        basis, w_hwio, window_strides=(1, 1), padding="SAME",
        dimension_numbers=("NHWC", "HWIO", "NHWC"))       # (n_in, H, W, Cout)
    mats = []
    for p in range(2):
        for q in range(2):
            sub = full[:, p::2, q::2, :]                  # (n_in, H/2, W/2, Cout)
            mats.append(sub.reshape(n_in, -1))
    return jnp.stack(mats, axis=0)


def prepare_fused_params(params, hw=16):
    w1 = _conv_pool_taps_to_dense(params["conv1_w"], hw, hw)           # (4, 256, 512)
    w2 = _conv_pool_taps_to_dense(params["conv2_w"], hw // 2, hw // 2) # (4, 512, 256)
    # Column order is (i, j, c) with c fastest -> tile bias across spatial positions.
    b1 = jnp.tile(params["conv1_b"], (hw // 2) * (hw // 2)).reshape(1, -1)   # (1, 512)
    b2 = jnp.tile(params["conv2_b"], (hw // 4) * (hw // 4)).reshape(1, -1)   # (1, 256)
    return {
        "w1": w1.astype(jnp.bfloat16), "b1": b1.astype(jnp.float32),
        "w2": w2.astype(jnp.bfloat16), "b2": b2.astype(jnp.float32),
        "wfc": params["fc_w"].astype(jnp.bfloat16),
        "bfc": params["fc_b"].astype(jnp.float32),
    }


# -----------------------------------------------------------------------------
# Public forward (equivalent of SignatureSiameseModel.forward)
# -----------------------------------------------------------------------------
@jax.jit
def signature_siamese_forward(fused, x_nchw):
    """z = F.normalize(embed(x), p=2, dim=1); x is NCHW like PyTorch."""
    B = x_nchw.shape[0]
    # NCHW -> NHWC -> (B, H*W*C) lane-dense rows (256 = multiple of 128).
    x = jnp.transpose(x_nchw, (0, 2, 3, 1)).reshape(B, -1).astype(jnp.bfloat16)
    n_in = x.shape[1]
    emb = fused["wfc"].shape[1]

    bp = _round_up(B, 16)          # bf16 sublane-friendly row count
    tb = min(128, bp)              # batch tile (multiple of 16)
    bp = _round_up(bp, tb)         # pad so the grid divides evenly
    if bp != B:
        x = jnp.pad(x, ((0, bp - B), (0, 0)))

    z = pl.pallas_call(
        _fused_embed_norm_kernel,
        out_shape=jax.ShapeDtypeStruct((bp, emb), jnp.float32),
        grid=(bp // tb,),
        in_specs=[
            pl.BlockSpec((tb, n_in), lambda i: (i, 0)),
            pl.BlockSpec(fused["w1"].shape, lambda i: (0, 0, 0)),
            pl.BlockSpec(fused["b1"].shape, lambda i: (0, 0)),
            pl.BlockSpec(fused["w2"].shape, lambda i: (0, 0, 0)),
            pl.BlockSpec(fused["b2"].shape, lambda i: (0, 0)),
            pl.BlockSpec(fused["wfc"].shape, lambda i: (0, 0)),
            pl.BlockSpec(fused["bfc"].shape, lambda i: (0, 0)),
        ],
        out_specs=pl.BlockSpec((tb, emb), lambda i: (i, 0)),
        compiler_params=pltpu.CompilerParams(
            dimension_semantics=("parallel",)),
    )(x, fused["w1"], fused["b1"], fused["w2"], fused["b2"],
      fused["wfc"], fused["bfc"])
    return z[:B]


# TODO(synk): classify()/classify_single() heads (compare MLP, cls_head) are not
# part of forward(); they could be added as additional small Pallas matmul kernels.


# -----------------------------------------------------------------------------
# Pure-JAX reference (conv/relu/maxpool/fc/normalize) for correctness checking
# -----------------------------------------------------------------------------
def _maxpool2x2(x_nhwc):
    B, H, W, C = x_nhwc.shape
    return x_nhwc.reshape(B, H // 2, 2, W // 2, 2, C).max(axis=(2, 4))


def reference_forward(params, x_nchw):
    x = jnp.transpose(x_nchw, (0, 2, 3, 1)).astype(jnp.float32)
    y = jax.lax.conv_general_dilated(x, params["conv1_w"], (1, 1), "SAME",
                                     dimension_numbers=("NHWC", "HWIO", "NHWC"))
    y = _maxpool2x2(jnp.maximum(y + params["conv1_b"], 0.0))
    y = jax.lax.conv_general_dilated(y, params["conv2_w"], (1, 1), "SAME",
                                     dimension_numbers=("NHWC", "HWIO", "NHWC"))
    y = _maxpool2x2(jnp.maximum(y + params["conv2_b"], 0.0))
    feat = y.reshape(y.shape[0], -1)
    z = feat @ params["fc_w"] + params["fc_b"]
    norm = jnp.maximum(jnp.sqrt(jnp.sum(z * z, axis=-1, keepdims=True)), 1e-12)
    return z / norm


if __name__ == "__main__":
    key = jax.random.PRNGKey(0)
    k_in, k_p = jax.random.split(key)

    # batch=2, channels=1 (grayscale signature), spatial=16x16, embedding_dim=128
    x = jax.random.normal(k_in, (2, 1, 16, 16), dtype=jnp.float32)
    params = init_params(k_p, embedding_dim=128)
    fused = prepare_fused_params(params)

    z = signature_siamese_forward(fused, x)
    z = jax.block_until_ready(z)

    assert z.shape == (2, 128)
    # sanity: rows are L2-normalized
    norms = jnp.sqrt(jnp.sum(z.astype(jnp.float32) ** 2, axis=-1))
    assert bool(jnp.all(jnp.abs(norms - 1.0) < 1e-3))
    # correctness vs. pure-JAX f32 reference (bf16 matmul operands -> loose tol)
    z_ref = reference_forward(params, x)
    err = float(jnp.max(jnp.abs(z.astype(jnp.float32) - z_ref)))
    assert err < 5e-2, f"mismatch vs reference: {err}"

    print("KERNEL_OK")
</pallas_src>

<mosaic_0001>
module attributes {stable_mosaic.version = 11 : i64} {
  func.func @_fused_embed_norm_kernel(%arg0: i32, %arg1: memref<16x256xbf16, #tpu.memory_space<vmem>>, %arg2: memref<4x256x512xbf16, #tpu.memory_space<vmem>>, %arg3: memref<1x512xf32, #tpu.memory_space<vmem>>, %arg4: memref<4x512x256xbf16, #tpu.memory_space<vmem>>, %arg5: memref<1x256xf32, #tpu.memory_space<vmem>>, %arg6: memref<256x128xbf16, #tpu.memory_space<vmem>>, %arg7: memref<1x128xf32, #tpu.memory_space<vmem>>, %arg8: memref<16x128xf32, #tpu.memory_space<vmem>>) attributes {dimension_semantics = [#tpu.dimension_semantics<parallel>], iteration_bounds = array<i64: 1>, scalar_prefetch = 0 : i64, scratch_operands = 0 : i64, tpu.core_type = #tpu.core_type<tc>, window_params = [{transform_indices = @transform_0, window_bounds = array<i64: 16, 256>}, {pipeline_mode = #tpu.pipeline_mode<synchronous>, transform_indices = @transform_1, window_bounds = array<i64: 4, 256, 512>}, {pipeline_mode = #tpu.pipeline_mode<synchronous>, transform_indices = @transform_2, window_bounds = array<i64: 1, 512>}, {pipeline_mode = #tpu.pipeline_mode<synchronous>, transform_indices = @transform_3, window_bounds = array<i64: 4, 512, 256>}, {pipeline_mode = #tpu.pipeline_mode<synchronous>, transform_indices = @transform_4, window_bounds = array<i64: 1, 256>}, {pipeline_mode = #tpu.pipeline_mode<synchronous>, transform_indices = @transform_5, window_bounds = array<i64: 256, 128>}, {pipeline_mode = #tpu.pipeline_mode<synchronous>, transform_indices = @transform_6, window_bounds = array<i64: 1, 128>}, {transform_indices = @transform_7, window_bounds = array<i64: 16, 128>}]} {
    %c0 = arith.constant 0 : index
    %c0_0 = arith.constant 0 : index
    %0 = vector.load %arg1[%c0, %c0_0] : memref<16x256xbf16, #tpu.memory_space<vmem>>, vector<16x256xbf16>
    %c0_1 = arith.constant 0 : index
    %c0_2 = arith.constant 0 : index
    %1 = vector.load %arg3[%c0_1, %c0_2] : memref<1x512xf32, #tpu.memory_space<vmem>>, vector<1x512xf32>
    %2 = vector.shape_cast %1 : vector<1x512xf32> to vector<1x512xf32>
    %3 = vector.broadcast %2 : vector<1x512xf32> to vector<16x512xf32>
    %c0_3 = arith.constant 0 : index
    %c0_4 = arith.constant 0 : index
    %c0_5 = arith.constant 0 : index
    %4 = vector.load %arg2[%c0_3, %c0_4, %c0_5] : memref<4x256x512xbf16, #tpu.memory_space<vmem>>, vector<1x256x512xbf16>
    %5 = vector.shape_cast %4 : vector<1x256x512xbf16> to vector<256x512xbf16>
    %cst = arith.constant dense<0.000000e+00> : vector<16x512xf32>
    %6 = tpu.matmul %0, %5, %cst {dimension_numbers = #tpu.dot_dimension_numbers<[1], [0], [0], [1], [0, 0, 1, 1], [], []>} : vector<16x256xbf16>, vector<256x512xbf16>, vector<16x512xf32> -> vector<16x512xf32>
    %7 = arith.addf %6, %3 : vector<16x512xf32>
    %cst_6 = arith.constant 0.000000e+00 : f32
    %8 = vector.broadcast %cst_6 : f32 to vector<16x512xf32>
    %9 = arith.maximumf %7, %8 : vector<16x512xf32>
    %c1 = arith.constant 1 : index
    %c0_7 = arith.constant 0 : index
    %c0_8 = arith.constant 0 : index
    %10 = vector.load %arg2[%c1, %c0_7, %c0_8] : memref<4x256x512xbf16, #tpu.memory_space<vmem>>, vector<1x256x512xbf16>
    %11 = vector.shape_cast %10 : vector<1x256x512xbf16> to vector<256x512xbf16>
    %cst_9 = arith.constant dense<0.000000e+00> : vector<16x512xf32>
    %12 = tpu.matmul %0, %11, %cst_9 {dimension_numbers = #tpu.dot_dimension_numbers<[1], [0], [0], [1], [0, 0, 1, 1], [], []>} : vector<16x256xbf16>, vector<256x512xbf16>, vector<16x512xf32> -> vector<16x512xf32>
    %13 = arith.addf %12, %3 : vector<16x512xf32>
    %cst_10 = arith.constant 0.000000e+00 : f32
    %14 = vector.broadcast %cst_10 : f32 to vector<16x512xf32>
    %15 = arith.maximumf %13, %14 : vector<16x512xf32>
    %16 = arith.maximumf %9, %15 : vector<16x512xf32>
    %c2 = arith.constant 2 : index
    %c0_11 = arith.constant 0 : index
    %c0_12 = arith.constant 0 : index
    %17 = vector.load %arg2[%c2, %c0_11, %c0_12] : memref<4x256x512xbf16, #tpu.memory_space<vmem>>, vector<1x256x512xbf16>
    %18 = vector.shape_cast %17 : vector<1x256x512xbf16> to vector<256x512xbf16>
    %cst_13 = arith.constant dense<0.000000e+00> : vector<16x512xf32>
    %19 = tpu.matmul %0, %18, %cst_13 {dimension_numbers = #tpu.dot_dimension_numbers<[1], [0], [0], [1], [0, 0, 1, 1], [], []>} : vector<16x256xbf16>, vector<256x512xbf16>, vector<16x512xf32> -> vector<16x512xf32>
    %20 = arith.addf %19, %3 : vector<16x512xf32>
    %cst_14 = arith.constant 0.000000e+00 : f32
    %21 = vector.broadcast %cst_14 : f32 to vector<16x512xf32>
    %22 = arith.maximumf %20, %21 : vector<16x512xf32>
    %23 = arith.maximumf %16, %22 : vector<16x512xf32>
    %c3 = arith.constant 3 : index
    %c0_15 = arith.constant 0 : index
    %c0_16 = arith.constant 0 : index
    %24 = vector.load %arg2[%c3, %c0_15, %c0_16] : memref<4x256x512xbf16, #tpu.memory_space<vmem>>, vector<1x256x512xbf16>
    %25 = vector.shape_cast %24 : vector<1x256x512xbf16> to vector<256x512xbf16>
    %cst_17 = arith.constant dense<0.000000e+00> : vector<16x512xf32>
    %26 = tpu.matmul %0, %25, %cst_17 {dimension_numbers = #tpu.dot_dimension_numbers<[1], [0], [0], [1], [0, 0, 1, 1], [], []>} : vector<16x256xbf16>, vector<256x512xbf16>, vector<16x512xf32> -> vector<16x512xf32>
    %27 = arith.addf %26, %3 : vector<16x512xf32>
    %cst_18 = arith.constant 0.000000e+00 : f32
    %28 = vector.broadcast %cst_18 : f32 to vector<16x512xf32>
    %29 = arith.maximumf %27, %28 : vector<16x512xf32>
    %30 = arith.maximumf %23, %29 : vector<16x512xf32>
    %31 = arith.truncf %30 : vector<16x512xf32> to vector<16x512xbf16>
    %c0_19 = arith.constant 0 : index
    %c0_20 = arith.constant 0 : index
    %32 = vector.load %arg5[%c0_19, %c0_20] : memref<1x256xf32, #tpu.memory_space<vmem>>, vector<1x256xf32>
    %33 = vector.shape_cast %32 : vector<1x256xf32> to vector<1x256xf32>
    %34 = vector.broadcast %33 : vector<1x256xf32> to vector<16x256xf32>
    %c0_21 = arith.constant 0 : index
    %c0_22 = arith.constant 0 : index
    %c0_23 = arith.constant 0 : index
    %35 = vector.load %arg4[%c0_21, %c0_22, %c0_23] : memref<4x512x256xbf16, #tpu.memory_space<vmem>>, vector<1x512x256xbf16>
    %36 = vector.shape_cast %35 : vector<1x512x256xbf16> to vector<512x256xbf16>
    %cst_24 = arith.constant dense<0.000000e+00> : vector<16x256xf32>
    %37 = tpu.matmul %31, %36, %cst_24 {dimension_numbers = #tpu.dot_dimension_numbers<[1], [0], [0], [1], [0, 0, 1, 1], [], []>} : vector<16x512xbf16>, vector<512x256xbf16>, vector<16x256xf32> -> vector<16x256xf32>
    %38 = arith.addf %37, %34 : vector<16x256xf32>
    %cst_25 = arith.constant 0.000000e+00 : f32
    %39 = vector.broadcast %cst_25 : f32 to vector<16x256xf32>
    %40 = arith.maximumf %38, %39 : vector<16x256xf32>
    %c1_26 = arith.constant 1 : index
    %c0_27 = arith.constant 0 : index
    %c0_28 = arith.constant 0 : index
    %41 = vector.load %arg4[%c1_26, %c0_27, %c0_28] : memref<4x512x256xbf16, #tpu.memory_space<vmem>>, vector<1x512x256xbf16>
    %42 = vector.shape_cast %41 : vector<1x512x256xbf16> to vector<512x256xbf16>
    %cst_29 = arith.constant dense<0.000000e+00> : vector<16x256xf32>
    %43 = tpu.matmul %31, %42, %cst_29 {dimension_numbers = #tpu.dot_dimension_numbers<[1], [0], [0], [1], [0, 0, 1, 1], [], []>} : vector<16x512xbf16>, vector<512x256xbf16>, vector<16x256xf32> -> vector<16x256xf32>
    %44 = arith.addf %43, %34 : vector<16x256xf32>
    %cst_30 = arith.constant 0.000000e+00 : f32
    %45 = vector.broadcast %cst_30 : f32 to vector<16x256xf32>
    %46 = arith.maximumf %44, %45 : vector<16x256xf32>
    %47 = arith.maximumf %40, %46 : vector<16x256xf32>
    %c2_31 = arith.constant 2 : index
    %c0_32 = arith.constant 0 : index
    %c0_33 = arith.constant 0 : index
    %48 = vector.load %arg4[%c2_31, %c0_32, %c0_33] : memref<4x512x256xbf16, #tpu.memory_space<vmem>>, vector<1x512x256xbf16>
    %49 = vector.shape_cast %48 : vector<1x512x256xbf16> to vector<512x256xbf16>
    %cst_34 = arith.constant dense<0.000000e+00> : vector<16x256xf32>
    %50 = tpu.matmul %31, %49, %cst_34 {dimension_numbers = #tpu.dot_dimension_numbers<[1], [0], [0], [1], [0, 0, 1, 1], [], []>} : vector<16x512xbf16>, vector<512x256xbf16>, vector<16x256xf32> -> vector<16x256xf32>
    %51 = arith.addf %50, %34 : vector<16x256xf32>
    %cst_35 = arith.constant 0.000000e+00 : f32
    %52 = vector.broadcast %cst_35 : f32 to vector<16x256xf32>
    %53 = arith.maximumf %51, %52 : vector<16x256xf32>
    %54 = arith.maximumf %47, %53 : vector<16x256xf32>
    %c3_36 = arith.constant 3 : index
    %c0_37 = arith.constant 0 : index
    %c0_38 = arith.constant 0 : index
    %55 = vector.load %arg4[%c3_36, %c0_37, %c0_38] : memref<4x512x256xbf16, #tpu.memory_space<vmem>>, vector<1x512x256xbf16>
    %56 = vector.shape_cast %55 : vector<1x512x256xbf16> to vector<512x256xbf16>
    %cst_39 = arith.constant dense<0.000000e+00> : vector<16x256xf32>
    %57 = tpu.matmul %31, %56, %cst_39 {dimension_numbers = #tpu.dot_dimension_numbers<[1], [0], [0], [1], [0, 0, 1, 1], [], []>} : vector<16x512xbf16>, vector<512x256xbf16>, vector<16x256xf32> -> vector<16x256xf32>
    %58 = arith.addf %57, %34 : vector<16x256xf32>
    %cst_40 = arith.constant 0.000000e+00 : f32
    %59 = vector.broadcast %cst_40 : f32 to vector<16x256xf32>
    %60 = arith.maximumf %58, %59 : vector<16x256xf32>
    %61 = arith.maximumf %54, %60 : vector<16x256xf32>
    %62 = arith.truncf %61 : vector<16x256xf32> to vector<16x256xbf16>
    %c0_41 = arith.constant 0 : index
    %c0_42 = arith.constant 0 : index
    %63 = vector.load %arg6[%c0_41, %c0_42] : memref<256x128xbf16, #tpu.memory_space<vmem>>, vector<256x128xbf16>
    %cst_43 = arith.constant dense<0.000000e+00> : vector<16x128xf32>
    %64 = tpu.matmul %62, %63, %cst_43 {dimension_numbers = #tpu.dot_dimension_numbers<[1], [0], [0], [1], [0, 0, 1, 1], [], []>} : vector<16x256xbf16>, vector<256x128xbf16>, vector<16x128xf32> -> vector<16x128xf32>
    %c0_44 = arith.constant 0 : index
    %c0_45 = arith.constant 0 : index
    %65 = vector.load %arg7[%c0_44, %c0_45] : memref<1x128xf32, #tpu.memory_space<vmem>>, vector<1x128xf32>
    %66 = vector.shape_cast %65 : vector<1x128xf32> to vector<1x128xf32>
    %67 = vector.broadcast %66 : vector<1x128xf32> to vector<16x128xf32>
    %68 = arith.addf %64, %67 : vector<16x128xf32>
    %69 = arith.mulf %68, %68 : vector<16x128xf32>
    %cst_46 = arith.constant dense<0.000000e+00> : vector<16xf32>
    %70 = vector.multi_reduction <add>, %69, %cst_46 [1] : vector<16x128xf32> to vector<16xf32>
    %71 = vector.shape_cast %70 : vector<16xf32> to vector<16x1xf32>
    %cst_47 = arith.constant 1.000000e-24 : f32
    %72 = vector.broadcast %cst_47 : f32 to vector<16x1xf32>
    %73 = arith.maximumf %71, %72 : vector<16x1xf32>
    %74 = math.rsqrt %73 : vector<16x1xf32>
    %75 = vector.broadcast %74 : vector<16x1xf32> to vector<16x128xf32>
    %76 = arith.mulf %68, %75 : vector<16x128xf32>
    %c0_48 = arith.constant 0 : index
    %c0_49 = arith.constant 0 : index
    %77 = vector.load %arg8[%c0_48, %c0_49] : memref<16x128xf32, #tpu.memory_space<vmem>>, vector<16x128xf32>
    tpu.vector_store %arg8[%c0_48, %c0_49], %76 {strides = array<i32>} : memref<16x128xf32, #tpu.memory_space<vmem>>, vector<16x128xf32>,
    return
  }
  func.func @transform_0(%arg0: i32) -> (i32, i32) {
    %c0_i32 = arith.constant 0 : i32
    %c0_i32_0 = arith.constant 0 : i32
    return %arg0, %c0_i32 : i32, i32
  }
  func.func @transform_1(%arg0: i32) -> (i32, i32, i32) {
    %c0_i32 = arith.constant 0 : i32
    %c0_i32_0 = arith.constant 0 : i32
    %c0_i32_1 = arith.constant 0 : i32
    %c0_i32_2 = arith.constant 0 : i32
    return %c0_i32, %c0_i32_0, %c0_i32_1 : i32, i32, i32
  }
  func.func @transform_2(%arg0: i32) -> (i32, i32) {
    %c0_i32 = arith.constant 0 : i32
    %c0_i32_0 = arith.constant 0 : i32
    %c0_i32_1 = arith.constant 0 : i32
    return %c0_i32, %c0_i32_0 : i32, i32
  }
  func.func @transform_3(%arg0: i32) -> (i32, i32, i32) {
    %c0_i32 = arith.constant 0 : i32
    %c0_i32_0 = arith.constant 0 : i32
    %c0_i32_1 = arith.constant 0 : i32
    %c0_i32_2 = arith.constant 0 : i32
    return %c0_i32, %c0_i32_0, %c0_i32_1 : i32, i32, i32
  }
  func.func @transform_4(%arg0: i32) -> (i32, i32) {
    %c0_i32 = arith.constant 0 : i32
    %c0_i32_0 = arith.constant 0 : i32
    %c0_i32_1 = arith.constant 0 : i32
    return %c0_i32, %c0_i32_0 : i32, i32
  }
  func.func @transform_5(%arg0: i32) -> (i32, i32) {
    %c0_i32 = arith.constant 0 : i32
    %c0_i32_0 = arith.constant 0 : i32
    %c0_i32_1 = arith.constant 0 : i32
    return %c0_i32, %c0_i32_0 : i32, i32
  }
  func.func @transform_6(%arg0: i32) -> (i32, i32) {
    %c0_i32 = arith.constant 0 : i32
    %c0_i32_0 = arith.constant 0 : i32
    %c0_i32_1 = arith.constant 0 : i32
    return %c0_i32, %c0_i32_0 : i32, i32
  }
  func.func @transform_7(%arg0: i32) -> (i32, i32) {
    %c0_i32 = arith.constant 0 : i32
    %c0_i32_0 = arith.constant 0 : i32
    return %arg0, %c0_i32 : i32, i32
  }
}

</mosaic_0001>

<bundles_post_ra>
// kernel: signature_siamese_forward.1
= control target key start
LH: loop header
LB: loop body
LE: loop exit
PB: predicated region body
PF: predicated region fallthrough
CT: control target
= control target key end

     0   :  { %12 = vsyncpa [#allocation3], 0  ;;  %s7523_s0 = inlined_call_operand.vmem [shape: bf16[16,256], index: 0, kind: input, shape index: {}]   ;;  %s7524_s1 = inlined_call_operand.hbm [shape: bf16[4,256,512], index: 1, kind: input, shape index: {}]   ;;  %s7525_s2 = inlined_call_operand.vmem [shape: f32[1,512], index: 2, kind: input, shape index: {}]   ;;  %s7526_s3 = inlined_call_operand.hbm [shape: bf16[4,512,256], index: 3, kind: input, shape index: {}]   ;;  %s7527_s4 = inlined_call_operand.vmem [shape: f32[1,256], index: 4, kind: input, shape index: {}]   ;;  %s7528_s5 = inlined_call_operand.hbm [shape: bf16[256,128], index: 5, kind: input, shape index: {}]   ;;  %s7529_s6 = inlined_call_operand.vmem [shape: f32[1,128], index: 6, kind: input, shape index: {}]   ;;  %s7530_s7 = inlined_call_operand.vmem [shape: f32[16,128], index: 7, kind: output, shape index: {}]  }
   0x1   :  { %13 = vsyncpa [#allocation5], 0  ;;  %s35_s26 = sshll.u32 %s7526_s3, 4  ;;  %s7103_s27 = smov [#allocation4]   ;;  %s36_s26 = int_to_ptr.hbm [resolvable:$true] %s35_s26 }
   0x2   :  { %s37_s28 = sshll.u32 %s7103_s27, 4  ;;  %s20_s8 = sshll.u32 %s7524_s1, 4  ;;  %s38_s28 = int_to_ptr.vmem [resolvable:$true] %s37_s28  ;;  %s21_s8 = int_to_ptr.hbm [resolvable:$true] %s20_s8 }
   0x3   :  { %s7104_s9 = smov 128   ;;  %s7105_s10 = smov 8  }
   0x4   :  { %43 = dma.hbm_to_vmem [thread:$0]  %s36_s26, 32768, %s38_s28, [#allocation5], %s7104_s9, %s7104_s9, %s7105_s10  }
   0x5   :  { %s7106_s11 = smov [#allocation2]   ;;  %s7107_s13 = smov 256  }
   0x6   :  { %s22_s12 = sshll.u32 %s7106_s11, 4  ;;  %s7108_s14 = smov 16   ;;  %s23_s12 = int_to_ptr.vmem [resolvable:$true] %s22_s12 }
   0x7   :  { %28 = dma.hbm_to_vmem [thread:$0]  %s21_s8, 32768, %s23_s12, [#allocation3], %s7107_s13, %s7107_s13, %s7108_s14  }
   0x8   :  { %s50_s16 = sshll.u32 %s7528_s5, 4  ;;  %s7109_s17 = smov [#allocation6]   ;;  %s51_s16 = int_to_ptr.hbm [resolvable:$true] %s50_s16 }
   0x9   :  { %s52_s18 = sshll.u32 %s7109_s17, 4  ;;  %s7110_s19 = smov 64   ;;  %s53_s18 = int_to_ptr.vmem [resolvable:$true] %s52_s18 }
   0xa   :  { %s7111_s1 = smov 4  }
   0xb   :  { %58 = dma.hbm_to_vmem [thread:$0]  %s51_s16, 2048, %s53_s18, [#allocation5], %s7110_s19, %s7110_s19, %s7111_s1  }
   0xc   :  { %7099 = dma.done.wait [#allocation3], 32768  }
   0xd   :  { %7100 = vsyncadd [#allocation3], 4294934528 }
   0xe   :  { %7101 = dma.done.wait [#allocation5], 34816  }
   0xf   :  { %7102 = vsyncadd [#allocation5], 4294932480  ;;  %v4485_v0 = vld [vmem:[#allocation2 + $0xe0] sm:$0xf]  ;;  %v6515_v1 = vld [vmem:[#allocation2 + $0xec] sm:$0xf0] }
  0x10   :  { %v4613_v2 = vld [vmem:[#allocation2 + $0x1e0] sm:$0xf]  ;;  %v4486_v3 = vor.u32 %v6515_v1, %v4485_v0  ;;  %v6547_v4 = vld [vmem:[#allocation2 + $0x1ec] sm:$0xf0]  ;;  %v6513_v5 = vld [vmem:[#allocation2 + $0xe4] sm:$0xf] }
  0x11   :  { %v4487_v6 = vld [vmem:[#allocation2 + $0xf0] sm:$0xf0]  ;;  %v4614_v7 = vor.u32 %v6547_v4, %v4613_v2  ;;  %v6545_v9 = vld [vmem:[#allocation2 + $0x1e4] sm:$0xf]  ;;  %v4469_v11 = vld [vmem:[#allocation2 + $0xc0] sm:$0xf] }
  0x12   :  { %v4490_v8 = vor.u32 %v6513_v5, %v4487_v6  ;;  %v4615_v10 = vld [vmem:[#allocation2 + $0x1f0] sm:$0xf0]  ;;  %479 = vmatpush.bf16.msra.mxu0 %v4486_v3  ;;  %v6511_v13 = vld [vmem:[#allocation2 + $0xcc] sm:$0xf0]  ;;  %v4597_v14 = vld [vmem:[#allocation2 + $0x1c0] sm:$0xf] }
  0x13   :  { %v4618_v12 = vor.u32 %v6545_v9, %v4615_v10  ;;  %v6543_v15 = vld [vmem:[#allocation2 + $0x1cc] sm:$0xf0]  ;;  %493 = vmatpush.bf16.msra.mxu1 %v4614_v7  ;;  %v4470_v16 = vor.u32 %v6511_v13, %v4469_v11  ;;  %v6509_v18 = vld [vmem:[#allocation2 + $0xc4] sm:$0xf]  ;;  %v4471_v19 = vld [vmem:[#allocation2 + $0xd0] sm:$0xf0] }
  0x14   :  { %507 = vmatpush.bf16.msra.mxu2 %v4490_v8  ;;  %v4598_v17 = vor.u32 %v6543_v15, %v4597_v14  ;;  %v6541_v20 = vld [vmem:[#allocation2 + $0x1c4] sm:$0xf]  ;;  %v4474_v21 = vor.u32 %v6509_v18, %v4471_v19  ;;  %v4599_v22 = vld [vmem:[#allocation2 + $0x1d0] sm:$0xf0]  ;;  %v4453_v23 = vld [vmem:[#allocation2 + $0xa0] sm:$0xf] }
  0x15   :  { %521 = vmatpush.bf16.msra.mxu3 %v4618_v12  ;;  %v6507_v24 = vld [vmem:[#allocation2 + $0xac] sm:$0xf0]  ;;  %v4602_v25 = vor.u32 %v6541_v20, %v4599_v22  ;;  %v4581_v26 = vld [vmem:[#allocation2 + $0x1a0] sm:$0xf]  ;;  %v6505_v28 = vld [vmem:[#allocation2 + $0xa4] sm:$0xf] }
  0x16   :  { %v6539_v27 = vld [vmem:[#allocation2 + $0x1ac] sm:$0xf0]  ;;  %480 = vmatpush.bf16.msra.mxu0 %v4470_v16  ;;  %v4454_v29 = vor.u32 %v6507_v24, %v4453_v23  ;;  %v4455_v30 = vld [vmem:[#allocation2 + $0xb0] sm:$0xf0]  ;;  %v6537_v31 = vld [vmem:[#allocation2 + $0x1a4] sm:$0xf] }
  0x17   :  { %v4583_v32 = vld [vmem:[#allocation2 + $0x1b0] sm:$0xf0]  ;;  %494 = vmatpush.bf16.msra.mxu1 %v4598_v17  ;;  %v4582_v33 = vor.u32 %v6539_v27, %v4581_v26  ;;  %v4458_v34 = vor.u32 %v6505_v28, %v4455_v30  ;;  %v4437_v35 = vld [vmem:[#allocation2 + $0x80] sm:$0xf]  ;;  %v6503_v36 = vld [vmem:[#allocation2 + $0x8c] sm:$0xf0] }
  0x18   :  { %508 = vmatpush.bf16.msra.mxu2 %v4474_v21  ;;  %v4565_v37 = vld [vmem:[#allocation2 + $0x180] sm:$0xf]  ;;  %v4586_v38 = vor.u32 %v6537_v31, %v4583_v32  ;;  %v6535_v39 = vld [vmem:[#allocation2 + $0x18c] sm:$0xf0]  ;;  %v6501_v40 = vld [vmem:[#allocation2 + $0x84] sm:$0xf]  ;;  %v4438_v44 = vor.u32 %v6503_v36, %v4437_v35 }
  0x19   :  { %522 = vmatpush.bf16.msra.mxu3 %v4602_v25  ;;  %v4439_v41 = vld [vmem:[#allocation2 + $0x90] sm:$0xf0]  ;;  %v6533_v42 = vld [vmem:[#allocation2 + $0x184] sm:$0xf]  ;;  %v4566_v45 = vor.u32 %v6535_v39, %v4565_v37  ;;  %v4421_v47 = vld [vmem:[#allocation2 + $0x60] sm:$0xf] }
  0x1a   :  { %v4567_v43 = vld [vmem:[#allocation2 + $0x190] sm:$0xf0]  ;;  %481 = vmatpush.bf16.msra.mxu0 %v4454_v29  ;;  %v4442_v46 = vor.u32 %v6501_v40, %v4439_v41  ;;  %v6499_v48 = vld [vmem:[#allocation2 + $0x6c] sm:$0xf0]  ;;  %v4549_v49 = vld [vmem:[#allocation2 + $0x160] sm:$0xf] }
  0x1b   :  { %495 = vmatpush.bf16.msra.mxu1 %v4582_v33  ;;  %v4570_v50 = vor.u32 %v6533_v42, %v4567_v43  ;;  %v6531_v51 = vld [vmem:[#allocation2 + $0x16c] sm:$0xf0]  ;;  %v6497_v52 = vld [vmem:[#allocation2 + $0x64] sm:$0xf]  ;;  %v4423_v53 = vld [vmem:[#allocation2 + $0x70] sm:$0xf0]  ;;  %v4422_v56 = vor.u32 %v6499_v48, %v4421_v47 }
  0x1c   :  { %509 = vmatpush.bf16.msra.mxu2 %v4458_v34  ;;  %v6529_v54 = vld [vmem:[#allocation2 + $0x164] sm:$0xf]  ;;  %v4551_v55 = vld [vmem:[#allocation2 + $0x170] sm:$0xf0]  ;;  %v4550_v57 = vor.u32 %v6531_v51, %v4549_v49  ;;  %v4426_v58 = vor.u32 %v6497_v52, %v4423_v53  ;;  %v4405_v59 = vld [vmem:[#allocation2 + $0x40] sm:$0xf] }
  0x1d   :  { %523 = vmatpush.bf16.msra.mxu3 %v4586_v38  ;;  %v6495_v60 = vld [vmem:[#allocation2 + $0x4c] sm:$0xf0]  ;;  %v4533_v61 = vld [vmem:[#allocation2 + $0x140] sm:$0xf]  ;;  %v4554_v62 = vor.u32 %v6529_v54, %v4551_v55  ;;  %v6493_v0 = vld [vmem:[#allocation2 + $0x44] sm:$0xf] }
  0x1e   :  { %482 = vmatpush.bf16.msra.mxu0 %v4438_v44  ;;  %v6527_v63 = vld [vmem:[#allocation2 + $0x14c] sm:$0xf0]  ;;  %v4407_v1 = vld [vmem:[#allocation2 + $0x50] sm:$0xf0]  ;;  %v6525_v2 = vld [vmem:[#allocation2 + $0x144] sm:$0xf]  ;;  %v4406_v4 = vor.u32 %v6495_v60, %v4405_v59 }
  0x1f   :  { %496 = vmatpush.bf16.msra.mxu1 %v4566_v45  ;;  %v4535_v3 = vld [vmem:[#allocation2 + $0x150] sm:$0xf0]  ;;  %v4534_v5 = vor.u32 %v6527_v63, %v4533_v61  ;;  %v4410_v6 = vor.u32 %v6493_v0, %v4407_v1  ;;  %v4389_v7 = vld [vmem:[#allocation2 + $0x20] sm:$0xf]  ;;  %v6491_v8 = vld [vmem:[#allocation2 + $0x2c] sm:$0xf0] }
  0x20   :  { %510 = vmatpush.bf16.msra.mxu2 %v4442_v46  ;;  %v4517_v9 = vld [vmem:[#allocation2 + $0x120] sm:$0xf]  ;;  %v4538_v10 = vor.u32 %v6525_v2, %v4535_v3  ;;  %v6523_v11 = vld [vmem:[#allocation2 + $0x12c] sm:$0xf0]  ;;  %v6489_v12 = vld [vmem:[#allocation2 + $0x24] sm:$0xf]  ;;  %v4390_v16 = vor.u32 %v6491_v8, %v4389_v7 }
  0x21   :  { %524 = vmatpush.bf16.msra.mxu3 %v4570_v50  ;;  %v4391_v13 = vld [vmem:[#allocation2 + $0x30] sm:$0xf0]  ;;  %v6521_v14 = vld [vmem:[#allocation2 + $0x124] sm:$0xf]  ;;  %v4373_v17 = vld [vmem:[#allocation2] sm:$0xf]  ;;  %v4518_v19 = vor.u32 %v6523_v11, %v4517_v9 }
  0x22   :  { %483 = vmatpush.bf16.msra.mxu0 %v4422_v56  ;;  %v4519_v15 = vld [vmem:[#allocation2 + $0x130] sm:$0xf0]  ;;  %v6487_v18 = vld [vmem:[#allocation2 + $0xc] sm:$0xf0]  ;;  %v4394_v20 = vor.u32 %v6489_v12, %v4391_v13  ;;  %v4501_v21 = vld [vmem:[#allocation2 + $0x100] sm:$0xf] }
  0x23   :  { %497 = vmatpush.bf16.msra.mxu1 %v4550_v57  ;;  %v6519_v22 = vld [vmem:[#allocation2 + $0x10c] sm:$0xf0]  ;;  %v6485_v23 = vld [vmem:[#allocation2 + $0x4] sm:$0xf]  ;;  %v4522_v24 = vor.u32 %v6521_v14, %v4519_v15  ;;  %v4375_v25 = vld [vmem:[#allocation2 + $0x10] sm:$0xf0]  ;;  %v4374_v31 = vor.u32 %v6487_v18, %v4373_v17 }
  0x24   :  { %511 = vmatpush.bf16.msra.mxu2 %v4426_v58  ;;  %v6517_v26 = vld [vmem:[#allocation2 + $0x104] sm:$0xf]  ;;  %v4503_v27 = vld [vmem:[#allocation2 + $0x110] sm:$0xf0]  ;;  %v4493_v28 = vld [vmem:[#allocation2 + $0xe8] sm:$0xf]  ;;  %v4502_v35 = vor.u32 %v6519_v22, %v4501_v21  ;;  %v4378_v36 = vor.u32 %v6485_v23, %v4375_v25 }
  0x25   :  { %525 = vmatpush.bf16.msra.mxu3 %v4554_v62  ;;  %v6516_v29 = vld [vmem:[#allocation2 + $0xf4] sm:$0xf0]  ;;  %v4621_v30 = vld [vmem:[#allocation2 + $0x1e8] sm:$0xf]  ;;  %v6514_v33 = vld [vmem:[#allocation2 + $0xec] sm:$0xf]  ;;  %v4506_v39 = vor.u32 %v6517_v26, %v4503_v27 }
  0x26   :  { %484 = vmatpush.bf16.msra.mxu0 %v4406_v4  ;;  %v6548_v32 = vld [vmem:[#allocation2 + $0x1f4] sm:$0xf0]  ;;  %v4495_v34 = vld [vmem:[#allocation2 + $0xf8] sm:$0xf0]  ;;  %v6546_v37 = vld [vmem:[#allocation2 + $0x1ec] sm:$0xf]  ;;  %v4494_v40 = vor.u32 %v6516_v29, %v4493_v28 }
  0x27   :  { %498 = vmatpush.bf16.msra.mxu1 %v4534_v5  ;;  %v4623_v38 = vld [vmem:[#allocation2 + $0x1f8] sm:$0xf0]  ;;  %v4622_v41 = vor.u32 %v6548_v32, %v4621_v30  ;;  %v4498_v42 = vor.u32 %v6514_v33, %v4495_v34  ;;  %v4477_v43 = vld [vmem:[#allocation2 + $0xc8] sm:$0xf]  ;;  %v6512_v44 = vld [vmem:[#allocation2 + $0xd4] sm:$0xf0] }
  0x28   :  { %512 = vmatpush.bf16.msra.mxu2 %v4410_v6  ;;  %v4605_v45 = vld [vmem:[#allocation2 + $0x1c8] sm:$0xf]  ;;  %v4626_v46 = vor.u32 %v6546_v37, %v4623_v38  ;;  %v6544_v47 = vld [vmem:[#allocation2 + $0x1d4] sm:$0xf0]  ;;  %v6510_v48 = vld [vmem:[#allocation2 + $0xcc] sm:$0xf]  ;;  %v4478_v52 = vor.u32 %v6512_v44, %v4477_v43 }
  0x29   :  { %526 = vmatpush.bf16.msra.mxu3 %v4538_v10  ;;  %v4479_v49 = vld [vmem:[#allocation2 + $0xd8] sm:$0xf0]  ;;  %v6542_v50 = vld [vmem:[#allocation2 + $0x1cc] sm:$0xf]  ;;  %v4606_v53 = vor.u32 %v6544_v47, %v4605_v45  ;;  %v4461_v55 = vld [vmem:[#allocation2 + $0xa8] sm:$0xf] }
  0x2a   :  { %485 = vmatpush.bf16.msra.mxu0 %v4390_v16  ;;  %v4607_v51 = vld [vmem:[#allocation2 + $0x1d8] sm:$0xf0]  ;;  %v4482_v54 = vor.u32 %v6510_v48, %v4479_v49  ;;  %v6508_v56 = vld [vmem:[#allocation2 + $0xb4] sm:$0xf0]  ;;  %v4589_v57 = vld [vmem:[#allocation2 + $0x1a8] sm:$0xf] }
  0x2b   :  { %499 = vmatpush.bf16.msra.mxu1 %v4518_v19  ;;  %v4610_v58 = vor.u32 %v6542_v50, %v4607_v51  ;;  %v6540_v59 = vld [vmem:[#allocation2 + $0x1b4] sm:$0xf0]  ;;  %v6506_v60 = vld [vmem:[#allocation2 + $0xac] sm:$0xf]  ;;  %v4463_v61 = vld [vmem:[#allocation2 + $0xb8] sm:$0xf0]  ;;  %v4462_v1 = vor.u32 %v6508_v56, %v4461_v55 }
  0x2c   :  { %513 = vmatpush.bf16.msra.mxu2 %v4394_v20  ;;  %v6538_v62 = vld [vmem:[#allocation2 + $0x1ac] sm:$0xf]  ;;  %v4591_v63 = vld [vmem:[#allocation2 + $0x1b8] sm:$0xf0]  ;;  %v4445_v0 = vld [vmem:[#allocation2 + $0x88] sm:$0xf]  ;;  %v4590_v5 = vor.u32 %v6540_v59, %v4589_v57  ;;  %v4466_v6 = vor.u32 %v6506_v60, %v4463_v61 }
  0x2d   :  { %527 = vmatpush.bf16.msra.mxu3 %v4522_v24  ;;  %v6504_v2 = vld [vmem:[#allocation2 + $0x94] sm:$0xf0]  ;;  %v4365_v3 = vld [vmem:[%s7523_s0] sm:$0xf]  ;;  %v6484_v4 = vld [vmem:[%s7523_s0 + $0x4] sm:$0xf0]  ;;  %v4594_v11 = vor.u32 %v6538_v62, %v4591_v63 }
  0x2e   :  { %486 = vmatpush.bf16.msra.mxu0 %v4374_v31  ;;  %v4573_v7 = vld [vmem:[#allocation2 + $0x188] sm:$0xf]  ;;  %v7167_v8 = vor.u32 %v6484_v4, %v4365_v3  ;;  %v6483_v9 = vld [vmem:[%s7523_s0 + $0x4] sm:$0xf]  ;;  %v4367_v10 = vld [vmem:[%s7523_s0 + $0x8] sm:$0xf0]  ;;  %v4446_v18 = vor.u32 %v6504_v2, %v4445_v0 }
  0x2f   :  { %500 = vmatpush.bf16.msra.mxu1 %v4502_v35  ;;  %v6536_v12 = vld [vmem:[#allocation2 + $0x194] sm:$0xf0]  ;;  %v6502_v13 = vld [vmem:[#allocation2 + $0x8c] sm:$0xf]  ;;  %v4447_v14 = vld [vmem:[#allocation2 + $0x98] sm:$0xf0]  ;;  %v7175_v15 = vor.u32 %v6483_v9, %v4367_v10 }
  0x30   :  { %514 = vmatpush.bf16.msra.mxu2 %v4378_v36  ;;  %v6534_v16 = vld [vmem:[#allocation2 + $0x18c] sm:$0xf]  ;;  %v4575_v17 = vld [vmem:[#allocation2 + $0x198] sm:$0xf0]  ;;  %v4574_v19 = vor.u32 %v6536_v12, %v4573_v7  ;;  %v4450_v20 = vor.u32 %v6502_v13, %v4447_v14  ;;  %v4429_v21 = vld [vmem:[#allocation2 + $0x68] sm:$0xf] }
  0x31   :  { %528 = vmatpush.bf16.msra.mxu3 %v4506_v39  ;;  %487 = vmatmul.bf16.vlgmr.msra.gmra.mxu0 %v7167_v8  ;;  %v6500_v22 = vld [vmem:[#allocation2 + $0x74] sm:$0xf0]  ;;  %v4557_v23 = vld [vmem:[#allocation2 + $0x168] sm:$0xf]  ;;  %v4578_v24 = vor.u32 %v6534_v16, %v4575_v17  ;;  %v6498_v26 = vld [vmem:[#allocation2 + $0x6c] sm:$0xf] }
  0x32   :  { %535 = vmatpush.bf16.msrb.mxu0 %v4494_v40  ;;  %v6532_v25 = vld [vmem:[#allocation2 + $0x174] sm:$0xf0]  ;;  %v4431_v27 = vld [vmem:[#allocation2 + $0x78] sm:$0xf0]  ;;  %501 = vmatmul.bf16.vlgmr.msra.gmra.mxu1 %v7175_v15  ;;  %v6530_v28 = vld [vmem:[#allocation2 + $0x16c] sm:$0xf]  ;;  %v4430_v30 = vor.u32 %v6500_v22, %v4429_v21 }
  0x33   :  { %549 = vmatpush.bf16.msrb.mxu1 %v4622_v41  ;;  %515 = vmatmul.bf16.vlgmr.msra.gmra.mxu2 %v7167_v8  ;;  %v4559_v29 = vld [vmem:[#allocation2 + $0x178] sm:$0xf0]  ;;  %v4558_v31 = vor.u32 %v6532_v25, %v4557_v23  ;;  %v4434_v32 = vor.u32 %v6498_v26, %v4431_v27  ;;  %v4413_v33 = vld [vmem:[#allocation2 + $0x48] sm:$0xf]  ;;  %v6496_v34 = vld [vmem:[#allocation2 + $0x54] sm:$0xf0] }
  0x34   :  { %563 = vmatpush.bf16.msrb.mxu2 %v4498_v42  ;;  %529 = vmatmul.bf16.vlgmr.msra.gmra.mxu3 %v7175_v15  ;;  %v4541_v35 = vld [vmem:[#allocation2 + $0x148] sm:$0xf]  ;;  %v4562_v36 = vor.u32 %v6530_v28, %v4559_v29  ;;  %v6528_v37 = vld [vmem:[#allocation2 + $0x154] sm:$0xf0]  ;;  %v6494_v38 = vld [vmem:[#allocation2 + $0x4c] sm:$0xf]  ;;  %v4414_v42 = vor.u32 %v6496_v34, %v4413_v33 }
  0x35   :  { %577 = vmatpush.bf16.msrb.mxu3 %v4626_v46  ;;  %v4415_v39 = vld [vmem:[#allocation2 + $0x58] sm:$0xf0]  ;;  %v6526_v40 = vld [vmem:[#allocation2 + $0x14c] sm:$0xf]  ;;  %v4542_v43 = vor.u32 %v6528_v37, %v4541_v35  ;;  %v4397_v45 = vld [vmem:[#allocation2 + $0x28] sm:$0xf] }
  0x36   :  { %536 = vmatpush.bf16.msrb.mxu0 %v4478_v52  ;;  %v4543_v41 = vld [vmem:[#allocation2 + $0x158] sm:$0xf0]  ;;  %v4418_v44 = vor.u32 %v6494_v38, %v4415_v39  ;;  %v6492_v46 = vld [vmem:[#allocation2 + $0x34] sm:$0xf0]  ;;  %v4525_v47 = vld [vmem:[#allocation2 + $0x128] sm:$0xf] }
  0x37   :  { %550 = vmatpush.bf16.msrb.mxu1 %v4606_v53  ;;  %v4546_v48 = vor.u32 %v6526_v40, %v4543_v41  ;;  %v6524_v49 = vld [vmem:[#allocation2 + $0x134] sm:$0xf0]  ;;  %v6490_v50 = vld [vmem:[#allocation2 + $0x2c] sm:$0xf]  ;;  %v4399_v51 = vld [vmem:[#allocation2 + $0x38] sm:$0xf0] }
  0x38   :  { %564 = vmatpush.bf16.msrb.mxu2 %v4482_v54  ;;  %v6522_v52 = vld [vmem:[#allocation2 + $0x12c] sm:$0xf]  ;;  %v4527_v53 = vld [vmem:[#allocation2 + $0x138] sm:$0xf0]  ;;  %v4398_v54 = vor.u32 %v6492_v46, %v4397_v45  ;;  %v4381_v55 = vld [vmem:[#allocation2 + $0x8] sm:$0xf]  ;;  %v4526_v57 = vor.u32 %v6524_v49, %v4525_v47 }
  0x39   :  { %578 = vmatpush.bf16.msrb.mxu3 %v4610_v58  ;;  %v6488_v56 = vld [vmem:[#allocation2 + $0x14] sm:$0xf0]  ;;  %v4402_v58 = vor.u32 %v6490_v50, %v4399_v51  ;;  %v4509_v59 = vld [vmem:[#allocation2 + $0x108] sm:$0xf]  ;;  %v6486_v61 = vld [vmem:[#allocation2 + $0xc] sm:$0xf]  ;;  %v4530_v62 = vor.u32 %v6522_v52, %v4527_v53 }
  0x3a   :  { %537 = vmatpush.bf16.msrb.mxu0 %v4462_v1  ;;  %v6520_v60 = vld [vmem:[#allocation2 + $0x114] sm:$0xf0]  ;;  %v4383_v63 = vld [vmem:[#allocation2 + $0x18] sm:$0xf0]  ;;  %v6518_v0 = vld [vmem:[#allocation2 + $0x10c] sm:$0xf] }
  0x3b   :  { %551 = vmatpush.bf16.msrb.mxu1 %v4590_v5  ;;  %v4511_v1 = vld [vmem:[#allocation2 + $0x118] sm:$0xf0]  ;;  %v4741_v2 = vld [vmem:[#allocation2 + $0x2e0] sm:$0xf]  ;;  %v6579_v3 = vld [vmem:[#allocation2 + $0x2ec] sm:$0xf0]  ;;  %v4382_v5 = vor.u32 %v6488_v56, %v4381_v55  ;;  %v4510_v10 = vor.u32 %v6520_v60, %v4509_v59 }
  0x3c   :  { %565 = vmatpush.bf16.msrb.mxu2 %v4466_v6  ;;  %v4869_v4 = vld [vmem:[#allocation2 + $0x3e0] sm:$0xf]  ;;  %v6611_v6 = vld [vmem:[#allocation2 + $0x3ec] sm:$0xf0]  ;;  %v6577_v7 = vld [vmem:[#allocation2 + $0x2e4] sm:$0xf]  ;;  %v4514_v14 = vor.u32 %v6518_v0, %v4511_v1  ;;  %v4742_v16 = vor.u32 %v6579_v3, %v4741_v2 }
  0x3d   :  { %579 = vmatpush.bf16.msrb.mxu3 %v4594_v11  ;;  %v4743_v9 = vld [vmem:[#allocation2 + $0x2f0] sm:$0xf0]  ;;  %v4386_v11 = vor.u32 %v6486_v61, %v4383_v63  ;;  %v6609_v12 = vld [vmem:[#allocation2 + $0x3e4] sm:$0xf]  ;;  %v4870_v17 = vor.u32 %v6611_v6, %v4869_v4  ;;  %v4853_v21 = vld [vmem:[#allocation2 + $0x3c0] sm:$0xf] }
  0x3e   :  { %538 = vmatpush.bf16.msrb.mxu0 %v4446_v18  ;;  %v4871_v13 = vld [vmem:[#allocation2 + $0x3f0] sm:$0xf0]  ;;  %v4746_v18 = vor.u32 %v6577_v7, %v4743_v9  ;;  %v6607_v23 = vld [vmem:[#allocation2 + $0x3cc] sm:$0xf0]  ;;  %v6605_v26 = vld [vmem:[#allocation2 + $0x3c4] sm:$0xf] }
  0x3f   :  { %552 = vmatpush.bf16.msrb.mxu1 %v4574_v19  ;;  %v4725_v19 = vld [vmem:[#allocation2 + $0x2c0] sm:$0xf]  ;;  %v4874_v22 = vor.u32 %v6609_v12, %v4871_v13  ;;  %v4727_v25 = vld [vmem:[#allocation2 + $0x2d0] sm:$0xf0]  ;;  %v4854_v29 = vor.u32 %v6607_v23, %v4853_v21  ;;  %v6603_v35 = vld [vmem:[#allocation2 + $0x3ac] sm:$0xf0] }
  0x40   :  { %566 = vmatpush.bf16.msrb.mxu2 %v4450_v20  ;;  %v6575_v20 = vld [vmem:[#allocation2 + $0x2cc] sm:$0xf0]  ;;  %v4855_v27 = vld [vmem:[#allocation2 + $0x3d0] sm:$0xf0]  ;;  %v4837_v33 = vld [vmem:[#allocation2 + $0x3a0] sm:$0xf] }
  0x41   :  { %580 = vmatpush.bf16.msrb.mxu3 %v4578_v24  ;;  %v6573_v24 = vld [vmem:[#allocation2 + $0x2c4] sm:$0xf]  ;;  %v4726_v28 = vor.u32 %v6575_v20, %v4725_v19  ;;  %v4858_v34 = vor.u32 %v6605_v26, %v4855_v27  ;;  %v4711_v37 = vld [vmem:[#allocation2 + $0x2b0] sm:$0xf0]  ;;  %v4838_v41 = vor.u32 %v6603_v35, %v4837_v33  ;;  %v4821_v45 = vld [vmem:[#allocation2 + $0x380] sm:$0xf] }
  0x42   :  { %539 = vmatpush.bf16.msrb.mxu0 %v4430_v30  ;;  %v4730_v30 = vor.u32 %v6573_v24, %v4727_v25  ;;  %v6601_v38 = vld [vmem:[#allocation2 + $0x3a4] sm:$0xf]  ;;  %v4839_v39 = vld [vmem:[#allocation2 + $0x3b0] sm:$0xf0]  ;;  %v6599_v47 = vld [vmem:[#allocation2 + $0x38c] sm:$0xf0] }
  0x43   :  { %553 = vmatpush.bf16.msrb.mxu1 %v4558_v31  ;;  %v4709_v31 = vld [vmem:[#allocation2 + $0x2a0] sm:$0xf]  ;;  %v4842_v46 = vor.u32 %v6601_v38, %v4839_v39  ;;  %v4695_v49 = vld [vmem:[#allocation2 + $0x290] sm:$0xf0]  ;;  %v6597_v50 = vld [vmem:[#allocation2 + $0x384] sm:$0xf]  ;;  %v4822_v53 = vor.u32 %v6599_v47, %v4821_v45 }
  0x44   :  { %567 = vmatpush.bf16.msrb.mxu2 %v4434_v32  ;;  %v6571_v32 = vld [vmem:[#allocation2 + $0x2ac] sm:$0xf0]  ;;  %v4823_v51 = vld [vmem:[#allocation2 + $0x390] sm:$0xf0]  ;;  %v4677_v55 = vld [vmem:[#allocation2 + $0x260] sm:$0xf] }
  0x45   :  { %581 = vmatpush.bf16.msrb.mxu3 %v4562_v36  ;;  %v6569_v36 = vld [vmem:[#allocation2 + $0x2a4] sm:$0xf]  ;;  %v4710_v40 = vor.u32 %v6571_v32, %v4709_v31  ;;  %v6563_v56 = vld [vmem:[#allocation2 + $0x26c] sm:$0xf0]  ;;  %v4679_v61 = vld [vmem:[#allocation2 + $0x270] sm:$0xf0] }
  0x46   :  { %540 = vmatpush.bf16.msrb.mxu0 %v4414_v42  ;;  %v4714_v42 = vor.u32 %v6569_v36, %v4711_v37  ;;  %v6595_v59 = vld [vmem:[#allocation2 + $0x36c] sm:$0xf0]  ;;  %v6561_v60 = vld [vmem:[#allocation2 + $0x264] sm:$0xf]  ;;  %v4807_v63 = vld [vmem:[#allocation2 + $0x370] sm:$0xf0]  ;;  %v4678_v0 = vor.u32 %v6563_v56, %v4677_v55 }
  0x47   :  { %554 = vmatpush.bf16.msrb.mxu1 %v4542_v43  ;;  %v4693_v43 = vld [vmem:[#allocation2 + $0x280] sm:$0xf]  ;;  %v4682_v2 = vor.u32 %v6561_v60, %v4679_v61  ;;  %v6559_v4 = vld [vmem:[#allocation2 + $0x24c] sm:$0xf0]  ;;  %v6557_v9 = vld [vmem:[#allocation2 + $0x244] sm:$0xf] }
  0x48   :  { %568 = vmatpush.bf16.msrb.mxu2 %v4418_v44  ;;  %v6567_v44 = vld [vmem:[#allocation2 + $0x28c] sm:$0xf0]  ;;  %v4661_v3 = vld [vmem:[#allocation2 + $0x240] sm:$0xf]  ;;  %v4791_v12 = vld [vmem:[#allocation2 + $0x350] sm:$0xf0] }
  0x49   :  { %582 = vmatpush.bf16.msrb.mxu3 %v4546_v48  ;;  %v6565_v48 = vld [vmem:[#allocation2 + $0x284] sm:$0xf]  ;;  %v4694_v52 = vor.u32 %v6567_v44, %v4693_v43  ;;  %v6591_v7 = vld [vmem:[#allocation2 + $0x34c] sm:$0xf0]  ;;  %v4662_v13 = vor.u32 %v6559_v4, %v4661_v3  ;;  %v4773_v19 = vld [vmem:[#allocation2 + $0x320] sm:$0xf] }
  0x4a   :  { %541 = vmatpush.bf16.msrb.mxu0 %v4398_v54  ;;  %v4698_v54 = vor.u32 %v6565_v48, %v4695_v49  ;;  %v6587_v21 = vld [vmem:[#allocation2 + $0x32c] sm:$0xf0]  ;;  %v4647_v23 = vld [vmem:[#allocation2 + $0x230] sm:$0xf0]  ;;  %v6585_v24 = vld [vmem:[#allocation2 + $0x324] sm:$0xf] }
  0x4b   :  { %555 = vmatpush.bf16.msrb.mxu1 %v4526_v57  ;;  %v4805_v57 = vld [vmem:[#allocation2 + $0x360] sm:$0xf]  ;;  %v4775_v25 = vld [vmem:[#allocation2 + $0x330] sm:$0xf0]  ;;  %v6583_v32 = vld [vmem:[#allocation2 + $0x30c] sm:$0xf0] }
  0x4c   :  { %569 = vmatpush.bf16.msrb.mxu2 %v4402_v58  ;;  %v4826_v58 = vor.u32 %v6597_v50, %v4823_v51  ;;  %v4806_v1 = vor.u32 %v6595_v59, %v4805_v57  ;;  %v4629_v27 = vld [vmem:[#allocation2 + $0x200] sm:$0xf]  ;;  %v6549_v33 = vld [vmem:[#allocation2 + $0x204] sm:$0xf]  ;;  %v4631_v35 = vld [vmem:[#allocation2 + $0x210] sm:$0xf0] }
  0x4d   :  { %583 = vmatpush.bf16.msrb.mxu3 %v4530_v62  ;;  %v6593_v62 = vld [vmem:[#allocation2 + $0x364] sm:$0xf]  ;;  %v4757_v31 = vld [vmem:[#allocation2 + $0x300] sm:$0xf]  ;;  %v4759_v37 = vld [vmem:[#allocation2 + $0x310] sm:$0xf0] }
  0x4e   :  { %542 = vmatpush.bf16.msrb.mxu0 %v4382_v5  ;;  %v4789_v5 = vld [vmem:[#allocation2 + $0x340] sm:$0xf]  ;;  %v4810_v6 = vor.u32 %v6593_v62, %v4807_v63  ;;  %v6581_v36 = vld [vmem:[#allocation2 + $0x304] sm:$0xf]  ;;  %v4749_v38 = vld [vmem:[#allocation2 + $0x2e8] sm:$0xf]  ;;  %v4758_v45 = vor.u32 %v6583_v32, %v4757_v31 }
  0x4f   :  { %556 = vmatpush.bf16.msrb.mxu1 %v4510_v10  ;;  %v4663_v10 = vld [vmem:[#allocation2 + $0x250] sm:$0xf0]  ;;  %v6580_v39 = vld [vmem:[#allocation2 + $0x2f4] sm:$0xf0]  ;;  %v6578_v43 = vld [vmem:[#allocation2 + $0x2ec] sm:$0xf]  ;;  %v4762_v49 = vor.u32 %v6581_v36, %v4759_v37 }
  0x50   :  { %570 = vmatpush.bf16.msrb.mxu2 %v4386_v11  ;;  %v6589_v11 = vld [vmem:[#allocation2 + $0x344] sm:$0xf]  ;;  %v4751_v44 = vld [vmem:[#allocation2 + $0x2f8] sm:$0xf0]  ;;  %v6610_v47 = vld [vmem:[#allocation2 + $0x3ec] sm:$0xf]  ;;  %v4750_v50 = vor.u32 %v6580_v39, %v4749_v38 }
  0x51   :  { %584 = vmatpush.bf16.msrb.mxu3 %v4514_v14  ;;  %543 = vmatmul.bf16.vlgmr.msrb.gmra.mxu0 %v7167_v8  ;;  %v4790_v14 = vor.u32 %v6591_v7, %v4789_v5  ;;  %v4794_v20 = vor.u32 %v6589_v11, %v4791_v12  ;;  %v4879_v48 = vld [vmem:[#allocation2 + $0x3f8] sm:$0xf0]  ;;  %v4861_v55 = vld [vmem:[#allocation2 + $0x3c8] sm:$0xf]  ;;  %v6608_v57 = vld [vmem:[#allocation2 + $0x3d4] sm:$0xf0] }
  0x52   :  { %984 = vmatpush.bf16.msra.mxu0 %v4742_v16  ;;  %557 = vmatmul.bf16.vlgmr.msrb.gmra.mxu1 %v7175_v15  ;;  %v4666_v16 = vor.u32 %v6557_v9, %v4663_v10  ;;  %v4882_v56 = vor.u32 %v6610_v47, %v4879_v48  ;;  %v4735_v59 = vld [vmem:[#allocation2 + $0x2d8] sm:$0xf0]  ;;  %v6606_v60 = vld [vmem:[#allocation2 + $0x3cc] sm:$0xf]  ;;  %v4862_v63 = vor.u32 %v6608_v57, %v4861_v55  ;;  %v4845_v3 = vld [vmem:[#allocation2 + $0x3a8] sm:$0xf] }
  0x53   :  { %998 = vmatpush.bf16.msra.mxu1 %v4870_v17  ;;  %571 = vmatmul.bf16.vlgmr.msrb.gmra.mxu2 %v7167_v8  ;;  %v4645_v17 = vld [vmem:[#allocation2 + $0x220] sm:$0xf]  ;;  %v4863_v61 = vld [vmem:[#allocation2 + $0x3d8] sm:$0xf0]  ;;  %v6604_v5 = vld [vmem:[#allocation2 + $0x3b4] sm:$0xf0] }
  0x54   :  { %1012 = vmatpush.bf16.msra.mxu2 %v4746_v18  ;;  %585 = vmatmul.bf16.vlgmr.msrb.gmra.mxu3 %v7175_v15  ;;  %v6555_v18 = vld [vmem:[#allocation2 + $0x22c] sm:$0xf0]  ;;  %v4866_v4 = vor.u32 %v6606_v60, %v4863_v61  ;;  %v4719_v7 = vld [vmem:[#allocation2 + $0x2b8] sm:$0xf0]  ;;  %v6602_v9 = vld [vmem:[#allocation2 + $0x3ac] sm:$0xf]  ;;  %v4846_v12 = vor.u32 %v6604_v5, %v4845_v3 }
  0x55   :  { %1026 = vmatpush.bf16.msra.mxu3 %v4874_v22  ;;  %v6553_v22 = vld [vmem:[#allocation2 + $0x224] sm:$0xf]  ;;  %v4646_v26 = vor.u32 %v6555_v18, %v4645_v17  ;;  %v4847_v10 = vld [vmem:[#allocation2 + $0x3b8] sm:$0xf0]  ;;  %v4829_v17 = vld [vmem:[#allocation2 + $0x388] sm:$0xf] }
  0x56   :  { %985 = vmatpush.bf16.msra.mxu0 %v4726_v28  ;;  %v6551_v28 = vld [vmem:[#allocation2 + $0x20c] sm:$0xf0]  ;;  %v4850_v18 = vor.u32 %v6602_v9, %v4847_v10  ;;  %v6596_v31 = vld [vmem:[#allocation2 + $0x374] sm:$0xf0]  ;;  %v6562_v32 = vld [vmem:[#allocation2 + $0x26c] sm:$0xf] }
  0x57   :  { %999 = vmatpush.bf16.msra.mxu1 %v4854_v29  ;;  %v4774_v29 = vor.u32 %v6587_v21, %v4773_v19  ;;  %v6600_v19 = vld [vmem:[#allocation2 + $0x394] sm:$0xf0]  ;;  %v4703_v21 = vld [vmem:[#allocation2 + $0x298] sm:$0xf0]  ;;  %v4669_v39 = vld [vmem:[#allocation2 + $0x248] sm:$0xf] }
  0x58   :  { %1013 = vmatpush.bf16.msra.mxu2 %v4730_v30  ;;  %v4650_v30 = vor.u32 %v6553_v22, %v4647_v23  ;;  %v6598_v22 = vld [vmem:[#allocation2 + $0x38c] sm:$0xf]  ;;  %v4831_v23 = vld [vmem:[#allocation2 + $0x398] sm:$0xf0]  ;;  %v6588_v55 = vld [vmem:[#allocation2 + $0x334] sm:$0xf0] }
  0x59   :  { %1027 = vmatpush.bf16.msra.mxu3 %v4858_v34  ;;  %v4778_v34 = vor.u32 %v6585_v24, %v4775_v25  ;;  %v4830_v25 = vor.u32 %v6600_v19, %v4829_v17  ;;  %v4799_v47 = vld [vmem:[#allocation2 + $0x358] sm:$0xf0]  ;;  %v4637_v61 = vld [vmem:[#allocation2 + $0x208] sm:$0xf]  ;;  %v6550_v3 = vld [vmem:[#allocation2 + $0x20c] sm:$0xf] }
  0x5a   :  { %986 = vmatpush.bf16.msra.mxu0 %v4710_v40  ;;  %v4877_v40 = vld [vmem:[#allocation2 + $0x3e8] sm:$0xf]  ;;  %v4655_v57 = vld [vmem:[#allocation2 + $0x238] sm:$0xf0]  ;;  %v4997_v9 = vld [vmem:[#allocation2 + $0x4e0] sm:$0xf] }
  0x5b   :  { %1000 = vmatpush.bf16.msra.mxu1 %v4838_v41  ;;  %v4630_v41 = vor.u32 %v6551_v28, %v4629_v27  ;;  %v4685_v27 = vld [vmem:[#allocation2 + $0x268] sm:$0xf]  ;;  %v6564_v28 = vld [vmem:[#allocation2 + $0x274] sm:$0xf0]  ;;  %v4639_v5 = vld [vmem:[#allocation2 + $0x218] sm:$0xf0] }
  0x5c   :  { %1014 = vmatpush.bf16.msra.mxu2 %v4714_v42  ;;  %v6612_v42 = vld [vmem:[#allocation2 + $0x3f4] sm:$0xf0]  ;;  %v4686_v36 = vor.u32 %v6564_v28, %v4685_v27  ;;  %v6643_v10 = vld [vmem:[#allocation2 + $0x4ec] sm:$0xf0]  ;;  %v6673_v19 = vld [vmem:[#allocation2 + $0x5e4] sm:$0xf] }
  0x5d   :  { %1028 = vmatpush.bf16.msra.mxu3 %v4842_v46  ;;  %v4634_v46 = vor.u32 %v6549_v33, %v4631_v35  ;;  %v4878_v51 = vor.u32 %v6612_v42, %v4877_v40  ;;  %v4687_v33 = vld [vmem:[#allocation2 + $0x278] sm:$0xf0]  ;;  %v6560_v40 = vld [vmem:[#allocation2 + $0x254] sm:$0xf0]  ;;  %v5109_v27 = vld [vmem:[#allocation2 + $0x5c0] sm:$0xf] }
  0x5e   :  { %987 = vmatpush.bf16.msra.mxu0 %v4694_v52  ;;  %v4754_v52 = vor.u32 %v6578_v43, %v4751_v44  ;;  %v4815_v35 = vld [vmem:[#allocation2 + $0x378] sm:$0xf0]  ;;  %v4690_v38 = vor.u32 %v6562_v32, %v4687_v33  ;;  %v6592_v43 = vld [vmem:[#allocation2 + $0x354] sm:$0xf0]  ;;  %v6558_v44 = vld [vmem:[#allocation2 + $0x24c] sm:$0xf]  ;;  %v4670_v48 = vor.u32 %v6560_v40, %v4669_v39 }
  0x5f   :  { %1001 = vmatpush.bf16.msra.mxu1 %v4822_v53  ;;  %v4733_v53 = vld [vmem:[#allocation2 + $0x2c8] sm:$0xf]  ;;  %v6669_v32 = vld [vmem:[#allocation2 + $0x5c4] sm:$0xf]  ;;  %v5111_v33 = vld [vmem:[#allocation2 + $0x5d0] sm:$0xf0] }
  0x60   :  { %1015 = vmatpush.bf16.msra.mxu2 %v4698_v54  ;;  %v6576_v54 = vld [vmem:[#allocation2 + $0x2d4] sm:$0xf0]  ;;  %v5093_v39 = vld [vmem:[#allocation2 + $0x5a0] sm:$0xf]  ;;  %v5114_v40 = vor.u32 %v6669_v32, %v5111_v33 }
  0x61   :  { %1029 = vmatpush.bf16.msra.mxu3 %v4826_v58  ;;  %v6574_v58 = vld [vmem:[#allocation2 + $0x2cc] sm:$0xf]  ;;  %v4734_v62 = vor.u32 %v6576_v54, %v4733_v53  ;;  %v4781_v53 = vld [vmem:[#allocation2 + $0x328] sm:$0xf]  ;;  %v4885_v33 = vld [vmem:[#allocation2 + $0x400] sm:$0xf] }
  0x62   :  { %988 = vmatpush.bf16.msra.mxu0 %v4678_v0  ;;  %v4738_v0 = vor.u32 %v6574_v58, %v4735_v59  ;;  %v6586_v58 = vld [vmem:[#allocation2 + $0x32c] sm:$0xf]  ;;  %v4783_v59 = vld [vmem:[#allocation2 + $0x338] sm:$0xf0] }
  0x63   :  { %1002 = vmatpush.bf16.msra.mxu1 %v4806_v1  ;;  %v4717_v1 = vld [vmem:[#allocation2 + $0x2a8] sm:$0xf] }
  0x64   :  { %1016 = vmatpush.bf16.msra.mxu2 %v4682_v2  ;;  %v6572_v2 = vld [vmem:[#allocation2 + $0x2b4] sm:$0xf0] }
  0x65   :  { %1030 = vmatpush.bf16.msra.mxu3 %v4810_v6  ;;  %v6570_v6 = vld [vmem:[#allocation2 + $0x2ac] sm:$0xf]  ;;  %v4718_v11 = vor.u32 %v6572_v2, %v4717_v1  ;;  %v4765_v1 = vld [vmem:[#allocation2 + $0x308] sm:$0xf]  ;;  %v6584_v2 = vld [vmem:[#allocation2 + $0x314] sm:$0xf0] }
  0x66   :  { %989 = vmatpush.bf16.msra.mxu0 %v4662_v13  ;;  %v4722_v13 = vor.u32 %v6570_v6, %v4719_v7  ;;  %v6582_v6 = vld [vmem:[#allocation2 + $0x30c] sm:$0xf]  ;;  %v4767_v7 = vld [vmem:[#allocation2 + $0x318] sm:$0xf0]  ;;  %v4766_v17 = vor.u32 %v6584_v2, %v4765_v1  ;;  %v6659_v1 = vld [vmem:[#allocation2 + $0x56c] sm:$0xf0] }
  0x67   :  { %1003 = vmatpush.bf16.msra.mxu1 %v4790_v14  ;;  %v4701_v14 = vld [vmem:[#allocation2 + $0x288] sm:$0xf]  ;;  %v6625_v2 = vld [vmem:[#allocation2 + $0x464] sm:$0xf] }
  0x68   :  { %1017 = vmatpush.bf16.msra.mxu2 %v4666_v16  ;;  %v6568_v16 = vld [vmem:[#allocation2 + $0x294] sm:$0xf0] }
  0x69   :  { %1031 = vmatpush.bf16.msra.mxu3 %v4794_v20  ;;  %v6566_v20 = vld [vmem:[#allocation2 + $0x28c] sm:$0xf]  ;;  %v4702_v24 = vor.u32 %v6568_v16, %v4701_v14  ;;  %v6641_v14 = vld [vmem:[#allocation2 + $0x4e4] sm:$0xf]  ;;  %v4999_v16 = vld [vmem:[#allocation2 + $0x4f0] sm:$0xf0] }
  0x6a   :  { %990 = vmatpush.bf16.msra.mxu0 %v4646_v26  ;;  %v4706_v26 = vor.u32 %v6566_v20, %v4703_v21  ;;  %v5127_v20 = vld [vmem:[#allocation2 + $0x5f0] sm:$0xf0]  ;;  %v4770_v21 = vor.u32 %v6582_v6, %v4767_v7 }
  0x6b   :  { %1004 = vmatpush.bf16.msra.mxu1 %v4774_v29  ;;  %v4813_v29 = vld [vmem:[#allocation2 + $0x368] sm:$0xf]  ;;  %v5130_v28 = vor.u32 %v6673_v19, %v5127_v20  ;;  %v5047_v19 = vld [vmem:[#allocation2 + $0x550] sm:$0xf0] }
  0x6c   :  { %1018 = vmatpush.bf16.msra.mxu2 %v4650_v30  ;;  %v4834_v30 = vor.u32 %v6598_v22, %v4831_v23  ;;  %v4814_v37 = vor.u32 %v6596_v31, %v4813_v29  ;;  %v4998_v22 = vor.u32 %v6643_v10, %v4997_v9  ;;  %v6671_v29 = vld [vmem:[#allocation2 + $0x5cc] sm:$0xf0]  ;;  %v4983_v31 = vld [vmem:[#allocation2 + $0x4d0] sm:$0xf0]  ;;  %v4917_v10 = vld [vmem:[#allocation2 + $0x440] sm:$0xf] }
  0x6d   :  { %1032 = vmatpush.bf16.msra.mxu3 %v4778_v34  ;;  %v6594_v34 = vld [vmem:[#allocation2 + $0x36c] sm:$0xf] }
  0x6e   :  { %991 = vmatpush.bf16.msra.mxu0 %v4630_v41  ;;  %v4797_v41 = vld [vmem:[#allocation2 + $0x348] sm:$0xf]  ;;  %v4818_v42 = vor.u32 %v6594_v34, %v4815_v35  ;;  %v5110_v35 = vor.u32 %v6671_v29, %v5109_v27  ;;  %v6651_v27 = vld [vmem:[#allocation2 + $0x52c] sm:$0xf0]  ;;  %v4903_v29 = vld [vmem:[#allocation2 + $0x430] sm:$0xf0] }
  0x6f   :  { %1005 = vmatpush.bf16.msra.mxu1 %v4758_v45  ;;  %v4671_v45 = vld [vmem:[#allocation2 + $0x258] sm:$0xf0] }
  0x70   :  { %1019 = vmatpush.bf16.msra.mxu2 %v4634_v46  ;;  %v6590_v46 = vld [vmem:[#allocation2 + $0x34c] sm:$0xf] }
  0x71   :  { %1033 = vmatpush.bf16.msra.mxu3 %v4762_v49  ;;  %992 = vmatmul.bf16.vlgmr.msra.gmra.mxu0 %v7167_v8  ;;  %v4798_v49 = vor.u32 %v6592_v43, %v4797_v41  ;;  %v4802_v54 = vor.u32 %v6590_v46, %v4799_v47  ;;  %v6667_v41 = vld [vmem:[#allocation2 + $0x5ac] sm:$0xf0]  ;;  %v4967_v43 = vld [vmem:[#allocation2 + $0x4b0] sm:$0xf0] }
  0x72   :  { %1040 = vmatpush.bf16.msrb.mxu0 %v4750_v50  ;;  %1006 = vmatmul.bf16.vlgmr.msra.gmra.mxu1 %v7175_v15  ;;  %v4674_v50 = vor.u32 %v6558_v44, %v4671_v45  ;;  %v6665_v44 = vld [vmem:[#allocation2 + $0x5a4] sm:$0xf]  ;;  %v5095_v45 = vld [vmem:[#allocation2 + $0x5b0] sm:$0xf0]  ;;  %v5094_v47 = vor.u32 %v6667_v41, %v5093_v39 }
  0x73   :  { %1054 = vmatpush.bf16.msrb.mxu1 %v4878_v51  ;;  %1020 = vmatmul.bf16.vlgmr.msra.gmra.mxu2 %v7167_v8  ;;  %v4653_v51 = vld [vmem:[#allocation2 + $0x228] sm:$0xf]  ;;  %v6613_v39 = vld [vmem:[#allocation2 + $0x404] sm:$0xf]  ;;  %v4887_v41 = vld [vmem:[#allocation2 + $0x410] sm:$0xf0] }
  0x74   :  { %1068 = vmatpush.bf16.msrb.mxu2 %v4754_v52  ;;  %1034 = vmatmul.bf16.vlgmr.msra.gmra.mxu3 %v7175_v15  ;;  %v6556_v52 = vld [vmem:[#allocation2 + $0x234] sm:$0xf0] }
  0x75   :  { %1082 = vmatpush.bf16.msrb.mxu3 %v4882_v56  ;;  %v6554_v56 = vld [vmem:[#allocation2 + $0x22c] sm:$0xf]  ;;  %v4654_v60 = vor.u32 %v6556_v52, %v4653_v51  ;;  %v5077_v51 = vld [vmem:[#allocation2 + $0x580] sm:$0xf]  ;;  %v5098_v52 = vor.u32 %v6665_v44, %v5095_v45  ;;  %v5005_v44 = vld [vmem:[#allocation2 + $0x4e8] sm:$0xf] }
  0x76   :  { %1041 = vmatpush.bf16.msrb.mxu0 %v4734_v62  ;;  %v6552_v62 = vld [vmem:[#allocation2 + $0x214] sm:$0xf0] }
  0x77   :  { %1055 = vmatpush.bf16.msrb.mxu1 %v4862_v63  ;;  %v4782_v63 = vor.u32 %v6588_v55, %v4781_v53  ;;  %v6663_v53 = vld [vmem:[#allocation2 + $0x58c] sm:$0xf0]  ;;  %v4951_v55 = vld [vmem:[#allocation2 + $0x490] sm:$0xf0]  ;;  %v6644_v45 = vld [vmem:[#allocation2 + $0x4f4] sm:$0xf0] }
  0x78   :  { %1069 = vmatpush.bf16.msrb.mxu2 %v4738_v0  ;;  %v4658_v0 = vor.u32 %v6554_v56, %v4655_v57  ;;  %v6661_v56 = vld [vmem:[#allocation2 + $0x584] sm:$0xf]  ;;  %v5079_v57 = vld [vmem:[#allocation2 + $0x590] sm:$0xf0] }
  0x79   :  { %1083 = vmatpush.bf16.msrb.mxu3 %v4866_v4  ;;  %v4786_v4 = vor.u32 %v6586_v58, %v4783_v59  ;;  %v5078_v59 = vor.u32 %v6663_v53, %v5077_v51  ;;  %v6674_v53 = vld [vmem:[#allocation2 + $0x5ec] sm:$0xf] }
  0x7a   :  { %1042 = vmatpush.bf16.msrb.mxu0 %v4718_v11  ;;  %v5125_v11 = vld [vmem:[#allocation2 + $0x5e0] sm:$0xf] }
  0x7b   :  { %1056 = vmatpush.bf16.msrb.mxu1 %v4846_v12  ;;  %v4638_v12 = vor.u32 %v6552_v62, %v4637_v61  ;;  %v4933_v61 = vld [vmem:[#allocation2 + $0x460] sm:$0xf]  ;;  %v6627_v62 = vld [vmem:[#allocation2 + $0x46c] sm:$0xf0] }
  0x7c   :  { %1070 = vmatpush.bf16.msrb.mxu2 %v4722_v13  ;;  %v6675_v13 = vld [vmem:[#allocation2 + $0x5ec] sm:$0xf0]  ;;  %v4934_v6 = vor.u32 %v6627_v62, %v4933_v61  ;;  %v5117_v61 = vld [vmem:[#allocation2 + $0x5c8] sm:$0xf] }
  0x7d   :  { %1084 = vmatpush.bf16.msrb.mxu3 %v4850_v18  ;;  %v4642_v18 = vor.u32 %v6550_v3, %v4639_v5  ;;  %v5126_v23 = vor.u32 %v6675_v13, %v5125_v11  ;;  %v4935_v3 = vld [vmem:[#allocation2 + $0x470] sm:$0xf0]  ;;  %v6623_v11 = vld [vmem:[#allocation2 + $0x44c] sm:$0xf0] }
  0x7e   :  { %1043 = vmatpush.bf16.msrb.mxu0 %v4702_v24  ;;  %v5002_v24 = vor.u32 %v6641_v14, %v4999_v16  ;;  %v5063_v5 = vld [vmem:[#allocation2 + $0x570] sm:$0xf0]  ;;  %v4938_v9 = vor.u32 %v6625_v2, %v4935_v3  ;;  %v6655_v14 = vld [vmem:[#allocation2 + $0x54c] sm:$0xf0]  ;;  %v6621_v16 = vld [vmem:[#allocation2 + $0x444] sm:$0xf]  ;;  %v4918_v20 = vor.u32 %v6623_v11, %v4917_v10 }
  0x7f   :  { %1057 = vmatpush.bf16.msrb.mxu1 %v4830_v25  ;;  %v4981_v25 = vld [vmem:[#allocation2 + $0x4c0] sm:$0xf]  ;;  %v6670_v2 = vld [vmem:[#allocation2 + $0x5cc] sm:$0xf]  ;;  %v5119_v3 = vld [vmem:[#allocation2 + $0x5d8] sm:$0xf0] }
  0x80   :  { %1071 = vmatpush.bf16.msrb.mxu2 %v4706_v26  ;;  %v6639_v26 = vld [vmem:[#allocation2 + $0x4cc] sm:$0xf0]  ;;  %v5101_v10 = vld [vmem:[#allocation2 + $0x5a8] sm:$0xf]  ;;  %v5122_v11 = vor.u32 %v6670_v2, %v5119_v3 }
  0x81   :  { %1085 = vmatpush.bf16.msrb.mxu3 %v4834_v30  ;;  %v6637_v30 = vld [vmem:[#allocation2 + $0x4c4] sm:$0xf]  ;;  %v4982_v34 = vor.u32 %v6639_v26, %v4981_v25  ;;  %v5029_v25 = vld [vmem:[#allocation2 + $0x520] sm:$0xf]  ;;  %v5037_v2 = vld [vmem:[#allocation2 + $0x528] sm:$0xf] }
  0x82   :  { %1044 = vmatpush.bf16.msrb.mxu0 %v4686_v36  ;;  %v4986_v36 = vor.u32 %v6637_v30, %v4983_v31  ;;  %v6649_v30 = vld [vmem:[#allocation2 + $0x524] sm:$0xf]  ;;  %v5031_v31 = vld [vmem:[#allocation2 + $0x530] sm:$0xf0] }
  0x83   :  { %1058 = vmatpush.bf16.msrb.mxu1 %v4814_v37  ;;  %v4965_v37 = vld [vmem:[#allocation2 + $0x4a0] sm:$0xf] }
  0x84   :  { %1072 = vmatpush.bf16.msrb.mxu2 %v4690_v38  ;;  %v6635_v38 = vld [vmem:[#allocation2 + $0x4ac] sm:$0xf0] }
  0x85   :  { %1086 = vmatpush.bf16.msrb.mxu3 %v4818_v42  ;;  %v6633_v42 = vld [vmem:[#allocation2 + $0x4a4] sm:$0xf]  ;;  %v4966_v46 = vor.u32 %v6635_v38, %v4965_v37  ;;  %v5013_v37 = vld [vmem:[#allocation2 + $0x500] sm:$0xf]  ;;  %v6647_v38 = vld [vmem:[#allocation2 + $0x50c] sm:$0xf0] }
  0x86   :  { %1045 = vmatpush.bf16.msrb.mxu0 %v4670_v48  ;;  %v4970_v48 = vor.u32 %v6633_v42, %v4967_v43  ;;  %v6645_v42 = vld [vmem:[#allocation2 + $0x504] sm:$0xf]  ;;  %v5015_v43 = vld [vmem:[#allocation2 + $0x510] sm:$0xf0]  ;;  %v5014_v51 = vor.u32 %v6647_v38, %v5013_v37 }
  0x87   :  { %1059 = vmatpush.bf16.msrb.mxu1 %v4798_v49  ;;  %v4949_v49 = vld [vmem:[#allocation2 + $0x480] sm:$0xf] }
  0x88   :  { %1073 = vmatpush.bf16.msrb.mxu2 %v4674_v50  ;;  %v6631_v50 = vld [vmem:[#allocation2 + $0x48c] sm:$0xf0] }
  0x89   :  { %1087 = vmatpush.bf16.msrb.mxu3 %v4802_v54  ;;  %v6629_v54 = vld [vmem:[#allocation2 + $0x484] sm:$0xf]  ;;  %v4950_v58 = vor.u32 %v6631_v50, %v4949_v49  ;;  %v6642_v49 = vld [vmem:[#allocation2 + $0x4ec] sm:$0xf]  ;;  %v5007_v50 = vld [vmem:[#allocation2 + $0x4f8] sm:$0xf0] }
  0x8a   :  { %1046 = vmatpush.bf16.msrb.mxu0 %v4654_v60  ;;  %v4954_v60 = vor.u32 %v6629_v54, %v4951_v55  ;;  %v5135_v54 = vld [vmem:[#allocation2 + $0x5f8] sm:$0xf0]  ;;  %v5018_v55 = vor.u32 %v6645_v42, %v5015_v43  ;;  %v6658_v42 = vld [vmem:[#allocation2 + $0x56c] sm:$0xf] }
  0x8b   :  { %1060 = vmatpush.bf16.msrb.mxu1 %v4782_v63  ;;  %v5061_v63 = vld [vmem:[#allocation2 + $0x560] sm:$0xf]  ;;  %v5138_v62 = vor.u32 %v6674_v53, %v5135_v54  ;;  %v5071_v43 = vld [vmem:[#allocation2 + $0x578] sm:$0xf0]  ;;  %v6656_v53 = vld [vmem:[#allocation2 + $0x554] sm:$0xf0] }
  0x8c   :  { %1074 = vmatpush.bf16.msrb.mxu2 %v4658_v0  ;;  %v5082_v0 = vor.u32 %v6661_v56, %v5079_v57  ;;  %v5062_v7 = vor.u32 %v6659_v1, %v5061_v63  ;;  %v5006_v56 = vor.u32 %v6644_v45, %v5005_v44  ;;  %v6672_v63 = vld [vmem:[#allocation2 + $0x5d4] sm:$0xf0]  ;;  %v4991_v1 = vld [vmem:[#allocation2 + $0x4d8] sm:$0xf0]  ;;  %v6622_v54 = vld [vmem:[#allocation2 + $0x44c] sm:$0xf] }
  0x8d   :  { %1088 = vmatpush.bf16.msrb.mxu3 %v4786_v4  ;;  %v6657_v4 = vld [vmem:[#allocation2 + $0x564] sm:$0xf] }
  0x8e   :  { %1047 = vmatpush.bf16.msrb.mxu0 %v4638_v12  ;;  %v5045_v12 = vld [vmem:[#allocation2 + $0x540] sm:$0xf]  ;;  %v5066_v13 = vor.u32 %v6657_v4, %v5063_v5  ;;  %v5118_v5 = vor.u32 %v6672_v63, %v5117_v61 }
  0x8f   :  { %1061 = vmatpush.bf16.msrb.mxu1 %v4766_v17  ;;  %v4919_v17 = vld [vmem:[#allocation2 + $0x450] sm:$0xf0] }
  0x90   :  { %1075 = vmatpush.bf16.msrb.mxu2 %v4642_v18  ;;  %v6653_v18 = vld [vmem:[#allocation2 + $0x544] sm:$0xf] }
  0x91   :  { %1089 = vmatpush.bf16.msrb.mxu3 %v4770_v21  ;;  %1048 = vmatmul.bf16.vlgmr.msrb.gmra.mxu0 %v7167_v8  ;;  %v5046_v21 = vor.u32 %v6655_v14, %v5045_v12  ;;  %v5050_v26 = vor.u32 %v6653_v18, %v5047_v19  ;;  %v6668_v12 = vld [vmem:[#allocation2 + $0x5b4] sm:$0xf0]  ;;  %v4975_v14 = vld [vmem:[#allocation2 + $0x4b8] sm:$0xf0]  ;;  %v4957_v19 = vld [vmem:[#allocation2 + $0x488] sm:$0xf] }
  0x92   :  { %1497 = vmatpush.bf16.msra.mxu0 %v4998_v22  ;;  %1062 = vmatmul.bf16.vlgmr.msrb.gmra.mxu1 %v7175_v15  ;;  %v4922_v22 = vor.u32 %v6621_v16, %v4919_v17  ;;  %v6666_v16 = vld [vmem:[#allocation2 + $0x5ac] sm:$0xf]  ;;  %v5103_v17 = vld [vmem:[#allocation2 + $0x5b8] sm:$0xf0] }
  0x93   :  { %1511 = vmatpush.bf16.msra.mxu1 %v5126_v23  ;;  %1076 = vmatmul.bf16.vlgmr.msrb.gmra.mxu2 %v7167_v8  ;;  %v4901_v23 = vld [vmem:[#allocation2 + $0x420] sm:$0xf] }
  0x94   :  { %1525 = vmatpush.bf16.msra.mxu2 %v5002_v24  ;;  %1090 = vmatmul.bf16.vlgmr.msrb.gmra.mxu3 %v7175_v15  ;;  %v6619_v24 = vld [vmem:[#allocation2 + $0x42c] sm:$0xf0] }
  0x95   :  { %1539 = vmatpush.bf16.msra.mxu3 %v5130_v28  ;;  %v6617_v28 = vld [vmem:[#allocation2 + $0x424] sm:$0xf]  ;;  %v4902_v32 = vor.u32 %v6619_v24, %v4901_v23  ;;  %v5085_v23 = vld [vmem:[#allocation2 + $0x588] sm:$0xf]  ;;  %v6664_v24 = vld [vmem:[#allocation2 + $0x594] sm:$0xf0] }
  0x96   :  { %1498 = vmatpush.bf16.msra.mxu0 %v4982_v34  ;;  %v6615_v34 = vld [vmem:[#allocation2 + $0x40c] sm:$0xf0] }
  0x97   :  { %1512 = vmatpush.bf16.msra.mxu1 %v5110_v35  ;;  %v5030_v35 = vor.u32 %v6651_v27, %v5029_v25  ;;  %v5106_v25 = vor.u32 %v6666_v16, %v5103_v17  ;;  %v4959_v27 = vld [vmem:[#allocation2 + $0x498] sm:$0xf0] }
  0x98   :  { %1526 = vmatpush.bf16.msra.mxu2 %v4986_v36  ;;  %v4906_v36 = vor.u32 %v6617_v28, %v4903_v29  ;;  %v7200_v28 = vld [vmem:[%s7525_s2] sm:$0xf]  ;;  %v6662_v29 = vld [vmem:[#allocation2 + $0x58c] sm:$0xf] }
  0x99   :  { %1540 = vmatpush.bf16.msra.mxu3 %v5114_v40  ;;  %v5034_v40 = vor.u32 %v6649_v30, %v5031_v31  ;;  %v5087_v30 = vld [vmem:[#allocation2 + $0x598] sm:$0xf0]  ;;  %v7203_v37 = vperm.slane %v7200_v28, 0 }
  0x9a   :  { %1499 = vmatpush.bf16.msra.mxu0 %v4966_v46  ;;  %v5133_v46 = vld [vmem:[#allocation2 + $0x5e8] sm:$0xf]  ;;  %v5090_v38 = vor.u32 %v6662_v29, %v5087_v30  ;;  %v6707_v29 = vld [vmem:[#allocation2 + $0x6ec] sm:$0xf0]  ;;  %v5381_v30 = vld [vmem:[#allocation2 + $0x7e0] sm:$0xf] }
  0x9b   :  { %1513 = vmatpush.bf16.msra.mxu1 %v5094_v47  ;;  %v4886_v47 = vor.u32 %v6615_v34, %v4885_v33  ;;  %v5086_v33 = vor.u32 %v6664_v24, %v5085_v23  ;;  %v4895_v24 = vld [vmem:[#allocation2 + $0x418] sm:$0xf0] }
  0x9c   :  { %1527 = vmatpush.bf16.msra.mxu2 %v4970_v48  ;;  %v6676_v48 = vld [vmem:[#allocation2 + $0x5f4] sm:$0xf0] }
  0x9d   :  { %1541 = vmatpush.bf16.msra.mxu3 %v5098_v52  ;;  %v4890_v52 = vor.u32 %v6613_v39, %v4887_v41  ;;  %v5134_v57 = vor.u32 %v6676_v48, %v5133_v46  ;;  %v6660_v39 = vld [vmem:[#allocation2 + $0x574] sm:$0xf0]  ;;  %v4943_v41 = vld [vmem:[#allocation2 + $0x478] sm:$0xf0]  ;;  %v4925_v48 = vld [vmem:[#allocation2 + $0x448] sm:$0xf] }
  0x9e   :  { %1500 = vmatpush.bf16.msra.mxu0 %v4950_v58  ;;  %v5010_v58 = vor.u32 %v6642_v49, %v5007_v50  ;;  %v6624_v49 = vld [vmem:[#allocation2 + $0x454] sm:$0xf0]  ;;  %v5053_v50 = vld [vmem:[#allocation2 + $0x548] sm:$0xf] }
  0x9f   :  { %1514 = vmatpush.bf16.msra.mxu1 %v5078_v59  ;;  %v4989_v59 = vld [vmem:[#allocation2 + $0x4c8] sm:$0xf] }
  0xa0   :  { %1528 = vmatpush.bf16.msra.mxu2 %v4954_v60  ;;  %v6640_v60 = vld [vmem:[#allocation2 + $0x4d4] sm:$0xf0] }
  0xa1   :  { %1542 = vmatpush.bf16.msra.mxu3 %v5082_v0  ;;  %v6638_v0 = vld [vmem:[#allocation2 + $0x4cc] sm:$0xf]  ;;  %v4990_v4 = vor.u32 %v6640_v60, %v4989_v59  ;;  %v7207_v59 = vperm.slane %v7200_v28, 1  ;;  %v4926_v60 = vor.u32 %v6624_v49, %v4925_v48  ;;  %v6735_v48 = vld [vmem:[#allocation2 + $0x7cc] sm:$0xf0] }
  0xa2   :  { %1501 = vmatpush.bf16.msra.mxu0 %v4934_v6  ;;  %v4994_v6 = vor.u32 %v6638_v0, %v4991_v1  ;;  %v4909_v0 = vld [vmem:[#allocation2 + $0x428] sm:$0xf]  ;;  %v6620_v1 = vld [vmem:[#allocation2 + $0x434] sm:$0xf0]  ;;  %v6701_v49 = vld [vmem:[#allocation2 + $0x6c4] sm:$0xf] }
  0xa3   :  { %1515 = vmatpush.bf16.msra.mxu1 %v5062_v7  ;;  %v4973_v7 = vld [vmem:[#allocation2 + $0x4a8] sm:$0xf] }
  0xa4   :  { %1529 = vmatpush.bf16.msra.mxu2 %v4938_v9  ;;  %v6636_v9 = vld [vmem:[#allocation2 + $0x4b4] sm:$0xf0] }
  0xa5   :  { %1543 = vmatpush.bf16.msra.mxu3 %v5066_v13  ;;  %v6634_v13 = vld [vmem:[#allocation2 + $0x4ac] sm:$0xf]  ;;  %v4974_v18 = vor.u32 %v6636_v9, %v4973_v7 }
  0xa6   :  { %1502 = vmatpush.bf16.msra.mxu0 %v4918_v20  ;;  %v5102_v20 = vor.u32 %v6668_v12, %v5101_v10  ;;  %v6650_v9 = vld [vmem:[#allocation2 + $0x52c] sm:$0xf]  ;;  %v5039_v10 = vld [vmem:[#allocation2 + $0x538] sm:$0xf0]  ;;  %v4910_v12 = vor.u32 %v6620_v1, %v4909_v0  ;;  %v6731_v0 = vld [vmem:[#allocation2 + $0x7ac] sm:$0xf0] }
  0xa7   :  { %1516 = vmatpush.bf16.msra.mxu1 %v5046_v21  ;;  %v4978_v21 = vor.u32 %v6634_v13, %v4975_v14  ;;  %v4893_v13 = vld [vmem:[#allocation2 + $0x408] sm:$0xf]  ;;  %v6616_v14 = vld [vmem:[#allocation2 + $0x414] sm:$0xf0]  ;;  %v5042_v23 = vor.u32 %v6650_v9, %v5039_v10  ;;  %v6697_v1 = vld [vmem:[#allocation2 + $0x6a4] sm:$0xf] }
  0xa8   :  { %1530 = vmatpush.bf16.msra.mxu2 %v4922_v22  ;;  %v6632_v22 = vld [vmem:[#allocation2 + $0x494] sm:$0xf0]  ;;  %v5205_v10 = vld [vmem:[#allocation2 + $0x680] sm:$0xf] }
  0xa9   :  { %1544 = vmatpush.bf16.msra.mxu3 %v5050_v26  ;;  %v6630_v26 = vld [vmem:[#allocation2 + $0x48c] sm:$0xf]  ;;  %v4958_v31 = vor.u32 %v6632_v22, %v4957_v19  ;;  %v5021_v19 = vld [vmem:[#allocation2 + $0x508] sm:$0xf] }
  0xaa   :  { %1503 = vmatpush.bf16.msra.mxu0 %v4902_v32  ;;  %v4941_v32 = vld [vmem:[#allocation2 + $0x468] sm:$0xf]  ;;  %v4962_v34 = vor.u32 %v6630_v26, %v4959_v27  ;;  %v5023_v26 = vld [vmem:[#allocation2 + $0x518] sm:$0xf0]  ;;  %v5253_v27 = vld [vmem:[#allocation2 + $0x6e0] sm:$0xf] }
  0xab   :  { %1517 = vmatpush.bf16.msra.mxu1 %v5030_v35  ;;  %v6628_v35 = vld [vmem:[#allocation2 + $0x474] sm:$0xf0] }
  0xac   :  { %1531 = vmatpush.bf16.msra.mxu2 %v4906_v36  ;;  %v5069_v36 = vld [vmem:[#allocation2 + $0x568] sm:$0xf]  ;;  %v4942_v44 = vor.u32 %v6628_v35, %v4941_v32  ;;  %v6739_v32 = vld [vmem:[#allocation2 + $0x7ec] sm:$0xf0] }
  0xad   :  { %1545 = vmatpush.bf16.msra.mxu3 %v5034_v40  ;;  %v6626_v40 = vld [vmem:[#allocation2 + $0x46c] sm:$0xf]  ;;  %v5070_v46 = vor.u32 %v6660_v39, %v5069_v36  ;;  %v5383_v39 = vld [vmem:[#allocation2 + $0x7f0] sm:$0xf0] }
  0xae   :  { %1504 = vmatpush.bf16.msra.mxu0 %v4886_v47  ;;  %v488_v45 = vpop.f32.mrf.mxu0  ;;  %v4946_v47 = vor.u32 %v6626_v40, %v4943_v41  ;;  %v5254_v41 = vor.u32 %v6707_v29, %v5253_v27  ;;  %v5189_v29 = vld [vmem:[#allocation2 + $0x660] sm:$0xf] }
  0xaf   :  { %1518 = vmatpush.bf16.msra.mxu1 %v5014_v51  ;;  %v489_v51 = vadd.f32 %v488_v45, %v7203_v37  ;;  %v6703_v45 = vld [vmem:[#allocation2 + $0x6cc] sm:$0xf0] }
  0xb0   :  { %1532 = vmatpush.bf16.msra.mxu2 %v4890_v52  ;;  %v5074_v52 = vor.u32 %v6658_v42, %v5071_v43  ;;  %v5382_v42 = vor.u32 %v6739_v32, %v5381_v30  ;;  %v6691_v30 = vld [vmem:[#allocation2 + $0x66c] sm:$0xf0] }
  0xb1   :  { %1546 = vmatpush.bf16.msra.mxu3 %v5018_v55  ;;  %1505 = vmatmul.bf16.vlgmr.msra.gmra.mxu0 %v7167_v8  ;;  %v4927_v55 = vld [vmem:[#allocation2 + $0x458] sm:$0xf0] }
  0xb2   :  { %1553 = vmatpush.bf16.msrb.mxu0 %v5006_v56  ;;  %1519 = vmatmul.bf16.vlgmr.msra.gmra.mxu1 %v7175_v15  ;;  %v6654_v56 = vld [vmem:[#allocation2 + $0x54c] sm:$0xf]  ;;  %v4930_v63 = vor.u32 %v6622_v54, %v4927_v55 }
  0xb3   :  { %1567 = vmatpush.bf16.msrb.mxu1 %v5134_v57  ;;  %1533 = vmatmul.bf16.vlgmr.msra.gmra.mxu2 %v7167_v8  ;;  %v5055_v57 = vld [vmem:[#allocation2 + $0x558] sm:$0xf0] }
  0xb4   :  { %1581 = vmatpush.bf16.msrb.mxu2 %v5010_v58  ;;  %1547 = vmatmul.bf16.vlgmr.msra.gmra.mxu3 %v7175_v15  ;;  %v502_v58 = vpop.f32.mrf.mxu1  ;;  %v5058_v3 = vor.u32 %v6654_v56, %v5055_v57  ;;  %v5221_v57 = vld [vmem:[#allocation2 + $0x6a0] sm:$0xf] }
  0xb5   :  { %1595 = vmatpush.bf16.msrb.mxu3 %v5138_v62  ;;  %v7209_v61 = vadd.f32 %v502_v58, %v489_v51  ;;  %v5054_v62 = vor.u32 %v6656_v53, %v5053_v50  ;;  %v5239_v50 = vld [vmem:[#allocation2 + $0x6d0] sm:$0xf0]  ;;  %v6733_v51 = vld [vmem:[#allocation2 + $0x7c4] sm:$0xf]  ;;  %v6699_v58 = vld [vmem:[#allocation2 + $0x6ac] sm:$0xf0] }
  0xb6   :  { %1554 = vmatpush.bf16.msrb.mxu0 %v4990_v4  ;;  %v6652_v4 = vld [vmem:[#allocation2 + $0x534] sm:$0xf0]  ;;  %v516_v7 = vpop.f32.mrf.mxu2  ;;  %v7214_v53 = vpop.f32.mrf.mxu0  ;;  %v5242_v56 = vor.u32 %v6701_v49, %v5239_v50  ;;  %v6719_v49 = vld [vmem:[#allocation2 + $0x74c] sm:$0xf0]  ;;  %v6685_v50 = vld [vmem:[#allocation2 + $0x644] sm:$0xf] }
  0xb7   :  { %1568 = vmatpush.bf16.msrb.mxu1 %v5118_v5  ;;  %v6618_v5 = vld [vmem:[#allocation2 + $0x42c] sm:$0xf]  ;;  %v530_v16 = vpop.f32.mrf.mxu3  ;;  %v5038_v17 = vor.u32 %v6652_v4, %v5037_v2  ;;  %v5223_v2 = vld [vmem:[#allocation2 + $0x6b0] sm:$0xf0] }
  0xb8   :  { %1582 = vmatpush.bf16.msrb.mxu2 %v4994_v6  ;;  %v4911_v6 = vld [vmem:[#allocation2 + $0x438] sm:$0xf0]  ;;  %v5351_v4 = vld [vmem:[#allocation2 + $0x7b0] sm:$0xf0]  ;;  %v5226_v9 = vor.u32 %v6697_v1, %v5223_v2  ;;  %v5285_v1 = vld [vmem:[#allocation2 + $0x720] sm:$0xf] }
  0xb9   :  { %1596 = vmatpush.bf16.msrb.mxu3 %v5122_v11  ;;  %v517_v11 = vadd.f32 %v516_v7, %v7207_v59 }
  0xba   :  { %1555 = vmatpush.bf16.msrb.mxu0 %v4974_v18  ;;  %v4914_v18 = vor.u32 %v6618_v5, %v4911_v6  ;;  %v5222_v5 = vor.u32 %v6699_v58, %v5221_v57  ;;  %v7223_v6 = vperm.slane %v7200_v28, 2 }
  0xbb   :  { %1569 = vmatpush.bf16.msrb.mxu1 %v5102_v20  ;;  %v6648_v20 = vld [vmem:[#allocation2 + $0x514] sm:$0xf0]  ;;  %v7212_v22 = vadd.f32 %v530_v16, %v517_v11  ;;  %v6695_v11 = vld [vmem:[#allocation2 + $0x68c] sm:$0xf0]  ;;  %v6693_v16 = vld [vmem:[#allocation2 + $0x684] sm:$0xf] }
  0xbc   :  { %1583 = vmatpush.bf16.msrb.mxu2 %v4978_v21  ;;  %v6614_v21 = vld [vmem:[#allocation2 + $0x40c] sm:$0xf]  ;;  %v5022_v35 = vor.u32 %v6648_v20, %v5021_v19  ;;  %v6725_v19 = vld [vmem:[#allocation2 + $0x784] sm:$0xf]  ;;  %v5335_v20 = vld [vmem:[#allocation2 + $0x790] sm:$0xf0] }
  0xbd   :  { %1597 = vmatpush.bf16.msrb.mxu3 %v5106_v25  ;;  %v6646_v25 = vld [vmem:[#allocation2 + $0x50c] sm:$0xf]  ;;  %v4898_v36 = vor.u32 %v6614_v21, %v4895_v24 }
  0xbe   :  { %1556 = vmatpush.bf16.msrb.mxu0 %v4958_v31  ;;  %v4894_v31 = vor.u32 %v6616_v14, %v4893_v13  ;;  %v5026_v40 = vor.u32 %v6646_v25, %v5023_v26  ;;  %v6727_v14 = vld [vmem:[#allocation2 + $0x78c] sm:$0xf0] }
  0xbf   :  { %1570 = vmatpush.bf16.msrb.mxu1 %v5086_v33  ;;  %v6705_v33 = vld [vmem:[#allocation2 + $0x6e4] sm:$0xf]  ;;  %v7227_v24 = vpop.f32.mrf.mxu3 }
  0xc0   :  { %1584 = vmatpush.bf16.msrb.mxu2 %v4962_v34  ;;  %v5255_v34 = vld [vmem:[#allocation2 + $0x6f0] sm:$0xf0] }
  0xc1   :  { %1598 = vmatpush.bf16.msrb.mxu3 %v5090_v38  ;;  %v6737_v38 = vld [vmem:[#allocation2 + $0x7e4] sm:$0xf]  ;;  %v5258_v43 = vor.u32 %v6705_v33, %v5255_v34  ;;  %v5338_v33 = vor.u32 %v6725_v19, %v5335_v20  ;;  %v6723_v34 = vld [vmem:[#allocation2 + $0x76c] sm:$0xf0] }
  0xc2   :  { %1557 = vmatpush.bf16.msrb.mxu0 %v4942_v44  ;;  %v5237_v44 = vld [vmem:[#allocation2 + $0x6c0] sm:$0xf]  ;;  %v6711_v19 = vld [vmem:[#allocation2 + $0x70c] sm:$0xf0]  ;;  %v6677_v20 = vld [vmem:[#allocation2 + $0x604] sm:$0xf] }
  0xc3   :  { %1571 = vmatpush.bf16.msrb.mxu1 %v5070_v46  ;;  %v5365_v46 = vld [vmem:[#allocation2 + $0x7c0] sm:$0xf]  ;;  %v5238_v54 = vor.u32 %v6703_v45, %v5237_v44 }
  0xc4   :  { %1585 = vmatpush.bf16.msrb.mxu2 %v4946_v47  ;;  %v5386_v47 = vor.u32 %v6737_v38, %v5383_v39  ;;  %v5366_v55 = vor.u32 %v6735_v48, %v5365_v46  ;;  %v6721_v39 = vld [vmem:[#allocation2 + $0x764] sm:$0xf]  ;;  %v5173_v45 = vld [vmem:[#allocation2 + $0x640] sm:$0xf]  ;;  %v6687_v46 = vld [vmem:[#allocation2 + $0x64c] sm:$0xf0] }
  0xc5   :  { %1599 = vmatpush.bf16.msrb.mxu3 %v5074_v52  ;;  %v5367_v52 = vld [vmem:[#allocation2 + $0x7d0] sm:$0xf0] }
  0xc6   :  { %1558 = vmatpush.bf16.msrb.mxu0 %v4926_v60  ;;  %v5349_v60 = vld [vmem:[#allocation2 + $0x7a0] sm:$0xf] }
  0xc7   :  { %1572 = vmatpush.bf16.msrb.mxu1 %v5054_v62  ;;  %v7216_v62 = vpop.f32.mrf.mxu1  ;;  %v5350_v7 = vor.u32 %v6731_v0, %v5349_v60  ;;  %v6683_v0 = vld [vmem:[#allocation2 + $0x62c] sm:$0xf0] }
  0xc8   :  { %1586 = vmatpush.bf16.msrb.mxu2 %v4930_v63  ;;  %v5370_v63 = vor.u32 %v6733_v51, %v5367_v52  ;;  %v5175_v51 = vld [vmem:[#allocation2 + $0x650] sm:$0xf0] }
  0xc9   :  { %1600 = vmatpush.bf16.msrb.mxu3 %v5058_v3  ;;  %v6729_v3 = vld [vmem:[#allocation2 + $0x7a4] sm:$0xf]  ;;  %v5178_v60 = vor.u32 %v6685_v50, %v5175_v51  ;;  %v6736_v51 = vld [vmem:[#allocation2 + $0x7d4] sm:$0xf0] }
  0xca   :  { %1559 = vmatpush.bf16.msrb.mxu0 %v4910_v12  ;;  %v5333_v12 = vld [vmem:[#allocation2 + $0x780] sm:$0xf]  ;;  %v5354_v13 = vor.u32 %v6729_v3, %v5351_v4  ;;  %v6715_v4 = vld [vmem:[#allocation2 + $0x72c] sm:$0xf0] }
  0xcb   :  { %1573 = vmatpush.bf16.msrb.mxu1 %v5038_v17  ;;  %v5207_v17 = vld [vmem:[#allocation2 + $0x690] sm:$0xf0]  ;;  %v5334_v26 = vor.u32 %v6727_v14, %v5333_v12  ;;  %v5141_v12 = vld [vmem:[#allocation2 + $0x600] sm:$0xf]  ;;  %v5286_v14 = vor.u32 %v6715_v4, %v5285_v1  ;;  %v5357_v1 = vld [vmem:[#allocation2 + $0x7a8] sm:$0xf] }
  0xcc   :  { %1587 = vmatpush.bf16.msrb.mxu2 %v4914_v18  ;;  %v7225_v18 = vpop.f32.mrf.mxu2  ;;  %v5210_v27 = vor.u32 %v6693_v16, %v5207_v17  ;;  %v5269_v17 = vld [vmem:[#allocation2 + $0x700] sm:$0xf]  ;;  %v6732_v4 = vld [vmem:[#allocation2 + $0x7b4] sm:$0xf0] }
  0xcd   :  { %1601 = vmatpush.bf16.msrb.mxu3 %v5042_v23  ;;  %v5206_v23 = vor.u32 %v6695_v11, %v5205_v10  ;;  %v5287_v10 = vld [vmem:[#allocation2 + $0x730] sm:$0xf0] }
  0xce   :  { %1560 = vmatpush.bf16.msrb.mxu0 %v4894_v31  ;;  %v544_v21 = vpop.f32.mrf.mxu0  ;;  %v5317_v31 = vld [vmem:[#allocation2 + $0x760] sm:$0xf] }
  0xcf   :  { %1574 = vmatpush.bf16.msrb.mxu1 %v5022_v35  ;;  %v545_v25 = vadd.f32 %v544_v21, %v7223_v6  ;;  %v558_v32 = vpop.f32.mrf.mxu1  ;;  %v6689_v35 = vld [vmem:[#allocation2 + $0x664] sm:$0xf] }
  0xd0   :  { %1588 = vmatpush.bf16.msrb.mxu2 %v4898_v36  ;;  %v5191_v36 = vld [vmem:[#allocation2 + $0x670] sm:$0xf0] }
  0xd1   :  { %1602 = vmatpush.bf16.msrb.mxu3 %v5026_v40  ;;  %1561 = vmatmul.bf16.vlgmr.msrb.gmra.mxu0 %v7167_v8  ;;  %v7230_v38 = vadd.f32 %v558_v32, %v545_v25  ;;  %v5319_v40 = vld [vmem:[#allocation2 + $0x770] sm:$0xf0]  ;;  %v5194_v44 = vor.u32 %v6689_v35, %v5191_v36  ;;  %v6709_v25 = vld [vmem:[#allocation2 + $0x704] sm:$0xf]  ;;  %v6740_v32 = vld [vmem:[#allocation2 + $0x7f4] sm:$0xf0]  ;;  %v5270_v35 = vor.u32 %v6711_v19, %v5269_v17 }
  0xd2   :  { %2010 = vmatpush.bf16.msra.mxu0 %v5254_v41  ;;  %1575 = vmatmul.bf16.vlgmr.msrb.gmra.mxu1 %v7175_v15  ;;  %v7233_v41 = vperm.slane %v7200_v28, 3  ;;  %v5322_v48 = vor.u32 %v6721_v39, %v5319_v40  ;;  %v6738_v39 = vld [vmem:[#allocation2 + $0x7ec] sm:$0xf]  ;;  %v5391_v40 = vld [vmem:[#allocation2 + $0x7f8] sm:$0xf0] }
  0xd3   :  { %2024 = vmatpush.bf16.msra.mxu1 %v5382_v42  ;;  %1589 = vmatmul.bf16.vlgmr.msrb.gmra.mxu2 %v7167_v8  ;;  %v5190_v42 = vor.u32 %v6691_v30, %v5189_v29  ;;  %v6708_v29 = vld [vmem:[#allocation2 + $0x6f4] sm:$0xf0]  ;;  %v5389_v30 = vld [vmem:[#allocation2 + $0x7e8] sm:$0xf]  ;;  %v5394_v50 = vor.u32 %v6738_v39, %v5391_v40 }
  0xd4   :  { %2038 = vmatpush.bf16.msra.mxu2 %v5258_v43  ;;  %1603 = vmatmul.bf16.vlgmr.msrb.gmra.mxu3 %v7175_v15  ;;  %v5318_v43 = vor.u32 %v6723_v34, %v5317_v31  ;;  %v5263_v34 = vld [vmem:[#allocation2 + $0x6f8] sm:$0xf0]  ;;  %v5213_v17 = vld [vmem:[#allocation2 + $0x688] sm:$0xf]  ;;  %v6696_v19 = vld [vmem:[#allocation2 + $0x694] sm:$0xf0] }
  0xd5   :  { %2052 = vmatpush.bf16.msra.mxu3 %v5386_v47  ;;  %v5301_v47 = vld [vmem:[#allocation2 + $0x740] sm:$0xf]  ;;  %v6692_v39 = vld [vmem:[#allocation2 + $0x674] sm:$0xf0]  ;;  %v5325_v40 = vld [vmem:[#allocation2 + $0x768] sm:$0xf] }
  0xd6   :  { %2011 = vmatpush.bf16.msra.mxu0 %v5238_v54  ;;  %v572_v52 = vpop.f32.mrf.mxu2  ;;  %v6717_v54 = vld [vmem:[#allocation2 + $0x744] sm:$0xf]  ;;  %v5302_v58 = vor.u32 %v6719_v49, %v5301_v47  ;;  %v5245_v47 = vld [vmem:[#allocation2 + $0x6c8] sm:$0xf] }
  0xd7   :  { %2025 = vmatpush.bf16.msra.mxu1 %v5366_v55  ;;  %v5303_v55 = vld [vmem:[#allocation2 + $0x750] sm:$0xf0]  ;;  %v573_v28 = vadd.f32 %v572_v52, %v7233_v41  ;;  %v586_v57 = vpop.f32.mrf.mxu3  ;;  %v5373_v49 = vld [vmem:[#allocation2 + $0x7c8] sm:$0xf]  ;;  %v6702_v52 = vld [vmem:[#allocation2 + $0x6cc] sm:$0xf] }
  0xd8   :  { %2039 = vmatpush.bf16.msra.mxu2 %v5242_v56  ;;  %v5174_v56 = vor.u32 %v6687_v46, %v5173_v45  ;;  %v5306_v3 = vor.u32 %v6717_v54, %v5303_v55  ;;  %v7238_v46 = vpop.f32.mrf.mxu0  ;;  %v5247_v54 = vld [vmem:[#allocation2 + $0x6d8] sm:$0xf0]  ;;  %v7240_v55 = vpop.f32.mrf.mxu1 }
  0xd9   :  { %2053 = vmatpush.bf16.msra.mxu3 %v5370_v63  ;;  %v5157_v63 = vld [vmem:[#allocation2 + $0x620] sm:$0xf]  ;;  %v7236_v2 = vadd.f32 %v586_v57, %v573_v28  ;;  %v6734_v28 = vld [vmem:[#allocation2 + $0x7cc] sm:$0xf] }
  0xda   :  { %2012 = vmatpush.bf16.msra.mxu0 %v5222_v5  ;;  %v6681_v5 = vld [vmem:[#allocation2 + $0x624] sm:$0xf]  ;;  %v5158_v11 = vor.u32 %v6683_v0, %v5157_v63  ;;  %v5229_v63 = vld [vmem:[#allocation2 + $0x6a8] sm:$0xf]  ;;  %v6700_v0 = vld [vmem:[#allocation2 + $0x6b4] sm:$0xf0] }
  0xdb   :  { %2026 = vmatpush.bf16.msra.mxu1 %v5350_v7  ;;  %v5159_v7 = vld [vmem:[#allocation2 + $0x630] sm:$0xf0] }
  0xdc   :  { %2040 = vmatpush.bf16.msra.mxu2 %v5226_v9  ;;  %v6713_v9 = vld [vmem:[#allocation2 + $0x724] sm:$0xf]  ;;  %v5162_v16 = vor.u32 %v6681_v5, %v5159_v7  ;;  %v6698_v5 = vld [vmem:[#allocation2 + $0x6ac] sm:$0xf]  ;;  %v5231_v7 = vld [vmem:[#allocation2 + $0x6b8] sm:$0xf0] }
  0xdd   :  { %2054 = vmatpush.bf16.msra.mxu3 %v5354_v13  ;;  %v6679_v13 = vld [vmem:[#allocation2 + $0x60c] sm:$0xf0]  ;;  %v5290_v21 = vor.u32 %v6713_v9, %v5287_v10  ;;  %v6730_v9 = vld [vmem:[#allocation2 + $0x7ac] sm:$0xf]  ;;  %v5359_v10 = vld [vmem:[#allocation2 + $0x7b8] sm:$0xf0] }
  0xde   :  { %2013 = vmatpush.bf16.msra.mxu0 %v5206_v23  ;;  %v5143_v23 = vld [vmem:[#allocation2 + $0x610] sm:$0xf0]  ;;  %v5142_v31 = vor.u32 %v6679_v13, %v5141_v12  ;;  %v7246_v12 = vpop.f32.mrf.mxu2  ;;  %v5358_v13 = vor.u32 %v6732_v4, %v5357_v1  ;;  %v6720_v1 = vld [vmem:[#allocation2 + $0x754] sm:$0xf0]  ;;  %v5183_v4 = vld [vmem:[#allocation2 + $0x658] sm:$0xf0] }
  0xdf   :  { %2027 = vmatpush.bf16.msra.mxu1 %v5334_v26  ;;  %v5271_v26 = vld [vmem:[#allocation2 + $0x710] sm:$0xf0]  ;;  %v5146_v36 = vor.u32 %v6677_v20, %v5143_v23  ;;  %v5341_v20 = vld [vmem:[#allocation2 + $0x788] sm:$0xf]  ;;  %v6728_v23 = vld [vmem:[#allocation2 + $0x794] sm:$0xf0] }
  0xe0   :  { %2041 = vmatpush.bf16.msra.mxu2 %v5210_v27  ;;  %v5261_v27 = vld [vmem:[#allocation2 + $0x6e8] sm:$0xf] }
  0xe1   :  { %2055 = vmatpush.bf16.msra.mxu3 %v5338_v33  ;;  %v6706_v33 = vld [vmem:[#allocation2 + $0x6ec] sm:$0xf] }
  0xe2   :  { %2014 = vmatpush.bf16.msra.mxu0 %v5190_v42  ;;  %v5274_v42 = vor.u32 %v6709_v25, %v5271_v26  ;;  %v5266_v45 = vor.u32 %v6706_v33, %v5263_v34  ;;  %v6694_v25 = vld [vmem:[#allocation2 + $0x68c] sm:$0xf]  ;;  %v5215_v26 = vld [vmem:[#allocation2 + $0x698] sm:$0xf0]  ;;  %v5342_v34 = vor.u32 %v6728_v23, %v5341_v20  ;;  %v5293_v20 = vld [vmem:[#allocation2 + $0x728] sm:$0xf] }
  0xe3   :  { %2028 = vmatpush.bf16.msra.mxu1 %v5318_v43  ;;  %v5262_v43 = vor.u32 %v6708_v29, %v5261_v27  ;;  %v6726_v29 = vld [vmem:[#allocation2 + $0x78c] sm:$0xf]  ;;  %v6716_v23 = vld [vmem:[#allocation2 + $0x734] sm:$0xf0] }
  0xe4   :  { %2042 = vmatpush.bf16.msra.mxu2 %v5194_v44  ;;  %v5390_v44 = vor.u32 %v6740_v32, %v5389_v30  ;;  %v5343_v30 = vld [vmem:[#allocation2 + $0x798] sm:$0xf0]  ;;  %v5214_v32 = vor.u32 %v6696_v19, %v5213_v17  ;;  %v5165_v17 = vld [vmem:[#allocation2 + $0x628] sm:$0xf]  ;;  %v6684_v19 = vld [vmem:[#allocation2 + $0x634] sm:$0xf0] }
  0xe5   :  { %2056 = vmatpush.bf16.msra.mxu3 %v5322_v48  ;;  %v6704_v48 = vld [vmem:[#allocation2 + $0x6d4] sm:$0xf0] }
  0xe6   :  { %2015 = vmatpush.bf16.msra.mxu0 %v5174_v56  ;;  %v5375_v56 = vld [vmem:[#allocation2 + $0x7d8] sm:$0xf0]  ;;  %v5246_v57 = vor.u32 %v6704_v48, %v5245_v47  ;;  %v6722_v48 = vld [vmem:[#allocation2 + $0x76c] sm:$0xf] }
  0xe7   :  { %2029 = vmatpush.bf16.msra.mxu1 %v5302_v58  ;;  %v5374_v58 = vor.u32 %v6736_v51, %v5373_v49  ;;  %v5199_v47 = vld [vmem:[#allocation2 + $0x678] sm:$0xf0] }
  0xe8   :  { %2043 = vmatpush.bf16.msra.mxu2 %v5178_v60  ;;  %v5250_v60 = vor.u32 %v6702_v52, %v5247_v54  ;;  %v5327_v49 = vld [vmem:[#allocation2 + $0x778] sm:$0xf0] }
  0xe9   :  { %2057 = vmatpush.bf16.msra.mxu3 %v5306_v3  ;;  %v5378_v3 = vor.u32 %v6734_v28, %v5375_v56  ;;  %v5181_v56 = vld [vmem:[#allocation2 + $0x648] sm:$0xf] }
  0xea   :  { %2016 = vmatpush.bf16.msra.mxu0 %v5158_v11  ;;  %v5230_v11 = vor.u32 %v6700_v0, %v5229_v63  ;;  %v5330_v63 = vor.u32 %v6722_v48, %v5327_v49 }
  0xeb   :  { %2030 = vmatpush.bf16.msra.mxu1 %v5286_v14  ;;  %v5234_v14 = vor.u32 %v6698_v5, %v5231_v7  ;;  %v6718_v7 = vld [vmem:[#allocation2 + $0x74c] sm:$0xf] }
  0xec   :  { %2044 = vmatpush.bf16.msra.mxu2 %v5162_v16  ;;  %v7248_v16 = vpop.f32.mrf.mxu3 }
  0xed   :  { %2058 = vmatpush.bf16.msra.mxu3 %v5290_v21  ;;  %v5362_v21 = vor.u32 %v6730_v9, %v5359_v10  ;;  %v5311_v9 = vld [vmem:[#allocation2 + $0x758] sm:$0xf0] }
  0xee   :  { %2017 = vmatpush.bf16.msra.mxu0 %v5142_v31  ;;  %v993_v27 = vpop.f32.mrf.mxu0 }
  0xef   :  { %2031 = vmatpush.bf16.msra.mxu1 %v5270_v35  ;;  %v994_v31 = vadd.f32 %v993_v27, %v7203_v37  ;;  %v1007_v33 = vpop.f32.mrf.mxu1  ;;  %v5218_v35 = vor.u32 %v6694_v25, %v5215_v26  ;;  %v6682_v25 = vld [vmem:[#allocation2 + $0x62c] sm:$0xf]  ;;  %v5167_v26 = vld [vmem:[#allocation2 + $0x638] sm:$0xf0]  ;;  %v592_v27 = vmax.f32 %v7212_v22, 0.0 }
  0xf0   :  { %2045 = vmatpush.bf16.msra.mxu2 %v5146_v36  ;;  %v5197_v36 = vld [vmem:[#allocation2 + $0x668] sm:$0xf]  ;;  %v6710_v22 = vld [vmem:[#allocation2 + $0x70c] sm:$0xf] }
  0xf1   :  { %2059 = vmatpush.bf16.msra.mxu3 %v5274_v42  ;;  %2018 = vmatmul.bf16.vlgmr.msra.gmra.mxu0 %v7167_v8  ;;  %v5346_v42 = vor.u32 %v6726_v29, %v5343_v30  ;;  %v5198_v52 = vor.u32 %v6692_v39, %v5197_v36  ;;  %v6714_v30 = vld [vmem:[#allocation2 + $0x72c] sm:$0xf]  ;;  %v5149_v36 = vld [vmem:[#allocation2 + $0x608] sm:$0xf]  ;;  %v6680_v39 = vld [vmem:[#allocation2 + $0x614] sm:$0xf0] }
  0xf2   :  { %2066 = vmatpush.bf16.msrb.mxu0 %v5262_v43  ;;  %2032 = vmatmul.bf16.vlgmr.msra.gmra.mxu1 %v7175_v15  ;;  %v1008_v43 = vadd.f32 %v1007_v33, %v994_v31  ;;  %v5295_v31 = vld [vmem:[#allocation2 + $0x738] sm:$0xf0]  ;;  %v5150_v48 = vor.u32 %v6680_v39, %v5149_v36  ;;  %v6768_v36 = vld [vmem:[#allocation4 + $0xd4] sm:$0xf0] }
  0xf3   :  { %2080 = vmatpush.bf16.msrb.mxu1 %v5390_v44  ;;  %2046 = vmatmul.bf16.vlgmr.msra.gmra.mxu2 %v7167_v8  ;;  %v6724_v44 = vld [vmem:[#allocation2 + $0x774] sm:$0xf0] }
  0xf4   :  { %2094 = vmatpush.bf16.msrb.mxu2 %v5266_v45  ;;  %2060 = vmatmul.bf16.vlgmr.msra.gmra.mxu3 %v7175_v15  ;;  %v6690_v45 = vld [vmem:[#allocation2 + $0x66c] sm:$0xf]  ;;  %v1096_v51 = vmax.f32 %v1008_v43, 0.0  ;;  %v5326_v54 = vor.u32 %v6724_v44, %v5325_v40  ;;  %v5277_v40 = vld [vmem:[#allocation2 + $0x708] sm:$0xf] }
  0xf5   :  { %2108 = vmatpush.bf16.msrb.mxu3 %v5394_v50  ;;  %v591_v50 = vmax.f32 %v7209_v61, 0.0  ;;  %v5202_v28 = vor.u32 %v6690_v45, %v5199_v47  ;;  %v6712_v43 = vld [vmem:[#allocation2 + $0x714] sm:$0xf0]  ;;  %v6678_v44 = vld [vmem:[#allocation2 + $0x60c] sm:$0xf] }
  0xf6   :  { %2067 = vmatpush.bf16.msrb.mxu0 %v5246_v57  ;;  %v6688_v57 = vld [vmem:[#allocation2 + $0x654] sm:$0xf0]  ;;  %v1021_v0 = vpop.f32.mrf.mxu2  ;;  %v5151_v45 = vld [vmem:[#allocation2 + $0x618] sm:$0xf0]  ;;  %v5278_v49 = vor.u32 %v6712_v43, %v5277_v40  ;;  %v5421_v40 = vld [vmem:[#allocation4 + $0x30] sm:$0xf] }
  0xf7   :  { %2081 = vmatpush.bf16.msrb.mxu1 %v5374_v58  ;;  %v5309_v58 = vld [vmem:[#allocation2 + $0x748] sm:$0xf]  ;;  %v1022_v61 = vadd.f32 %v1021_v0, %v7207_v59  ;;  %v1035_v5 = vpop.f32.mrf.mxu3  ;;  %v5182_v10 = vor.u32 %v6688_v57, %v5181_v56  ;;  %v5279_v47 = vld [vmem:[#allocation2 + $0x718] sm:$0xf0] }
  0xf8   :  { %2095 = vmatpush.bf16.msrb.mxu2 %v5250_v60  ;;  %v7252_v60 = vmax.f32 %v591_v50, %v1096_v51  ;;  %v5154_v50 = vor.u32 %v6678_v44, %v5151_v45  ;;  %v5282_v51 = vor.u32 %v6710_v22, %v5279_v47  ;;  %v5493_v44 = vld [vmem:[#allocation4 + $0xc0] sm:$0xf]  ;;  %v6766_v45 = vld [vmem:[#allocation4 + $0xc4] sm:$0xf0] }
  0xf9   :  { %2109 = vmatpush.bf16.msrb.mxu3 %v5378_v3  ;;  %v6686_v3 = vld [vmem:[#allocation2 + $0x64c] sm:$0xf]  ;;  %v5494_v22 = vor.u32 %v6766_v45, %v5493_v44  ;;  %v5413_v47 = vld [vmem:[#allocation4 + $0x20] sm:$0xf]  ;;  %v5565_v44 = vld [vmem:[#allocation4 + $0x150] sm:$0xf] }
  0xfa   :  { %2068 = vmatpush.bf16.msrb.mxu0 %v5230_v11  ;;  %v1036_v11 = vadd.f32 %v1035_v5, %v1022_v61 }
  0xfb   :  { %2082 = vmatpush.bf16.msrb.mxu1 %v5358_v13  ;;  %v5310_v13 = vor.u32 %v6720_v1, %v5309_v58  ;;  %v593_v1 = vmax.f32 %v7230_v38, 0.0 }
  0xfc   :  { %2096 = vmatpush.bf16.msrb.mxu2 %v5234_v14  ;;  %v5186_v14 = vor.u32 %v6686_v3, %v5183_v4  ;;  %v1097_v29 = vmax.f32 %v1036_v11, 0.0  ;;  %v5453_v11 = vld [vmem:[#allocation4 + $0x70] sm:$0xf] }
  0xfd   :  { %2110 = vmatpush.bf16.msrb.mxu3 %v5362_v21  ;;  %v5314_v21 = vor.u32 %v6718_v7, %v5311_v9 }
  0xfe   :  { %2069 = vmatpush.bf16.msrb.mxu0 %v5214_v32  ;;  %v5166_v32 = vor.u32 %v6684_v19, %v5165_v17  ;;  %v7256_v33 = vmax.f32 %v592_v27, %v1097_v29  ;;  %v5445_v17 = vld [vmem:[#allocation4 + $0x60] sm:$0xf]  ;;  %v6754_v19 = vld [vmem:[#allocation4 + $0x64] sm:$0xf0] }
  0xff   :  { %2083 = vmatpush.bf16.msrb.mxu1 %v5342_v34  ;;  %v5294_v34 = vor.u32 %v6716_v23, %v5293_v20  ;;  %v7268_v56 = vpop.f32.mrf.mxu3  ;;  %v5446_v38 = vor.u32 %v6754_v19, %v5445_v17  ;;  %v5517_v20 = vld [vmem:[#allocation4 + $0xf0] sm:$0xf]  ;;  %v5509_v29 = vld [vmem:[#allocation4 + $0xe0] sm:$0xf]  ;;  %v5455_v19 = vld [vmem:[#allocation4 + $0x78] sm:$0xf0] }
 0x100   :  { %2097 = vmatpush.bf16.msrb.mxu2 %v5218_v35  ;;  %v5170_v35 = vor.u32 %v6682_v25, %v5167_v26  ;;  %v5437_v25 = vld [vmem:[#allocation4 + $0x50] sm:$0xf]  ;;  %v6752_v26 = vld [vmem:[#allocation4 + $0x54] sm:$0xf0] }
 0x101   :  { %2111 = vmatpush.bf16.msrb.mxu3 %v5346_v42  ;;  %v5298_v42 = vor.u32 %v6714_v30, %v5295_v31  ;;  %v5438_v27 = vor.u32 %v6752_v26, %v5437_v25  ;;  %v5429_v31 = vld [vmem:[#allocation4 + $0x40] sm:$0xf]  ;;  %v6786_v26 = vld [vmem:[#allocation4 + $0x164] sm:$0xf0] }
 0x102   :  { %2070 = vmatpush.bf16.msrb.mxu0 %v5198_v52  ;;  %v7258_v52 = vpop.f32.mrf.mxu0  ;;  %v5573_v25 = vld [vmem:[#allocation4 + $0x160] sm:$0xf] }
 0x103   :  { %2084 = vmatpush.bf16.msrb.mxu1 %v5326_v54  ;;  %v7260_v54 = vpop.f32.mrf.mxu1 }
 0x104   :  { %2098 = vmatpush.bf16.msrb.mxu2 %v5202_v28  ;;  %v7266_v28 = vpop.f32.mrf.mxu2 }
 0x105   :  { %2112 = vmatpush.bf16.msrb.mxu3 %v5330_v63 }
 0x106   :  { %2071 = vmatpush.bf16.msrb.mxu0 %v5182_v10 }
 0x107   :  { %2085 = vmatpush.bf16.msrb.mxu1 %v5310_v13  ;;  %v6756_v13 = vld [vmem:[#allocation4 + $0x74] sm:$0xf0] }
 0x108   :  { %2099 = vmatpush.bf16.msrb.mxu2 %v5186_v14  ;;  %v5454_v14 = vor.u32 %v6756_v13, %v5453_v11  ;;  %v5581_v11 = vld [vmem:[#allocation4 + $0x170] sm:$0xf]  ;;  %v6788_v13 = vld [vmem:[#allocation4 + $0x174] sm:$0xf0] }
 0x109   :  { %2113 = vmatpush.bf16.msrb.mxu3 %v5314_v21  ;;  %v6772_v21 = vld [vmem:[#allocation4 + $0xf4] sm:$0xf0]  ;;  %v5582_v17 = vor.u32 %v6788_v13, %v5581_v11  ;;  %v6749_v11 = vld [vmem:[#allocation4 + $0x44] sm:$0xf] }
 0x10a   :  { %2072 = vmatpush.bf16.msrb.mxu0 %v5166_v32  ;;  %v5518_v23 = vor.u32 %v6772_v21, %v5517_v20  ;;  %v6750_v32 = vld [vmem:[#allocation4 + $0x44] sm:$0xf0]  ;;  %v6760_v20 = vld [vmem:[#allocation4 + $0x94] sm:$0xf0] }
 0x10b   :  { %2086 = vmatpush.bf16.msrb.mxu1 %v5294_v34  ;;  %v5430_v34 = vor.u32 %v6750_v32, %v5429_v31  ;;  %v6758_v32 = vld [vmem:[#allocation4 + $0x84] sm:$0xf0] }
 0x10c   :  { %2100 = vmatpush.bf16.msrb.mxu2 %v5170_v35  ;;  %v5501_v35 = vld [vmem:[#allocation4 + $0xd0] sm:$0xf] }
 0x10d   :  { %2114 = vmatpush.bf16.msrb.mxu3 %v5298_v42  ;;  %v5502_v39 = vor.u32 %v6768_v36, %v5501_v35  ;;  %v6748_v42 = vld [vmem:[#allocation4 + $0x34] sm:$0xf0] }
 0x10e   :  { %2073 = vmatpush.bf16.msrb.mxu0 %v5150_v48  ;;  %v1049_v57 = vpop.f32.mrf.mxu0  ;;  %v5422_v43 = vor.u32 %v6748_v42, %v5421_v40  ;;  %v6746_v48 = vld [vmem:[#allocation4 + $0x24] sm:$0xf0]  ;;  %v6804_v35 = vld [vmem:[#allocation4 + $0x1f4] sm:$0xf0]  ;;  %v6771_v42 = vld [vmem:[#allocation4 + $0xf4] sm:$0xf] }
 0x10f   :  { %2087 = vmatpush.bf16.msrb.mxu1 %v5278_v49  ;;  %v1050_v58 = vadd.f32 %v1049_v57, %v7223_v6  ;;  %v1063_v63 = vpop.f32.mrf.mxu1  ;;  %v5414_v49 = vor.u32 %v6746_v48, %v5413_v47  ;;  %v6784_v48 = vld [vmem:[#allocation4 + $0x154] sm:$0xf0] }
 0x110   :  { %2101 = vmatpush.bf16.msrb.mxu2 %v5154_v50  ;;  %v5485_v50 = vld [vmem:[#allocation4 + $0xb0] sm:$0xf] }
 0x111   :  { %2115 = vmatpush.bf16.msrb.mxu3 %v5282_v51  ;;  %2074 = vmatmul.bf16.vlgmr.msrb.gmra.mxu0 %v7167_v8  ;;  %v1064_v0 = vadd.f32 %v1063_v63, %v1050_v58  ;;  %v6764_v51 = vld [vmem:[#allocation4 + $0xb4] sm:$0xf0]  ;;  %v5405_v58 = vld [vmem:[#allocation4 + $0x10] sm:$0xf] }
 0x112   :  { %2088 = vmatmul.bf16.vlgmr.msrb.gmra.mxu1 %v7175_v15  ;;  %2532 = vmatpush.bf16.msra.mxu0 %v5454_v14  ;;  %v5486_v57 = vor.u32 %v6764_v51, %v5485_v50  ;;  %v6744_v63 = vld [vmem:[#allocation4 + $0x14] sm:$0xf0]  ;;  %v6755_v14 = vld [vmem:[#allocation4 + $0x74] sm:$0xf]  ;;  %v5439_v50 = vld [vmem:[#allocation4 + $0x58] sm:$0xf0] }
 0x113   :  { %2102 = vmatmul.bf16.vlgmr.msrb.gmra.mxu2 %v7167_v8  ;;  %v1098_v3 = vmax.f32 %v1064_v0, 0.0  ;;  %2546 = vmatpush.bf16.msra.mxu1 %v5518_v23  ;;  %v5406_v0 = vor.u32 %v6744_v63, %v5405_v58  ;;  %v5458_v21 = vor.u32 %v6755_v14, %v5455_v19  ;;  %v5637_v63 = vld [vmem:[#allocation4 + $0x1e0] sm:$0xf]  ;;  %v5431_v14 = vld [vmem:[#allocation4 + $0x48] sm:$0xf0] }
 0x114   :  { %2116 = vmatmul.bf16.vlgmr.msrb.gmra.mxu3 %v7175_v15  ;;  %v594_v15 = vmax.f32 %v7236_v2, 0.0  ;;  %v6770_v2 = vld [vmem:[#allocation4 + $0xe4] sm:$0xf0]  ;;  %2560 = vmatpush.bf16.msra.mxu2 %v5582_v17  ;;  %v5434_v19 = vor.u32 %v6749_v11, %v5431_v14  ;;  %v6776_v14 = vld [vmem:[#allocation4 + $0x114] sm:$0xf0] }
 0x115   :  { %v7272_v4 = vmax.f32 %v593_v1, %v1098_v3  ;;  %v5510_v30 = vor.u32 %v6770_v2, %v5509_v29  ;;  %v5477_v1 = vld [vmem:[#allocation4 + $0xa0] sm:$0xf]  ;;  %v6762_v3 = vld [vmem:[#allocation4 + $0xa4] sm:$0xf0]  ;;  %v6753_v29 = vld [vmem:[#allocation4 + $0x64] sm:$0xf] }
 0x116   :  { %v1077_v61 = vpop.f32.mrf.mxu2  ;;  %2533 = vmatpush.bf16.msra.mxu0 %v5446_v38  ;;  %v5469_v38 = vld [vmem:[#allocation4 + $0x90] sm:$0xf]  ;;  %v5447_v2 = vld [vmem:[#allocation4 + $0x68] sm:$0xf0] }
 0x117   :  { %v1078_v5 = vadd.f32 %v1077_v61, %v7233_v41  ;;  %v1091_v8 = vpop.f32.mrf.mxu3  ;;  %2547 = vmatpush.bf16.msra.mxu1 %v5510_v30  ;;  %v5478_v61 = vor.u32 %v6762_v3, %v5477_v1  ;;  %v5470_v23 = vor.u32 %v6760_v20, %v5469_v38  ;;  %v5461_v30 = vld [vmem:[#allocation4 + $0x80] sm:$0xf]  ;;  %v5450_v31 = vor.u32 %v6753_v29, %v5447_v2  ;;  %v6769_v1 = vld [vmem:[#allocation4 + $0xe4] sm:$0xf]  ;;  %v5629_v38 = vld [vmem:[#allocation4 + $0x1d0] sm:$0xf] }
 0x118   :  { %v6800_v20 = vld [vmem:[#allocation4 + $0x1d4] sm:$0xf0]  ;;  %v5549_v29 = vld [vmem:[#allocation4 + $0x130] sm:$0xf] }
 0x119   :  { %v1092_v7 = vadd.f32 %v1091_v8, %v1078_v5  ;;  %v7278_v5 = vpop.f32.mrf.mxu0  ;;  %v5397_v8 = vld [vmem:[#allocation4] sm:$0xf]  ;;  %v6780_v2 = vld [vmem:[#allocation4 + $0x134] sm:$0xf0] }
 0x11a   :  { %2534 = vmatpush.bf16.msra.mxu0 %v5438_v27  ;;  %v5574_v27 = vor.u32 %v6786_v26, %v5573_v25  ;;  %v5630_v25 = vor.u32 %v6800_v20, %v5629_v38  ;;  %v5503_v26 = vld [vmem:[#allocation4 + $0xd8] sm:$0xf0] }
 0x11b   :  { %v1099_v9 = vmax.f32 %v1092_v7, 0.0  ;;  %2548 = vmatpush.bf16.msra.mxu1 %v5502_v39  ;;  %v6742_v7 = vld [vmem:[#allocation4 + $0x4] sm:$0xf0]  ;;  %v5462_v39 = vor.u32 %v6758_v32, %v5461_v30  ;;  %v6747_v30 = vld [vmem:[#allocation4 + $0x34] sm:$0xf]  ;;  %v5550_v32 = vor.u32 %v6780_v2, %v5549_v29 }
 0x11c   :  { %2561 = vmatpush.bf16.msra.mxu2 %v5574_v27  ;;  %v5605_v29 = vld [vmem:[#allocation4 + $0x1a0] sm:$0xf]  ;;  %v6794_v2 = vld [vmem:[#allocation4 + $0x1a4] sm:$0xf0] }
 0x11d   :  { %v7276_v10 = vmax.f32 %v594_v15, %v1099_v9  ;;  %v7280_v15 = vpop.f32.mrf.mxu1  ;;  %v5398_v9 = vor.u32 %v6742_v7, %v5397_v8  ;;  %v5557_v7 = vld [vmem:[#allocation4 + $0x140] sm:$0xf] }
 0x11e   :  { %2535 = vmatpush.bf16.msra.mxu0 %v5430_v34  ;;  %v5645_v34 = vld [vmem:[#allocation4 + $0x1f0] sm:$0xf]  ;;  %v7282_v36 = vpop.f32.mrf.mxu2 }
 0x11f   :  { %2549 = vmatpush.bf16.msra.mxu1 %v5494_v22  ;;  %v5646_v40 = vor.u32 %v6804_v35, %v5645_v34  ;;  %v7284_v45 = vpop.f32.mrf.mxu3  ;;  %v5423_v34 = vld [vmem:[#allocation4 + $0x38] sm:$0xf0] }
 0x121   :  { %2574 = vmatpush.bf16.msra.mxu3 %v5646_v40  ;;  %v5621_v40 = vld [vmem:[#allocation4 + $0x1c0] sm:$0xf] }
 0x122   :  { %2536 = vmatpush.bf16.msra.mxu0 %v5422_v43  ;;  %v5519_v43 = vld [vmem:[#allocation4 + $0xf8] sm:$0xf0] }
 0x123   :  { %2550 = vmatpush.bf16.msra.mxu1 %v5486_v57  ;;  %v5522_v47 = vor.u32 %v6771_v42, %v5519_v43  ;;  %v5566_v57 = vor.u32 %v6784_v48, %v5565_v44  ;;  %v6798_v42 = vld [vmem:[#allocation4 + $0x1c4] sm:$0xf0]  ;;  %v6765_v44 = vld [vmem:[#allocation4 + $0xc4] sm:$0xf] }
 0x124   :  { %v5622_v43 = vor.u32 %v6798_v42, %v5621_v40  ;;  %v5525_v40 = vld [vmem:[#allocation4 + $0x100] sm:$0xf]  ;;  %v6774_v42 = vld [vmem:[#allocation4 + $0x104] sm:$0xf0] }
 0x125   :  { %2562 = vmatpush.bf16.msra.mxu2 %v5566_v57  ;;  %v6745_v57 = vld [vmem:[#allocation4 + $0x24] sm:$0xf] }
 0x126   :  { %2537 = vmatpush.bf16.msra.mxu0 %v5414_v49  ;;  %v6751_v49 = vld [vmem:[#allocation4 + $0x54] sm:$0xf] }
 0x127   :  { %2551 = vmatpush.bf16.msra.mxu1 %v5478_v61  ;;  %v5442_v58 = vor.u32 %v6751_v49, %v5439_v50  ;;  %v5511_v61 = vld [vmem:[#allocation4 + $0xe8] sm:$0xf0]  ;;  %v5541_v49 = vld [vmem:[#allocation4 + $0x120] sm:$0xf]  ;;  %v6778_v50 = vld [vmem:[#allocation4 + $0x124] sm:$0xf0] }
 0x128   :  { %v5514_v8 = vor.u32 %v6769_v1, %v5511_v61  ;;  %v5613_v1 = vld [vmem:[#allocation4 + $0x1b0] sm:$0xf]  ;;  %v6763_v61 = vld [vmem:[#allocation4 + $0xb4] sm:$0xf] }
 0x12a   :  { %2538 = vmatpush.bf16.msra.mxu0 %v5406_v0  ;;  %v6802_v0 = vld [vmem:[#allocation4 + $0x1e4] sm:$0xf0] }
 0x12b   :  { %2552 = vmatpush.bf16.msra.mxu1 %v5470_v23  ;;  %v5638_v3 = vor.u32 %v6802_v0, %v5637_v63  ;;  %v5415_v63 = vld [vmem:[#allocation4 + $0x28] sm:$0xf0] }
 0x12c   :  { %v5418_v0 = vor.u32 %v6745_v57, %v5415_v63  ;;  %v6792_v63 = vld [vmem:[#allocation4 + $0x194] sm:$0xf0] }
 0x12d   :  { %2575 = vmatpush.bf16.msra.mxu3 %v5638_v3  ;;  %v6796_v3 = vld [vmem:[#allocation4 + $0x1b4] sm:$0xf0] }
 0x12e   :  { %2539 = vmatpush.bf16.msra.mxu0 %v5398_v9  ;;  %v7286_v22 = vpop.f32.mrf.mxu0  ;;  %v6782_v9 = vld [vmem:[#allocation4 + $0x144] sm:$0xf0] }
 0x12f   :  { %v7288_v51 = vpop.f32.mrf.mxu1  ;;  %2553 = vmatpush.bf16.msra.mxu1 %v5462_v39  ;;  %v5558_v13 = vor.u32 %v6782_v9, %v5557_v7  ;;  %v5426_v39 = vor.u32 %v6747_v30, %v5423_v34  ;;  %v5487_v7 = vld [vmem:[#allocation4 + $0xb8] sm:$0xf0]  ;;  %v5606_v30 = vor.u32 %v6794_v2, %v5605_v29  ;;  %v5479_v34 = vld [vmem:[#allocation4 + $0xa8] sm:$0xf0] }
 0x130   :  { %v5490_v11 = vor.u32 %v6763_v61, %v5487_v7  ;;  %v5463_v29 = vld [vmem:[#allocation4 + $0x88] sm:$0xf0] }
 0x131   :  { %2563 = vmatpush.bf16.msra.mxu2 %v5558_v13  ;;  %2576 = vmatpush.bf16.msra.mxu3 %v5630_v25  ;;  %v5533_v13 = vld [vmem:[#allocation4 + $0x110] sm:$0xf]  ;;  %v5407_v25 = vld [vmem:[#allocation4 + $0x18] sm:$0xf0] }
 0x132   :  { %2588 = vmatpush.bf16.msrb.mxu0 %v5458_v21  ;;  %v6767_v21 = vld [vmem:[#allocation4 + $0xd4] sm:$0xf] }
 0x133   :  { %2602 = vmatpush.bf16.msrb.mxu1 %v5522_v47  ;;  %v5506_v27 = vor.u32 %v6767_v21, %v5503_v26  ;;  %v5495_v47 = vld [vmem:[#allocation4 + $0xc8] sm:$0xf0]  ;;  %v5534_v21 = vor.u32 %v6776_v14, %v5533_v13 }
 0x134   :  { %v5498_v48 = vor.u32 %v6765_v44, %v5495_v47  ;;  %v5526_v44 = vor.u32 %v6774_v42, %v5525_v40  ;;  %v5399_v47 = vld [vmem:[#allocation4 + $0x8] sm:$0xf0]  ;;  %v6783_v42 = vld [vmem:[#allocation4 + $0x154] sm:$0xf] }
 0x135   :  { %2564 = vmatpush.bf16.msra.mxu2 %v5550_v32  ;;  %2577 = vmatpush.bf16.msra.mxu3 %v5622_v43  ;;  %v6761_v32 = vld [vmem:[#allocation4 + $0xa4] sm:$0xf]  ;;  %v5575_v13 = vld [vmem:[#allocation4 + $0x168] sm:$0xf0] }
 0x136   :  { %2589 = vmatpush.bf16.msrb.mxu0 %v5450_v31  ;;  %v7290_v17 = vpop.f32.mrf.mxu2  ;;  %v7294_v31 = vpop.f32.mrf.mxu0  ;;  %v6741_v43 = vld [vmem:[#allocation4 + $0x4] sm:$0xf] }
 0x137   :  { %2603 = vmatpush.bf16.msrb.mxu1 %v5514_v8  ;;  %v7292_v23 = vpop.f32.mrf.mxu3  ;;  %v7296_v35 = vpop.f32.mrf.mxu1  ;;  %v5614_v8 = vor.u32 %v6796_v3, %v5613_v1  ;;  %v5471_v1 = vld [vmem:[#allocation4 + $0x98] sm:$0xf0] }
 0x139   :  { %2578 = vmatpush.bf16.msra.mxu3 %v5614_v8 }
 0x13a   :  { %2590 = vmatpush.bf16.msrb.mxu0 %v5442_v58  ;;  %v5542_v58 = vor.u32 %v6778_v50, %v5541_v49  ;;  %v5583_v49 = vld [vmem:[#allocation4 + $0x178] sm:$0xf0]  ;;  %v5402_v50 = vor.u32 %v6741_v43, %v5399_v47  ;;  %v6801_v47 = vld [vmem:[#allocation4 + $0x1e4] sm:$0xf] }
 0x13b   :  { %2604 = vmatpush.bf16.msrb.mxu1 %v5506_v27  ;;  %v5567_v43 = vld [vmem:[#allocation4 + $0x158] sm:$0xf0] }
 0x13c   :  { %2565 = vmatpush.bf16.msra.mxu2 %v5542_v58  ;;  %v5597_v58 = vld [vmem:[#allocation4 + $0x190] sm:$0xf] }
 0x13d   :  { %2579 = vmatpush.bf16.msra.mxu3 %v5606_v30  ;;  %v5598_v61 = vor.u32 %v6792_v63, %v5597_v58  ;;  %v996_v58 = vadd.f32 %v7258_v52, %v7203_v37 }
 0x13e   :  { %2591 = vmatpush.bf16.msrb.mxu0 %v5434_v19  ;;  %v7298_v9 = vpop.f32.mrf.mxu2  ;;  %v6743_v19 = vld [vmem:[#allocation4 + $0x14] sm:$0xf] }
 0x13f   :  { %2605 = vmatpush.bf16.msrb.mxu1 %v5498_v48  ;;  %v7300_v38 = vpop.f32.mrf.mxu3  ;;  %v5410_v27 = vor.u32 %v6743_v19, %v5407_v25  ;;  %v6787_v48 = vld [vmem:[#allocation4 + $0x174] sm:$0xf]  ;;  %v5589_v19 = vld [vmem:[#allocation4 + $0x180] sm:$0xf]  ;;  %v6790_v25 = vld [vmem:[#allocation4 + $0x184] sm:$0xf0] }
 0x140   :  { %2566 = vmatpush.bf16.msra.mxu2 %v5534_v21  ;;  %v5586_v57 = vor.u32 %v6787_v48, %v5583_v49  ;;  %v5590_v30 = vor.u32 %v6790_v25, %v5589_v19  ;;  %v5639_v48 = vld [vmem:[#allocation4 + $0x1e8] sm:$0xf0]  ;;  %v1509_v19 = vadd.f32 %v7294_v31, %v7203_v37 }
 0x141   :  { %2580 = vmatpush.bf16.msra.mxu3 %v5598_v61  ;;  %v5642_v49 = vor.u32 %v6801_v47, %v5639_v48  ;;  %v5543_v47 = vld [vmem:[#allocation4 + $0x128] sm:$0xf0] }
 0x142   :  { %2592 = vmatpush.bf16.msrb.mxu0 %v5426_v39  ;;  %v5482_v39 = vor.u32 %v6761_v32, %v5479_v34  ;;  %v6803_v34 = vld [vmem:[#allocation4 + $0x1f4] sm:$0xf] }
 0x143   :  { %2606 = vmatpush.bf16.msrb.mxu1 %v5490_v11  ;;  %v6785_v11 = vld [vmem:[#allocation4 + $0x164] sm:$0xf] }
 0x144   :  { %2567 = vmatpush.bf16.msra.mxu2 %v5526_v44  ;;  %v5578_v14 = vor.u32 %v6785_v11, %v5575_v13  ;;  %v5570_v44 = vor.u32 %v6783_v42, %v5567_v43  ;;  %v6799_v11 = vld [vmem:[#allocation4 + $0x1d4] sm:$0xf]  ;;  %v5631_v13 = vld [vmem:[#allocation4 + $0x1d8] sm:$0xf0]  ;;  %v1523_v42 = vadd.f32 %v7296_v35, %v1509_v19  ;;  %v519_v43 = vadd.f32 %v7225_v18, %v7207_v59 }
 0x145   :  { %2581 = vmatpush.bf16.msra.mxu3 %v5590_v30  ;;  %v5634_v52 = vor.u32 %v6799_v11, %v5631_v13  ;;  %v1010_v30 = vadd.f32 %v7260_v54, %v996_v58  ;;  %v1024_v54 = vadd.f32 %v7266_v28, %v7207_v59  ;;  %v1537_v35 = vadd.f32 %v7298_v9, %v7207_v59  ;;  %v6795_v18 = vld [vmem:[#allocation4 + $0x1b4] sm:$0xf]  ;;  %v5535_v9 = vld [vmem:[#allocation4 + $0x118] sm:$0xf0] }
 0x146   :  { %2593 = vmatpush.bf16.msrb.mxu0 %v5418_v0  ;;  %v6759_v0 = vld [vmem:[#allocation4 + $0x94] sm:$0xf]  ;;  %v1613_v28 = vmax.f32 %v1523_v42, 0.0  ;;  %v533_v19 = vadd.f32 %v7227_v24, %v519_v43  ;;  %v6820_v42 = vld [vmem:[#allocation4 + $0x274] sm:$0xf0] }
 0x147   :  { %2607 = vmatpush.bf16.msrb.mxu1 %v5482_v39  ;;  %v5474_v8 = vor.u32 %v6759_v0, %v5471_v1  ;;  %v5647_v39 = vld [vmem:[#allocation4 + $0x1f8] sm:$0xf0]  ;;  %v491_v1 = vadd.f32 %v7214_v53, %v7203_v37  ;;  %v1100_v48 = vmax.f32 %v1010_v30, 0.0 }
 0x148   :  { %2616 = vmatpush.bf16.msrb.mxu2 %v5586_v57  ;;  %v5650_v40 = vor.u32 %v6803_v34, %v5647_v39  ;;  %v5559_v57 = vld [vmem:[#allocation4 + $0x148] sm:$0xf0]  ;;  %v6797_v39 = vld [vmem:[#allocation4 + $0x1c4] sm:$0xf] }
 0x149   :  { %v505_v34 = vadd.f32 %v7216_v62, %v491_v1  ;;  %v5615_v1 = vld [vmem:[#allocation4 + $0x1b8] sm:$0xf0] }
 0x14a   :  { %2594 = vmatpush.bf16.msrb.mxu0 %v5410_v27  ;;  %v6757_v27 = vld [vmem:[#allocation4 + $0x84] sm:$0xf]  ;;  %2630 = vmatpush.bf16.msrb.mxu3 %v5650_v40  ;;  %v5623_v40 = vld [vmem:[#allocation4 + $0x1c8] sm:$0xf0] }
 0x14b   :  { %2608 = vmatpush.bf16.msrb.mxu1 %v5474_v8  ;;  %v5466_v32 = vor.u32 %v6757_v27, %v5463_v29  ;;  %v6779_v27 = vld [vmem:[#allocation4 + $0x134] sm:$0xf]  ;;  %v5551_v29 = vld [vmem:[#allocation4 + $0x138] sm:$0xf0]  ;;  %v5626_v31 = vor.u32 %v6797_v39, %v5623_v40  ;;  %v5607_v39 = vld [vmem:[#allocation4 + $0x1a8] sm:$0xf0] }
 0x14c   :  { %2617 = vmatpush.bf16.msrb.mxu2 %v5578_v14  ;;  %v1507_v14 = vadd.f32 %v7286_v22, %v7203_v37 }
 0x14e   :  { %v7302_v20 = vpop.f32.mrf.mxu0  ;;  %2595 = vmatpush.bf16.msrb.mxu0 %v5402_v50  ;;  %v6781_v50 = vld [vmem:[#allocation4 + $0x144] sm:$0xf]  ;;  %2631 = vmatpush.bf16.msrb.mxu3 %v5642_v49  ;;  %v1521_v22 = vadd.f32 %v7288_v51, %v1507_v14  ;;  %v1535_v51 = vadd.f32 %v7290_v17, %v7207_v59  ;;  %v5618_v14 = vor.u32 %v6795_v18, %v5615_v1  ;;  %v5701_v1 = vld [vmem:[#allocation4 + $0x260] sm:$0xf] }
 0x14f   :  { %v7304_v26 = vpop.f32.mrf.mxu1  ;;  %2609 = vmatpush.bf16.msrb.mxu1 %v5466_v32  ;;  %v5562_v0 = vor.u32 %v6781_v50, %v5559_v57  ;;  %v5554_v32 = vor.u32 %v6779_v27, %v5551_v29  ;;  %v595_v57 = vmax.f32 %v505_v34, 0.0  ;;  %v1551_v34 = vadd.f32 %v7300_v38, %v1537_v35 }
 0x150   :  { %2618 = vmatpush.bf16.msrb.mxu2 %v5570_v44  ;;  %v6777_v44 = vld [vmem:[#allocation4 + $0x124] sm:$0xf] }
 0x151   :  { %v5546_v50 = vor.u32 %v6777_v44, %v5543_v47  ;;  %v1108_v27 = vmax.f32 %v595_v57, %v1100_v48  ;;  %v6773_v44 = vld [vmem:[#allocation4 + $0x104] sm:$0xf]  ;;  %v5527_v47 = vld [vmem:[#allocation4 + $0x108] sm:$0xf0]  ;;  %v596_v48 = vmax.f32 %v533_v19, 0.0  ;;  %v1614_v57 = vmax.f32 %v1551_v34, 0.0 }
 0x152   :  { %2632 = vmatpush.bf16.msrb.mxu3 %v5634_v52  ;;  %v6775_v52 = vld [vmem:[#allocation4 + $0x114] sm:$0xf]  ;;  %v5530_v38 = vor.u32 %v6773_v44, %v5527_v47  ;;  %v5773_v19 = vld [vmem:[#allocation4 + $0x2f0] sm:$0xf]  ;;  %v6832_v47 = vld [vmem:[#allocation4 + $0x2d4] sm:$0xf0] }
 0x153   :  { %v1621_v24 = vmax.f32 %v1108_v27, %v1613_v28  ;;  %v6789_v27 = vld [vmem:[#allocation4 + $0x184] sm:$0xf]  ;;  %v5757_v44 = vld [vmem:[#allocation4 + $0x2d0] sm:$0xf] }
 0x154   :  { %2619 = vmatpush.bf16.msrb.mxu2 %v5562_v0 }
 0x156   :  { %v7306_v3 = vpop.f32.mrf.mxu2  ;;  %v7310_v21 = vpop.f32.mrf.mxu0  ;;  %2633 = vmatpush.bf16.msrb.mxu3 %v5626_v31 }
 0x157   :  { %v7308_v7 = vpop.f32.mrf.mxu3  ;;  %v7312_v2 = vpop.f32.mrf.mxu1 }
 0x158   :  { %2620 = vmatpush.bf16.msrb.mxu2 %v5554_v32  ;;  %v1549_v32 = vadd.f32 %v7292_v23, %v1535_v51 }
 0x15a   :  { %2634 = vmatpush.bf16.msrb.mxu3 %v5618_v14 }
 0x15c   :  { %2621 = vmatpush.bf16.msrb.mxu2 %v5546_v50  ;;  %v1610_v50 = vmax.f32 %v1549_v32, 0.0 }
 0x15e   :  { %v7316_v63 = vpop.f32.mrf.mxu2 }
 0x15f   :  { %v7320_v61 = vpop.f32.mrf.mxu3 }
 0x16e   :  { %v2019_v8 = vpop.f32.mrf.mxu0 }
 0x16f   :  { %v2033_v25 = vpop.f32.mrf.mxu1  ;;  %v2020_v53 = vadd.f32 %v2019_v8, %v7203_v37  ;;  %v1609_v8 = vmax.f32 %v1521_v22, 0.0 }
 0x171   :  { %v2034_v49 = vadd.f32 %v2033_v25, %v2020_v53  ;;  %v1038_v25 = vadd.f32 %v7268_v56, %v1024_v54  ;;  %v5538_v53 = vor.u32 %v6775_v52, %v5535_v9  ;;  %v1617_v40 = vmax.f32 %v7252_v60, %v1609_v8  ;;  %v5709_v56 = vld [vmem:[#allocation4 + $0x270] sm:$0xf]  ;;  %v6818_v8 = vld [vmem:[#allocation4 + $0x264] sm:$0xf0]  ;;  %v6836_v9 = vld [vmem:[#allocation4 + $0x2f4] sm:$0xf0] }
 0x172   :  { %v5710_v35 = vor.u32 %v6820_v42, %v5709_v56  ;;  %v5702_v52 = vor.u32 %v6818_v8, %v5701_v1  ;;  %v5685_v56 = vld [vmem:[#allocation4 + $0x240] sm:$0xf]  ;;  %v6814_v42 = vld [vmem:[#allocation4 + $0x244] sm:$0xf0] }
 0x173   :  { %v2122_v29 = vmax.f32 %v2034_v49, 0.0  ;;  %2622 = vmatpush.bf16.msrb.mxu2 %v5538_v53  ;;  %v1101_v43 = vmax.f32 %v1038_v25, 0.0  ;;  %v1618_v25 = vmax.f32 %v7256_v33, %v1610_v50  ;;  %v5591_v53 = vld [vmem:[#allocation4 + $0x188] sm:$0xf0]  ;;  %v6834_v33 = vld [vmem:[#allocation4 + $0x2e4] sm:$0xf0]  ;;  %v1565_v50 = vadd.f32 %v7310_v21, %v7223_v6 }
 0x174   :  { %v5669_v8 = vld [vmem:[#allocation4 + $0x220] sm:$0xf] }
 0x175   :  { %v2130_v49 = vmax.f32 %v1617_v40, %v2122_v29  ;;  %v1109_v28 = vmax.f32 %v596_v48, %v1101_v43  ;;  %v5693_v29 = vld [vmem:[#allocation4 + $0x250] sm:$0xf]  ;;  %v547_v48 = vadd.f32 %v7238_v46, %v7223_v6  ;;  %v6830_v46 = vld [vmem:[#allocation4 + $0x2c4] sm:$0xf0] }
 0x176   :  { %v2047_v62 = vpop.f32.mrf.mxu2  ;;  %v2021_v58 = vpop.f32.mrf.mxu0 }
 0x177   :  { %v2061_v0 = vpop.f32.mrf.mxu3  ;;  %v2022_v11 = vadd.f32 %v2021_v58, %v7203_v37  ;;  %v2035_v13 = vpop.f32.mrf.mxu1  ;;  %v2048_v17 = vadd.f32 %v2047_v62, %v7207_v59  ;;  %v6793_v37 = vld [vmem:[#allocation4 + $0x1a4] sm:$0xf]  ;;  %v6791_v58 = vld [vmem:[#allocation4 + $0x194] sm:$0xf]  ;;  %2623 = vmatpush.bf16.msrb.mxu2 %v5530_v38  ;;  %v1563_v38 = vadd.f32 %v7302_v20, %v7223_v6  ;;  %v561_v1 = vadd.f32 %v7240_v55, %v547_v48 }
 0x178   :  { %v5610_v31 = vor.u32 %v6793_v37, %v5607_v39  ;;  %v5594_v37 = vor.u32 %v6789_v27, %v5591_v53  ;;  %v5774_v39 = vor.u32 %v6836_v9, %v5773_v19  ;;  %v575_v20 = vadd.f32 %v7246_v12, %v7233_v41  ;;  %v5741_v12 = vld [vmem:[#allocation4 + $0x2b0] sm:$0xf]  ;;  %v6808_v9 = vld [vmem:[#allocation4 + $0x214] sm:$0xf0]  ;;  %v6819_v48 = vld [vmem:[#allocation4 + $0x274] sm:$0xf] }
 0x179   :  { %v2036_v30 = vadd.f32 %v2035_v13, %v2022_v11  ;;  %v2062_v54 = vadd.f32 %v2061_v0, %v2048_v17  ;;  %v5599_v0 = vld [vmem:[#allocation4 + $0x198] sm:$0xf0]  ;;  %v1577_v21 = vadd.f32 %v7304_v26, %v1563_v38  ;;  %v1591_v55 = vadd.f32 %v7306_v3, %v7233_v41 }
 0x17a   :  { %2635 = vmatpush.bf16.msrb.mxu3 %v5610_v31  ;;  %v5602_v14 = vor.u32 %v6791_v58, %v5599_v0  ;;  %v1052_v31 = vadd.f32 %v7278_v5, %v7223_v6  ;;  %v5749_v58 = vld [vmem:[#allocation4 + $0x2c0] sm:$0xf]  ;;  %v6810_v0 = vld [vmem:[#allocation4 + $0x224] sm:$0xf0]  ;;  %v597_v26 = vmax.f32 %v561_v1, 0.0  ;;  %v589_v27 = vadd.f32 %v7248_v16, %v575_v20 }
 0x17b   :  { %v2126_v22 = vmax.f32 %v2036_v30, 0.0  ;;  %v2123_v11 = vmax.f32 %v2062_v54, 0.0  ;;  %v6816_v30 = vld [vmem:[#allocation4 + $0x254] sm:$0xf0]  ;;  %v5686_v54 = vor.u32 %v6814_v42, %v5685_v56  ;;  %v6826_v16 = vld [vmem:[#allocation4 + $0x2a4] sm:$0xf0] }
 0x17c   :  { %v1066_v5 = vadd.f32 %v7280_v15, %v1052_v31  ;;  %v5653_v42 = vld [vmem:[#allocation4 + $0x200] sm:$0xf] }
 0x17d   :  { %v2134_v23 = vmax.f32 %v1621_v24, %v2126_v22  ;;  %v2131_v32 = vmax.f32 %v1618_v25, %v2123_v11  ;;  %v5694_v24 = vor.u32 %v6816_v30, %v5693_v29  ;;  %v5765_v22 = vld [vmem:[#allocation4 + $0x2e0] sm:$0xf]  ;;  %v1080_v11 = vadd.f32 %v7282_v36, %v7233_v41  ;;  %v5661_v36 = vld [vmem:[#allocation4 + $0x210] sm:$0xf] }
 0x17e   :  { %v2049_v62 = vpop.f32.mrf.mxu2  ;;  %2636 = vmatpush.bf16.msrb.mxu3 %v5602_v14  ;;  %v5766_v43 = vor.u32 %v6834_v33, %v5765_v22  ;;  %v1102_v15 = vmax.f32 %v1066_v5, 0.0  ;;  %v5670_v25 = vor.u32 %v6810_v0, %v5669_v8  ;;  %v1611_v29 = vmax.f32 %v1577_v21, 0.0  ;;  %v5829_v8 = vld [vmem:[#allocation4 + $0x360] sm:$0xf]  ;;  %v6850_v21 = vld [vmem:[#allocation4 + $0x364] sm:$0xf0] }
 0x17f   :  { %v2050_v51 = vadd.f32 %v2049_v62, %v7207_v59  ;;  %v2063_v60 = vpop.f32.mrf.mxu3  ;;  %v7347_v18 = vpack.c.bf16 %v2134_v23, %v2130_v49  ;;  %v1622_v59 = vmax.f32 %v1109_v28, %v1614_v57  ;;  %v5677_v23 = vld [vmem:[#allocation4 + $0x230] sm:$0xf]  ;;  %v6812_v62 = vld [vmem:[#allocation4 + $0x234] sm:$0xf0]  ;;  %v1579_v28 = vadd.f32 %v7312_v2, %v1565_v50 }
 0x180   :  { %v1593_v2 = vadd.f32 %v7316_v63, %v7233_v41  ;;  %v1110_v53 = vmax.f32 %v597_v26, %v1102_v15  ;;  %v1605_v63 = vadd.f32 %v7308_v7, %v1591_v55  ;;  %v5662_v56 = vor.u32 %v6808_v9, %v5661_v36  ;;  %v5703_v15 = vld [vmem:[#allocation4 + $0x268] sm:$0xf0]  ;;  %v6835_v26 = vld [vmem:[#allocation4 + $0x2f4] sm:$0xf]  ;;  %v5775_v9 = vld [vmem:[#allocation4 + $0x2f8] sm:$0xf0] }
 0x181   :  { %v2064_v13 = vadd.f32 %v2063_v60, %v2050_v51  ;;  %2540 = vmatmul.bf16.vlgmr.msra.gmra.mxu0 %v7347_v18  ;;  %v5758_v51 = vor.u32 %v6832_v47, %v5757_v44  ;;  %v1615_v30 = vmax.f32 %v1579_v28, 0.0  ;;  %v598_v7 = vmax.f32 %v589_v27, 0.0  ;;  %v6817_v28 = vld [vmem:[#allocation4 + $0x264] sm:$0xf]  ;;  %v5821_v27 = vld [vmem:[#allocation4 + $0x350] sm:$0xf] }
 0x182   :  { %3033 = vmatpush.bf16.msra.mxu0 %v5710_v35  ;;  %2637 = vmatpush.bf16.msrb.mxu3 %v5594_v37  ;;  %v5678_v35 = vor.u32 %v6812_v62, %v5677_v23  ;;  %v1607_v31 = vadd.f32 %v7320_v61, %v1593_v2  ;;  %v1612_v50 = vmax.f32 %v1605_v63, 0.0  ;;  %v5706_v36 = vor.u32 %v6817_v28, %v5703_v15 }
 0x183   :  { %v2127_v17 = vmax.f32 %v2064_v13, 0.0  ;;  %v5750_v13 = vor.u32 %v6830_v46, %v5749_v58  ;;  %v1623_v44 = vmax.f32 %v1110_v53, %v1615_v30  ;;  %v6815_v30 = vld [vmem:[#allocation4 + $0x254] sm:$0xf] }
 0x185   :  { %v2135_v34 = vmax.f32 %v1622_v59, %v2127_v17  ;;  %v6828_v59 = vld [vmem:[#allocation4 + $0x2b4] sm:$0xf0] }
 0x186   :  { %3034 = vmatpush.bf16.msra.mxu0 %v5702_v52 }
 0x187   :  { %v7351_v40 = vpack.c.bf16 %v2135_v34, %v2131_v32  ;;  %v1094_v32 = vadd.f32 %v7284_v45, %v1080_v11  ;;  %v1619_v45 = vmax.f32 %v7272_v4, %v1611_v29  ;;  %v1616_v4 = vmax.f32 %v1607_v31, 0.0  ;;  %v6848_v29 = vld [vmem:[#allocation4 + $0x354] sm:$0xf0]  ;;  %v6846_v31 = vld [vmem:[#allocation4 + $0x344] sm:$0xf0] }
 0x189   :  { %2554 = vmatmul.bf16.vlgmr.msra.gmra.mxu1 %v7351_v40  ;;  %v1103_v23 = vmax.f32 %v1094_v32, 0.0 }
 0x18a   :  { %3047 = vmatpush.bf16.msra.mxu1 %v5774_v39  ;;  %3035 = vmatpush.bf16.msra.mxu0 %v5694_v24  ;;  %v5742_v39 = vor.u32 %v6828_v59, %v5741_v12  ;;  %v5733_v24 = vld [vmem:[#allocation4 + $0x2a0] sm:$0xf]  ;;  %v1620_v12 = vmax.f32 %v7276_v10, %v1612_v50  ;;  %v6868_v59 = vld [vmem:[#allocation4 + $0x3f4] sm:$0xf0]  ;;  %v5805_v50 = vld [vmem:[#allocation4 + $0x330] sm:$0xf] }
 0x18b   :  { %v5734_v38 = vor.u32 %v6826_v16, %v5733_v24  ;;  %v1111_v11 = vmax.f32 %v598_v7, %v1103_v23  ;;  %v6866_v24 = vld [vmem:[#allocation4 + $0x3e4] sm:$0xf0]  ;;  %v5767_v16 = vld [vmem:[#allocation4 + $0x2e8] sm:$0xf0]  ;;  %v6831_v7 = vld [vmem:[#allocation4 + $0x2d4] sm:$0xf] }
 0x18c   :  { %v5759_v23 = vld [vmem:[#allocation4 + $0x2d8] sm:$0xf0] }
 0x18d   :  { %v1624_v2 = vmax.f32 %v1111_v11, %v1616_v4  ;;  %v6829_v4 = vld [vmem:[#allocation4 + $0x2c4] sm:$0xf]  ;;  %v5869_v11 = vld [vmem:[#allocation4 + $0x3b0] sm:$0xf] }
 0x18e   :  { %v2075_v49 = vpop.f32.mrf.mxu0  ;;  %3048 = vmatpush.bf16.msra.mxu1 %v5766_v43  ;;  %3036 = vmatpush.bf16.msra.mxu0 %v5686_v54  ;;  %v5837_v43 = vld [vmem:[#allocation4 + $0x370] sm:$0xf]  ;;  %v6852_v54 = vld [vmem:[#allocation4 + $0x374] sm:$0xf0] }
 0x18f   :  { %v2089_v57 = vpop.f32.mrf.mxu1  ;;  %v2076_v60 = vadd.f32 %v2075_v49, %v7223_v6  ;;  %v5711_v49 = vld [vmem:[#allocation4 + $0x278] sm:$0xf0]  ;;  %v5838_v46 = vor.u32 %v6852_v54, %v5837_v43  ;;  %v5687_v43 = vld [vmem:[#allocation4 + $0x248] sm:$0xf0] }
 0x190   :  { %v5714_v1 = vor.u32 %v6819_v48, %v5711_v49  ;;  %v6864_v49 = vld [vmem:[#allocation4 + $0x3d4] sm:$0xf0] }
 0x191   :  { %2596 = vmatmul.bf16.vlgmr.msrb.gmra.mxu0 %v7347_v18  ;;  %v2090_v14 = vadd.f32 %v2089_v57, %v2076_v60  ;;  %v5725_v60 = vld [vmem:[#allocation4 + $0x290] sm:$0xf] }
 0x192   :  { %3049 = vmatpush.bf16.msra.mxu1 %v5758_v51  ;;  %3037 = vmatpush.bf16.msra.mxu0 %v5678_v35  ;;  %v6824_v35 = vld [vmem:[#allocation4 + $0x294] sm:$0xf0] }
 0x193   :  { %v2124_v22 = vmax.f32 %v2090_v14, 0.0  ;;  %v5726_v14 = vor.u32 %v6824_v35, %v5725_v60  ;;  %v6862_v35 = vld [vmem:[#allocation4 + $0x3c4] sm:$0xf0] }
 0x195   :  { %v2132_v57 = vmax.f32 %v1619_v45, %v2124_v22  ;;  %v5822_v22 = vor.u32 %v6848_v29, %v5821_v27  ;;  %v6825_v27 = vld [vmem:[#allocation4 + $0x2a4] sm:$0xf]  ;;  %v5735_v29 = vld [vmem:[#allocation4 + $0x2a8] sm:$0xf0] }
 0x196   :  { %v2103_v19 = vpop.f32.mrf.mxu2  ;;  %v2077_v52 = vpop.f32.mrf.mxu0  ;;  %3050 = vmatpush.bf16.msra.mxu1 %v5750_v13  ;;  %3038 = vmatpush.bf16.msra.mxu0 %v5670_v25  ;;  %v6822_v25 = vld [vmem:[#allocation4 + $0x284] sm:$0xf0] }
 0x197   :  { %v2117_v17 = vpop.f32.mrf.mxu3  ;;  %v2078_v3 = vadd.f32 %v2077_v52, %v7223_v6  ;;  %v2104_v34 = vadd.f32 %v2103_v19, %v7233_v41  ;;  %v2091_v37 = vpop.f32.mrf.mxu1  ;;  %v6806_v6 = vld [vmem:[#allocation4 + $0x204] sm:$0xf0]  ;;  %v5717_v19 = vld [vmem:[#allocation4 + $0x280] sm:$0xf]  ;;  %v5830_v52 = vor.u32 %v6850_v21, %v5829_v8  ;;  %v5671_v8 = vld [vmem:[#allocation4 + $0x228] sm:$0xf0] }
 0x198   :  { %v5654_v51 = vor.u32 %v6806_v6, %v5653_v42  ;;  %v5718_v10 = vor.u32 %v6822_v25, %v5717_v19  ;;  %v5813_v42 = vld [vmem:[#allocation4 + $0x340] sm:$0xf]  ;;  %v6813_v6 = vld [vmem:[#allocation4 + $0x244] sm:$0xf]  ;;  %v6842_v21 = vld [vmem:[#allocation4 + $0x324] sm:$0xf0] }
 0x199   :  { %v2092_v33 = vadd.f32 %v2091_v37, %v2078_v3  ;;  %2610 = vmatmul.bf16.vlgmr.msrb.gmra.mxu1 %v7351_v40  ;;  %v2118_v62 = vadd.f32 %v2117_v17, %v2104_v34  ;;  %v5695_v3 = vld [vmem:[#allocation4 + $0x258] sm:$0xf0]  ;;  %v5778_v37 = vor.u32 %v6835_v26, %v5775_v9  ;;  %v5690_v48 = vor.u32 %v6813_v6, %v5687_v43  ;;  %v6840_v26 = vld [vmem:[#allocation4 + $0x314] sm:$0xf0]  ;;  %v6858_v9 = vld [vmem:[#allocation4 + $0x3a4] sm:$0xf0] }
 0x19a   :  { %3051 = vmatpush.bf16.msra.mxu1 %v5742_v39  ;;  %3039 = vmatpush.bf16.msra.mxu0 %v5662_v56  ;;  %v5893_v39 = vld [vmem:[#allocation4 + $0x3e0] sm:$0xf]  ;;  %v6833_v56 = vld [vmem:[#allocation4 + $0x2e4] sm:$0xf]  ;;  %v5743_v19 = vld [vmem:[#allocation4 + $0x2b8] sm:$0xf0] }
 0x19b   :  { %v2128_v47 = vmax.f32 %v2092_v33, 0.0  ;;  %v2125_v13 = vmax.f32 %v2118_v62, 0.0  ;;  %v5698_v33 = vor.u32 %v6815_v30, %v5695_v3  ;;  %v5894_v54 = vor.u32 %v6866_v24, %v5893_v39  ;;  %v6811_v62 = vld [vmem:[#allocation4 + $0x234] sm:$0xf]  ;;  %v5781_v3 = vld [vmem:[#allocation4 + $0x300] sm:$0xf] }
 0x19c   :  { %v5770_v45 = vor.u32 %v6833_v56, %v5767_v16  ;;  %v5738_v24 = vor.u32 %v6825_v27, %v5735_v29  ;;  %v5853_v56 = vld [vmem:[#allocation4 + $0x390] sm:$0xf]  ;;  %v5727_v6 = vld [vmem:[#allocation4 + $0x298] sm:$0xf0]  ;;  %v6896_v29 = vld [vmem:[#allocation4 + $0x4d4] sm:$0xf0] }
 0x19d   :  { %v2136_v5 = vmax.f32 %v1623_v44, %v2128_v47  ;;  %v2133_v53 = vmax.f32 %v1620_v12, %v2125_v13  ;;  %v5885_v44 = vld [vmem:[#allocation4 + $0x3d0] sm:$0xf]  ;;  %v5814_v47 = vor.u32 %v6846_v31, %v5813_v42  ;;  %v6807_v12 = vld [vmem:[#allocation4 + $0x214] sm:$0xf]  ;;  %v6856_v42 = vld [vmem:[#allocation4 + $0x394] sm:$0xf0] }
 0x19e   :  { %v2105_v61 = vpop.f32.mrf.mxu2  ;;  %3052 = vmatpush.bf16.msra.mxu1 %v5734_v38  ;;  %3040 = vmatpush.bf16.msra.mxu0 %v5654_v51  ;;  %v5679_v38 = vld [vmem:[#allocation4 + $0x238] sm:$0xf0]  ;;  %v5877_v51 = vld [vmem:[#allocation4 + $0x3c0] sm:$0xf]  ;;  %v6823_v31 = vld [vmem:[#allocation4 + $0x294] sm:$0xf] }
 0x19f   :  { %v2106_v58 = vadd.f32 %v2105_v61, %v7233_v41  ;;  %v7385_v0 = vpack.c.bf16 %v2136_v5, %v2132_v57  ;;  %v2119_v20 = vpop.f32.mrf.mxu3  ;;  %v5901_v41 = vld [vmem:[#allocation4 + $0x3f0] sm:$0xf]  ;;  %v6844_v57 = vld [vmem:[#allocation4 + $0x334] sm:$0xf0]  ;;  %v5886_v5 = vor.u32 %v6864_v49, %v5885_v44  ;;  %v5762_v61 = vor.u32 %v6831_v7, %v5759_v23  ;;  %v6849_v44 = vld [vmem:[#allocation4 + $0x364] sm:$0xf] }
 0x1a0   :  { %v5902_v34 = vor.u32 %v6868_v59, %v5901_v41  ;;  %v5682_v60 = vor.u32 %v6811_v62, %v5679_v38  ;;  %v5878_v28 = vor.u32 %v6862_v35, %v5877_v51  ;;  %v5663_v41 = vld [vmem:[#allocation4 + $0x218] sm:$0xf0]  ;;  %v5789_v59 = vld [vmem:[#allocation4 + $0x310] sm:$0xf]  ;;  %v5854_v49 = vor.u32 %v6856_v42, %v5853_v56  ;;  %v5831_v23 = vld [vmem:[#allocation4 + $0x368] sm:$0xf0] }
 0x1a1   :  { %v2120_v55 = vadd.f32 %v2119_v20, %v2106_v58  ;;  %2568 = vmatmul.bf16.vlgmr.msra.gmra.mxu2 %v7385_v0  ;;  %3041 = vmatmul.bf16.vlgmr.msra.gmra.mxu0 %v7347_v18  ;;  %v5751_v58 = vld [vmem:[#allocation4 + $0x2c8] sm:$0xf0]  ;;  %v5797_v20 = vld [vmem:[#allocation4 + $0x320] sm:$0xf]  ;;  %v5790_v30 = vor.u32 %v6840_v26, %v5789_v59  ;;  %v5730_v7 = vor.u32 %v6823_v31, %v5727_v6  ;;  %v6854_v38 = vld [vmem:[#allocation4 + $0x384] sm:$0xf0] }
 0x1a2   :  { %3061 = vmatpush.bf16.msra.mxu2 %v5838_v46  ;;  %3089 = vmatpush.bf16.msrb.mxu0 %v5714_v1  ;;  %v5806_v46 = vor.u32 %v6844_v57, %v5805_v50  ;;  %v6809_v1 = vld [vmem:[#allocation4 + $0x224] sm:$0xf]  ;;  %v5754_v15 = vor.u32 %v6829_v4, %v5751_v58  ;;  %v5798_v25 = vor.u32 %v6842_v21, %v5797_v20  ;;  %v5845_v62 = vld [vmem:[#allocation4 + $0x380] sm:$0xf]  ;;  %v5719_v57 = vld [vmem:[#allocation4 + $0x288] sm:$0xf0] }
 0x1a3   :  { %v2129_v17 = vmax.f32 %v2120_v55, 0.0  ;;  %3053 = vmatpush.bf16.msra.mxu1 %v5726_v14  ;;  %v5674_v13 = vor.u32 %v6809_v1, %v5671_v8  ;;  %v6860_v55 = vld [vmem:[#allocation4 + $0x3b4] sm:$0xf0]  ;;  %v6827_v14 = vld [vmem:[#allocation4 + $0x2b4] sm:$0xf]  ;;  %v5834_v4 = vor.u32 %v6849_v44, %v5831_v23  ;;  %v5846_v1 = vor.u32 %v6854_v38, %v5845_v62 }
 0x1a4   :  { %v6821_v50 = vld [vmem:[#allocation4 + $0x284] sm:$0xf]  ;;  %v5903_v51 = vld [vmem:[#allocation4 + $0x3f8] sm:$0xf0]  ;;  %v6900_v35 = vld [vmem:[#allocation4 + $0x4f4] sm:$0xf0] }
 0x1a5   :  { %v2137_v32 = vmax.f32 %v1624_v2, %v2129_v17  ;;  %v5870_v2 = vor.u32 %v6860_v55, %v5869_v11  ;;  %v5746_v17 = vor.u32 %v6827_v14, %v5743_v19  ;;  %v5949_v58 = vld [vmem:[#allocation4 + $0x450] sm:$0xf]  ;;  %v5722_v8 = vor.u32 %v6821_v50, %v5719_v57  ;;  %v6847_v20 = vld [vmem:[#allocation4 + $0x354] sm:$0xf]  ;;  %v5823_v21 = vld [vmem:[#allocation4 + $0x358] sm:$0xf0] }
 0x1a6   :  { %3062 = vmatpush.bf16.msra.mxu2 %v5830_v52  ;;  %3090 = vmatpush.bf16.msrb.mxu0 %v5706_v36  ;;  %v5861_v52 = vld [vmem:[#allocation4 + $0x3a0] sm:$0xf]  ;;  %v5666_v36 = vor.u32 %v6807_v12, %v5663_v41  ;;  %v6865_v11 = vld [vmem:[#allocation4 + $0x3e4] sm:$0xf]  ;;  %v5895_v55 = vld [vmem:[#allocation4 + $0x3e8] sm:$0xf0] }
 0x1a7   :  { %v7390_v63 = vpack.c.bf16 %v2137_v32, %v2133_v53  ;;  %3054 = vmatpush.bf16.msra.mxu1 %v5718_v10  ;;  %v6805_v53 = vld [vmem:[#allocation4 + $0x204] sm:$0xf]  ;;  %v5655_v32 = vld [vmem:[#allocation4 + $0x208] sm:$0xf0]  ;;  %v6838_v10 = vld [vmem:[#allocation4 + $0x304] sm:$0xf0]  ;;  %v5862_v39 = vor.u32 %v6858_v9, %v5861_v52 }
 0x1a8   :  { %v5658_v16 = vor.u32 %v6805_v53, %v5655_v32  ;;  %v5782_v43 = vor.u32 %v6838_v10, %v5781_v3  ;;  %v6021_v14 = vld [vmem:[#allocation4 + $0x4e0] sm:$0xf]  ;;  %v6898_v19 = vld [vmem:[#allocation4 + $0x4e4] sm:$0xf0]  ;;  %v6845_v59 = vld [vmem:[#allocation4 + $0x344] sm:$0xf] }
 0x1a9   :  { %2582 = vmatmul.bf16.vlgmr.msra.gmra.mxu3 %v7390_v63  ;;  %v5941_v12 = vld [vmem:[#allocation4 + $0x440] sm:$0xf]  ;;  %v6878_v41 = vld [vmem:[#allocation4 + $0x444] sm:$0xf0]  ;;  %v5815_v26 = vld [vmem:[#allocation4 + $0x348] sm:$0xf0] }
 0x1aa   :  { %3075 = vmatpush.bf16.msra.mxu3 %v5902_v34  ;;  %3063 = vmatpush.bf16.msra.mxu2 %v5822_v22  ;;  %v5965_v34 = vld [vmem:[#allocation4 + $0x470] sm:$0xf]  ;;  %v6851_v22 = vld [vmem:[#allocation4 + $0x374] sm:$0xf]  ;;  %v5887_v9 = vld [vmem:[#allocation4 + $0x3d8] sm:$0xf0] }
 0x1ab   :  { %3103 = vmatpush.bf16.msrb.mxu1 %v5778_v37  ;;  %3091 = vmatpush.bf16.msrb.mxu0 %v5698_v33  ;;  %v6884_v37 = vld [vmem:[#allocation4 + $0x474] sm:$0xf0]  ;;  %v5839_v33 = vld [vmem:[#allocation4 + $0x378] sm:$0xf0]  ;;  %v6863_v52 = vld [vmem:[#allocation4 + $0x3d4] sm:$0xf] }
 0x1ac   :  { %3055 = vmatmul.bf16.vlgmr.msra.gmra.mxu1 %v7351_v40  ;;  %v6013_v27 = vld [vmem:[#allocation4 + $0x4d0] sm:$0xf]  ;;  %v6876_v53 = vld [vmem:[#allocation4 + $0x434] sm:$0xf0]  ;;  %v6843_v32 = vld [vmem:[#allocation4 + $0x334] sm:$0xf] }
 0x1ad   :  { %v5933_v3 = vld [vmem:[#allocation4 + $0x430] sm:$0xf]  ;;  %v5807_v10 = vld [vmem:[#allocation4 + $0x338] sm:$0xf0]  ;;  %v6894_v56 = vld [vmem:[#allocation4 + $0x4c4] sm:$0xf0] }
 0x1ae   :  { %3076 = vmatpush.bf16.msra.mxu3 %v5894_v54  ;;  %3064 = vmatpush.bf16.msra.mxu2 %v5814_v47  ;;  %v5966_v54 = vor.u32 %v6884_v37, %v5965_v34  ;;  %v5957_v47 = vld [vmem:[#allocation4 + $0x460] sm:$0xf]  ;;  %v5890_v34 = vor.u32 %v6863_v52, %v5887_v9  ;;  %v6014_v37 = vor.u32 %v6896_v29, %v6013_v27  ;;  %v6874_v31 = vld [vmem:[#allocation4 + $0x424] sm:$0xf0]  ;;  %v6841_v6 = vld [vmem:[#allocation4 + $0x324] sm:$0xf] }
 0x1af   :  { %3104 = vmatpush.bf16.msrb.mxu1 %v5770_v45  ;;  %3092 = vmatpush.bf16.msrb.mxu0 %v5690_v48  ;;  %v5842_v45 = vor.u32 %v6851_v22, %v5839_v33  ;;  %v6882_v48 = vld [vmem:[#allocation4 + $0x464] sm:$0xf0]  ;;  %v5879_v22 = vld [vmem:[#allocation4 + $0x3c8] sm:$0xf0]  ;;  %v6005_v33 = vld [vmem:[#allocation4 + $0x4c0] sm:$0xf] }
 0x1b0   :  { %v5925_v42 = vld [vmem:[#allocation4 + $0x420] sm:$0xf]  ;;  %v6859_v44 = vld [vmem:[#allocation4 + $0x3b4] sm:$0xf]  ;;  %v5917_v62 = vld [vmem:[#allocation4 + $0x410] sm:$0xf] }
 0x1b1   :  { %2624 = vmatmul.bf16.vlgmr.msrb.gmra.mxu2 %v7385_v0  ;;  %v6872_v38 = vld [vmem:[#allocation4 + $0x414] sm:$0xf0]  ;;  %v6839_v50 = vld [vmem:[#allocation4 + $0x314] sm:$0xf]  ;;  %v5791_v57 = vld [vmem:[#allocation4 + $0x318] sm:$0xf0] }
 0x1b2   :  { %3077 = vmatpush.bf16.msra.mxu3 %v5886_v5  ;;  %3065 = vmatpush.bf16.msra.mxu2 %v5806_v46  ;;  %v6867_v5 = vld [vmem:[#allocation4 + $0x3f4] sm:$0xf]  ;;  %v6880_v46 = vld [vmem:[#allocation4 + $0x454] sm:$0xf0]  ;;  %v6085_v52 = vld [vmem:[#allocation4 + $0x560] sm:$0xf] }
 0x1b3   :  { %3105 = vmatpush.bf16.msrb.mxu1 %v5762_v61  ;;  %3093 = vmatpush.bf16.msrb.mxu0 %v5682_v60  ;;  %v5958_v61 = vor.u32 %v6882_v48, %v5957_v47  ;;  %v6029_v60 = vld [vmem:[#allocation4 + $0x4f0] sm:$0xf]  ;;  %v5926_v47 = vor.u32 %v6874_v31, %v5925_v42  ;;  %v5871_v48 = vld [vmem:[#allocation4 + $0x3b8] sm:$0xf0]  ;;  %v5959_v9 = vld [vmem:[#allocation4 + $0x468] sm:$0xf0] }
 0x1b6   :  { %3078 = vmatpush.bf16.msra.mxu3 %v5878_v28  ;;  %3066 = vmatpush.bf16.msra.mxu2 %v5798_v25  ;;  %v5906_v28 = vor.u32 %v6867_v5, %v5903_v51  ;;  %v5826_v25 = vor.u32 %v6847_v20, %v5823_v21  ;;  %v5874_v5 = vor.u32 %v6859_v44, %v5871_v48  ;;  %v6857_v51 = vld [vmem:[#allocation4 + $0x3a4] sm:$0xf]  ;;  %v6870_v20 = vld [vmem:[#allocation4 + $0x404] sm:$0xf0]  ;;  %v5783_v21 = vld [vmem:[#allocation4 + $0x308] sm:$0xf0] }
 0x1b7   :  { %3106 = vmatpush.bf16.msrb.mxu1 %v5754_v15  ;;  %3094 = vmatpush.bf16.msrb.mxu0 %v5674_v13  ;;  %v6030_v15 = vor.u32 %v6900_v35, %v6029_v60  ;;  %v5950_v13 = vor.u32 %v6880_v46, %v5949_v58  ;;  %v5918_v60 = vor.u32 %v6872_v38, %v5917_v62  ;;  %v5863_v35 = vld [vmem:[#allocation4 + $0x3a8] sm:$0xf0]  ;;  %v6890_v58 = vld [vmem:[#allocation4 + $0x4a4] sm:$0xf0]  ;;  %v6149_v44 = vld [vmem:[#allocation4 + $0x5e0] sm:$0xf] }
 0x1b8   :  { %v5794_v46 = vor.u32 %v6839_v50, %v5791_v57  ;;  %v6930_v48 = vld [vmem:[#allocation4 + $0x5e4] sm:$0xf0]  ;;  %v5943_v62 = vld [vmem:[#allocation4 + $0x448] sm:$0xf0] }
 0x1b9   :  { %2638 = vmatmul.bf16.vlgmr.msrb.gmra.mxu3 %v7390_v63  ;;  %v6150_v50 = vor.u32 %v6930_v48, %v6149_v44  ;;  %v6037_v44 = vld [vmem:[#allocation4 + $0x500] sm:$0xf]  ;;  %v6915_v48 = vld [vmem:[#allocation4 + $0x574] sm:$0xf] }
 0x1ba   :  { %3079 = vmatpush.bf16.msra.mxu3 %v5870_v2  ;;  %3067 = vmatpush.bf16.msra.mxu2 %v5790_v30  ;;  %v5898_v2 = vor.u32 %v6865_v11, %v5895_v55  ;;  %v5818_v30 = vor.u32 %v6845_v59, %v5815_v26  ;;  %v5866_v11 = vor.u32 %v6857_v51, %v5863_v35  ;;  %v6093_v55 = vld [vmem:[#allocation4 + $0x570] sm:$0xf]  ;;  %v6888_v59 = vld [vmem:[#allocation4 + $0x494] sm:$0xf0] }
 0x1bb   :  { %3107 = vmatpush.bf16.msrb.mxu1 %v5746_v17  ;;  %3095 = vmatpush.bf16.msrb.mxu0 %v5666_v36  ;;  %v6022_v17 = vor.u32 %v6898_v19, %v6021_v14  ;;  %v5942_v36 = vor.u32 %v6878_v41, %v5941_v12  ;;  %v6916_v14 = vld [vmem:[#allocation4 + $0x574] sm:$0xf0]  ;;  %v6855_v19 = vld [vmem:[#allocation4 + $0x394] sm:$0xf]  ;;  %v5855_v12 = vld [vmem:[#allocation4 + $0x398] sm:$0xf0] }
 0x1bc   :  { %v5981_v41 = vld [vmem:[#allocation4 + $0x490] sm:$0xf]  ;;  %v5858_v27 = vor.u32 %v6855_v19, %v5855_v12  ;;  %v6928_v35 = vld [vmem:[#allocation4 + $0x5d4] sm:$0xf0]  ;;  %v6007_v19 = vld [vmem:[#allocation4 + $0x4c8] sm:$0xf0] }
 0x1bd   :  { %v5982_v29 = vor.u32 %v6888_v59, %v5981_v41  ;;  %v6141_v51 = vld [vmem:[#allocation4 + $0x5d0] sm:$0xf]  ;;  %v5927_v12 = vld [vmem:[#allocation4 + $0x428] sm:$0xf0] }
 0x1be   :  { %3080 = vmatpush.bf16.msra.mxu3 %v5862_v39  ;;  %3068 = vmatpush.bf16.msra.mxu2 %v5782_v43  ;;  %v6861_v39 = vld [vmem:[#allocation4 + $0x3c4] sm:$0xf]  ;;  %v5799_v43 = vld [vmem:[#allocation4 + $0x328] sm:$0xf0] }
 0x1bf   :  { %3108 = vmatpush.bf16.msrb.mxu1 %v5738_v24  ;;  %3096 = vmatpush.bf16.msrb.mxu0 %v5658_v16  ;;  %v5934_v24 = vor.u32 %v6876_v53, %v5933_v3  ;;  %v5810_v16 = vor.u32 %v6843_v32, %v5807_v10  ;;  %v5802_v23 = vor.u32 %v6841_v6, %v5799_v43  ;;  %v6853_v3 = vld [vmem:[#allocation4 + $0x384] sm:$0xf]  ;;  %v5847_v53 = vld [vmem:[#allocation4 + $0x388] sm:$0xf0]  ;;  %v5973_v32 = vld [vmem:[#allocation4 + $0x480] sm:$0xf] }
 0x1c0   :  { %v6886_v10 = vld [vmem:[#allocation4 + $0x484] sm:$0xf0]  ;;  %v5850_v42 = vor.u32 %v6853_v3, %v5847_v53  ;;  %v5919_v3 = vld [vmem:[#allocation4 + $0x418] sm:$0xf0] }
 0x1c1   :  { %3069 = vmatmul.bf16.vlgmr.msra.gmra.mxu2 %v7385_v0  ;;  %v5974_v31 = vor.u32 %v6886_v10, %v5973_v32 }
 0x1c2   :  { %3117 = vmatpush.bf16.msrb.mxu2 %v5842_v45  ;;  %3081 = vmatpush.bf16.msra.mxu3 %v5854_v49  ;;  %v6006_v45 = vor.u32 %v6894_v56, %v6005_v33  ;;  %v5997_v49 = vld [vmem:[#allocation4 + $0x4b0] sm:$0xf]  ;;  %v6879_v56 = vld [vmem:[#allocation4 + $0x454] sm:$0xf] }
 0x1c3   :  { %3538 = vmatpush.bf16.msra.mxu0 %v5966_v54  ;;  %3109 = vmatpush.bf16.msrb.mxu1 %v5730_v7  ;;  %v5882_v54 = vor.u32 %v6861_v39, %v5879_v22  ;;  %v6892_v7 = vld [vmem:[#allocation4 + $0x4b4] sm:$0xf0]  ;;  %v6031_v22 = vld [vmem:[#allocation4 + $0x4f8] sm:$0xf0] }
 0x1c4   :  { %3097 = vmatmul.bf16.vlgmr.msrb.gmra.mxu0 %v7347_v18  ;;  %v6932_v39 = vld [vmem:[#allocation4 + $0x5f4] sm:$0xf0] }
 0x1c6   :  { %3118 = vmatpush.bf16.msrb.mxu2 %v5834_v4  ;;  %3082 = vmatpush.bf16.msra.mxu3 %v5846_v1  ;;  %v5989_v4 = vld [vmem:[#allocation4 + $0x4a0] sm:$0xf]  ;;  %v6837_v1 = vld [vmem:[#allocation4 + $0x304] sm:$0xf] }
 0x1c7   :  { %3539 = vmatpush.bf16.msra.mxu0 %v5958_v61  ;;  %3110 = vmatpush.bf16.msrb.mxu1 %v5722_v8  ;;  %v5998_v61 = vor.u32 %v6892_v7, %v5997_v49  ;;  %v5909_v8 = vld [vmem:[#allocation4 + $0x400] sm:$0xf]  ;;  %v5786_v26 = vor.u32 %v6837_v1, %v5783_v21  ;;  %v6897_v49 = vld [vmem:[#allocation4 + $0x4e4] sm:$0xf]  ;;  %v6023_v7 = vld [vmem:[#allocation4 + $0x4e8] sm:$0xf0] }
 0x1c8   :  { %v6026_v57 = vor.u32 %v6897_v49, %v6023_v7  ;;  %v5935_v1 = vld [vmem:[#allocation4 + $0x438] sm:$0xf0] }
 0x1c9   :  { %3083 = vmatmul.bf16.vlgmr.msra.gmra.mxu3 %v7390_v63  ;;  %v6095_v7 = vld [vmem:[#allocation4 + $0x578] sm:$0xf0] }
 0x1ca   :  { %3131 = vmatpush.bf16.msrb.mxu3 %v5906_v28  ;;  %3111 = vmatmul.bf16.vlgmr.msrb.gmra.mxu1 %v7351_v40  ;;  %v6883_v28 = vld [vmem:[#allocation4 + $0x474] sm:$0xf] }
 0x1cb   :  { %3552 = vmatpush.bf16.msra.mxu1 %v6030_v15  ;;  %3540 = vmatpush.bf16.msra.mxu0 %v5950_v13  ;;  %v5967_v15 = vld [vmem:[#allocation4 + $0x478] sm:$0xf0]  ;;  %v5990_v13 = vor.u32 %v6890_v58, %v5989_v4  ;;  %v6895_v4 = vld [vmem:[#allocation4 + $0x4d4] sm:$0xf] }
 0x1cc   :  { %3119 = vmatpush.bf16.msrb.mxu2 %v5826_v25  ;;  %v5910_v25 = vor.u32 %v6870_v20, %v5909_v8  ;;  %v6015_v58 = vld [vmem:[#allocation4 + $0x4d8] sm:$0xf0]  ;;  %v6142_v20 = vor.u32 %v6928_v35, %v6141_v51  ;;  %v6946_v51 = vld [vmem:[#allocation4 + $0x664] sm:$0xf0] }
 0x1cd   :  { %v6018_v21 = vor.u32 %v6895_v4, %v6015_v58  ;;  %v6913_v4 = vld [vmem:[#allocation4 + $0x564] sm:$0xf]  ;;  %v6087_v58 = vld [vmem:[#allocation4 + $0x568] sm:$0xf0] }
 0x1ce   :  { %3132 = vmatpush.bf16.msrb.mxu3 %v5898_v2  ;;  %v5970_v2 = vor.u32 %v6883_v28, %v5967_v15  ;;  %v6061_v28 = vld [vmem:[#allocation4 + $0x530] sm:$0xf]  ;;  %v6908_v15 = vld [vmem:[#allocation4 + $0x534] sm:$0xf0] }
 0x1cf   :  { %3553 = vmatpush.bf16.msra.mxu1 %v6022_v17  ;;  %3541 = vmatpush.bf16.msra.mxu0 %v5942_v36  ;;  %v6094_v17 = vor.u32 %v6916_v14, %v6093_v55  ;;  %v6881_v36 = vld [vmem:[#allocation4 + $0x464] sm:$0xf]  ;;  %v6926_v55 = vld [vmem:[#allocation4 + $0x5c4] sm:$0xf0]  ;;  %v6062_v41 = vor.u32 %v6908_v15, %v6061_v28  ;;  %v6931_v15 = vld [vmem:[#allocation4 + $0x5f4] sm:$0xf] }
 0x1d0   :  { %3120 = vmatpush.bf16.msrb.mxu2 %v5818_v30  ;;  %v6914_v30 = vld [vmem:[#allocation4 + $0x564] sm:$0xf0]  ;;  %v6893_v14 = vld [vmem:[#allocation4 + $0x4c4] sm:$0xf] }
 0x1d1   :  { %v6086_v33 = vor.u32 %v6914_v30, %v6085_v52  ;;  %v6125_v52 = vld [vmem:[#allocation4 + $0x5b0] sm:$0xf]  ;;  %v6871_v30 = vld [vmem:[#allocation4 + $0x414] sm:$0xf] }
 0x1d2   :  { %3133 = vmatpush.bf16.msrb.mxu3 %v5890_v34  ;;  %v6157_v34 = vld [vmem:[#allocation4 + $0x5f0] sm:$0xf] }
 0x1d3   :  { %3554 = vmatpush.bf16.msra.mxu1 %v6014_v37  ;;  %3542 = vmatpush.bf16.msra.mxu0 %v5934_v24  ;;  %v5962_v37 = vor.u32 %v6881_v36, %v5959_v9  ;;  %v6899_v24 = vld [vmem:[#allocation4 + $0x4f4] sm:$0xf]  ;;  %v6158_v6 = vor.u32 %v6932_v39, %v6157_v34  ;;  %v6924_v9 = vld [vmem:[#allocation4 + $0x5b4] sm:$0xf0]  ;;  %v6045_v34 = vld [vmem:[#allocation4 + $0x510] sm:$0xf] }
 0x1d4   :  { %3121 = vmatpush.bf16.msrb.mxu2 %v5810_v16  ;;  %v5951_v16 = vld [vmem:[#allocation4 + $0x458] sm:$0xf0]  ;;  %v6034_v43 = vor.u32 %v6899_v24, %v6031_v22  ;;  %v6126_v32 = vor.u32 %v6924_v9, %v6125_v52  ;;  %v6117_v39 = vld [vmem:[#allocation4 + $0x5a0] sm:$0xf]  ;;  %v5922_v24 = vor.u32 %v6871_v30, %v5919_v3  ;;  %v6922_v22 = vld [vmem:[#allocation4 + $0x5a4] sm:$0xf0] }
 0x1d5   :  { %v6151_v9 = vld [vmem:[#allocation4 + $0x5e8] sm:$0xf0]  ;;  %v6197_v30 = vld [vmem:[#allocation4 + $0x640] sm:$0xf]  ;;  %v6942_v3 = vld [vmem:[#allocation4 + $0x644] sm:$0xf0] }
 0x1d6   :  { %3134 = vmatpush.bf16.msrb.mxu3 %v5882_v54  ;;  %v6077_v54 = vld [vmem:[#allocation4 + $0x550] sm:$0xf] }
 0x1d7   :  { %3555 = vmatpush.bf16.msra.mxu1 %v6006_v45  ;;  %3543 = vmatpush.bf16.msra.mxu0 %v5926_v47  ;;  %v6912_v45 = vld [vmem:[#allocation4 + $0x554] sm:$0xf0]  ;;  %v5954_v47 = vor.u32 %v6879_v56, %v5951_v16  ;;  %v5991_v56 = vld [vmem:[#allocation4 + $0x4a8] sm:$0xf0]  ;;  %v6869_v16 = vld [vmem:[#allocation4 + $0x404] sm:$0xf] }
 0x1d8   :  { %3122 = vmatpush.bf16.msrb.mxu2 %v5802_v23  ;;  %v6877_v23 = vld [vmem:[#allocation4 + $0x444] sm:$0xf]  ;;  %v6078_v38 = vor.u32 %v6912_v45, %v6077_v54  ;;  %v6118_v54 = vor.u32 %v6922_v22, %v6117_v39  ;;  %v6198_v22 = vor.u32 %v6942_v3, %v6197_v30  ;;  %v6223_v30 = vld [vmem:[#allocation4 + $0x678] sm:$0xf0] }
 0x1da   :  { %3135 = vmatpush.bf16.msrb.mxu3 %v5874_v5  ;;  %v6069_v5 = vld [vmem:[#allocation4 + $0x540] sm:$0xf] }
 0x1db   :  { %3556 = vmatpush.bf16.msra.mxu1 %v5998_v61  ;;  %3544 = vmatpush.bf16.msra.mxu0 %v5918_v60  ;;  %v6910_v61 = vld [vmem:[#allocation4 + $0x544] sm:$0xf0]  ;;  %v5946_v60 = vor.u32 %v6877_v23, %v5943_v62  ;;  %v6109_v23 = vld [vmem:[#allocation4 + $0x590] sm:$0xf]  ;;  %v6920_v62 = vld [vmem:[#allocation4 + $0x594] sm:$0xf0] }
 0x1dc   :  { %3123 = vmatpush.bf16.msrb.mxu2 %v5794_v46  ;;  %v6875_v46 = vld [vmem:[#allocation4 + $0x434] sm:$0xf]  ;;  %v6070_v8 = vor.u32 %v6910_v61, %v6069_v5  ;;  %v6213_v61 = vld [vmem:[#allocation4 + $0x660] sm:$0xf]  ;;  %v6110_v35 = vor.u32 %v6920_v62, %v6109_v23  ;;  %v6135_v23 = vld [vmem:[#allocation4 + $0x5c8] sm:$0xf0] }
 0x1dd   :  { %v6214_v28 = vor.u32 %v6946_v51, %v6213_v61  ;;  %v6261_v62 = vld [vmem:[#allocation4 + $0x6c0] sm:$0xf] }
 0x1de   :  { %3136 = vmatpush.bf16.msrb.mxu3 %v5866_v11  ;;  %v6133_v11 = vld [vmem:[#allocation4 + $0x5c0] sm:$0xf] }
 0x1df   :  { %3557 = vmatpush.bf16.msra.mxu1 %v5990_v13  ;;  %3545 = vmatpush.bf16.msra.mxu0 %v5910_v25  ;;  %v5938_v13 = vor.u32 %v6875_v46, %v5935_v1  ;;  %v6873_v25 = vld [vmem:[#allocation4 + $0x424] sm:$0xf]  ;;  %v6134_v59 = vor.u32 %v6926_v55, %v6133_v11  ;;  %v6101_v46 = vld [vmem:[#allocation4 + $0x580] sm:$0xf]  ;;  %v6159_v11 = vld [vmem:[#allocation4 + $0x5f8] sm:$0xf0] }
 0x1e0   :  { %3124 = vmatpush.bf16.msrb.mxu2 %v5786_v26  ;;  %v6010_v26 = vor.u32 %v6893_v14, %v6007_v19  ;;  %v5930_v36 = vor.u32 %v6873_v25, %v5927_v12  ;;  %v6964_v55 = vld [vmem:[#allocation4 + $0x6f4] sm:$0xf0]  ;;  %v6205_v14 = vld [vmem:[#allocation4 + $0x650] sm:$0xf]  ;;  %v6090_v25 = vor.u32 %v6913_v4, %v6087_v58  ;;  %v6055_v4 = vld [vmem:[#allocation4 + $0x528] sm:$0xf0] }
 0x1e1   :  { %v6944_v19 = vld [vmem:[#allocation4 + $0x654] sm:$0xf0] }
 0x1e2   :  { %3137 = vmatpush.bf16.msrb.mxu3 %v5858_v27  ;;  %3546 = vmatmul.bf16.vlgmr.msra.gmra.mxu0 %v7347_v18  ;;  %v6891_v27 = vld [vmem:[#allocation4 + $0x4b4] sm:$0xf]  ;;  %v6206_v52 = vor.u32 %v6944_v19, %v6205_v14 }
 0x1e3   :  { %3594 = vmatpush.bf16.msrb.mxu0 %v5970_v2  ;;  %3558 = vmatpush.bf16.msra.mxu1 %v5982_v29  ;;  %v6053_v2 = vld [vmem:[#allocation4 + $0x520] sm:$0xf]  ;;  %v5999_v29 = vld [vmem:[#allocation4 + $0x4b8] sm:$0xf0]  ;;  %v6903_v19 = vld [vmem:[#allocation4 + $0x514] sm:$0xf] }
 0x1e4   :  { %3566 = vmatpush.bf16.msra.mxu2 %v6094_v17  ;;  %v6906_v17 = vld [vmem:[#allocation4 + $0x524] sm:$0xf0]  ;;  %v6002_v10 = vor.u32 %v6891_v27, %v5999_v29  ;;  %v6277_v27 = vld [vmem:[#allocation4 + $0x6e0] sm:$0xf] }
 0x1e5   :  { %3125 = vmatmul.bf16.vlgmr.msrb.gmra.mxu2 %v7385_v0  ;;  %v6054_v53 = vor.u32 %v6906_v17, %v6053_v2  ;;  %v6079_v2 = vld [vmem:[#allocation4 + $0x558] sm:$0xf0]  ;;  %v6962_v29 = vld [vmem:[#allocation4 + $0x6e4] sm:$0xf0] }
 0x1e6   :  { %3138 = vmatpush.bf16.msrb.mxu3 %v5850_v42  ;;  %v5911_v42 = vld [vmem:[#allocation4 + $0x408] sm:$0xf0] }
 0x1e7   :  { %3595 = vmatpush.bf16.msrb.mxu0 %v5962_v37  ;;  %3559 = vmatpush.bf16.msra.mxu1 %v5974_v31  ;;  %v6904_v37 = vld [vmem:[#allocation4 + $0x514] sm:$0xf0]  ;;  %v5914_v49 = vor.u32 %v6869_v16, %v5911_v42  ;;  %v6269_v16 = vld [vmem:[#allocation4 + $0x6d0] sm:$0xf] }
 0x1e8   :  { %3567 = vmatpush.bf16.msra.mxu2 %v6086_v33  ;;  %v6889_v33 = vld [vmem:[#allocation4 + $0x4a4] sm:$0xf]  ;;  %v6046_v31 = vor.u32 %v6904_v37, %v6045_v34  ;;  %v6071_v37 = vld [vmem:[#allocation4 + $0x548] sm:$0xf0]  ;;  %v6960_v42 = vld [vmem:[#allocation4 + $0x6d4] sm:$0xf0] }
 0x1e9   :  { %3139 = vmatmul.bf16.vlgmr.msrb.gmra.mxu3 %v7390_v63  ;;  %v5994_v45 = vor.u32 %v6889_v33, %v5991_v56  ;;  %v6909_v34 = vld [vmem:[#allocation4 + $0x544] sm:$0xf]  ;;  %v6927_v33 = vld [vmem:[#allocation4 + $0x5d4] sm:$0xf]  ;;  %v6143_v56 = vld [vmem:[#allocation4 + $0x5d8] sm:$0xf0] }
 0x1ea   :  { %3580 = vmatpush.bf16.msra.mxu3 %v6158_v6  ;;  %3560 = vmatmul.bf16.vlgmr.msra.gmra.mxu1 %v7351_v40  ;;  %v6221_v6 = vld [vmem:[#allocation4 + $0x670] sm:$0xf] }
 0x1eb   :  { %3608 = vmatpush.bf16.msrb.mxu1 %v6034_v43  ;;  %3596 = vmatpush.bf16.msrb.mxu0 %v5954_v47  ;;  %v6948_v43 = vld [vmem:[#allocation4 + $0x674] sm:$0xf0]  ;;  %v6902_v47 = vld [vmem:[#allocation4 + $0x504] sm:$0xf0] }
 0x1ec   :  { %3568 = vmatpush.bf16.msra.mxu2 %v6078_v38  ;;  %v6222_v38 = vor.u32 %v6948_v43, %v6221_v6  ;;  %v6038_v5 = vor.u32 %v6902_v47, %v6037_v44  ;;  %v6940_v6 = vld [vmem:[#allocation4 + $0x634] sm:$0xf0]  ;;  %v6907_v44 = vld [vmem:[#allocation4 + $0x534] sm:$0xf]  ;;  %v6063_v47 = vld [vmem:[#allocation4 + $0x538] sm:$0xf0] }
 0x1ed   :  { %v6066_v61 = vor.u32 %v6907_v44, %v6063_v47  ;;  %v6945_v47 = vld [vmem:[#allocation4 + $0x664] sm:$0xf] }
 0x1ee   :  { %3581 = vmatpush.bf16.msra.mxu3 %v6150_v50  ;;  %v6887_v50 = vld [vmem:[#allocation4 + $0x494] sm:$0xf] }
 0x1ef   :  { %3609 = vmatpush.bf16.msrb.mxu1 %v6026_v57  ;;  %3597 = vmatpush.bf16.msrb.mxu0 %v5946_v60  ;;  %v5983_v57 = vld [vmem:[#allocation4 + $0x498] sm:$0xf0]  ;;  %v6098_v60 = vor.u32 %v6915_v48, %v6095_v7  ;;  %v6270_v48 = vor.u32 %v6960_v42, %v6269_v16  ;;  %v6925_v7 = vld [vmem:[#allocation4 + $0x5c4] sm:$0xf]  ;;  %v6919_v16 = vld [vmem:[#allocation4 + $0x594] sm:$0xf] }
 0x1f0   :  { %3569 = vmatpush.bf16.msra.mxu2 %v6070_v8  ;;  %v5986_v1 = vor.u32 %v6887_v50, %v5983_v57  ;;  %v6918_v8 = vld [vmem:[#allocation4 + $0x584] sm:$0xf0]  ;;  %v6181_v50 = vld [vmem:[#allocation4 + $0x620] sm:$0xf]  ;;  %v6111_v42 = vld [vmem:[#allocation4 + $0x598] sm:$0xf0] }
 0x1f1   :  { %v6102_v12 = vor.u32 %v6918_v8, %v6101_v46  ;;  %v6938_v57 = vld [vmem:[#allocation4 + $0x624] sm:$0xf0] }
 0x1f2   :  { %3582 = vmatpush.bf16.msra.mxu3 %v6142_v20  ;;  %v6885_v20 = vld [vmem:[#allocation4 + $0x484] sm:$0xf]  ;;  %v6182_v8 = vor.u32 %v6938_v57, %v6181_v50  ;;  %v6103_v57 = vld [vmem:[#allocation4 + $0x588] sm:$0xf0] }
 0x1f3   :  { %3610 = vmatpush.bf16.msrb.mxu1 %v6018_v21  ;;  %3598 = vmatpush.bf16.msrb.mxu0 %v5938_v13  ;;  %v5975_v21 = vld [vmem:[#allocation4 + $0x488] sm:$0xf0]  ;;  %v6285_v13 = vld [vmem:[#allocation4 + $0x6f0] sm:$0xf] }
 0x1f4   :  { %3570 = vmatpush.bf16.msra.mxu2 %v6062_v41  ;;  %v5978_v41 = vor.u32 %v6885_v20, %v5975_v21  ;;  %v6286_v17 = vor.u32 %v6964_v55, %v6285_v13  ;;  %v6923_v20 = vld [vmem:[#allocation4 + $0x5b4] sm:$0xf]  ;;  %v6127_v21 = vld [vmem:[#allocation4 + $0x5b8] sm:$0xf0]  ;;  %v6936_v13 = vld [vmem:[#allocation4 + $0x614] sm:$0xf0] }
 0x1f5   :  { %v6130_v14 = vor.u32 %v6923_v20, %v6127_v21 }
 0x1f6   :  { %3583 = vmatpush.bf16.msra.mxu3 %v6134_v59  ;;  %v6162_v59 = vor.u32 %v6931_v15, %v6159_v11  ;;  %v6956_v15 = vld [vmem:[#allocation4 + $0x6b4] sm:$0xf0]  ;;  %v6173_v11 = vld [vmem:[#allocation4 + $0x610] sm:$0xf] }
 0x1f7   :  { %3611 = vmatpush.bf16.msrb.mxu1 %v6010_v26  ;;  %3599 = vmatpush.bf16.msrb.mxu0 %v5930_v36  ;;  %v6911_v26 = vld [vmem:[#allocation4 + $0x554] sm:$0xf]  ;;  %v6929_v36 = vld [vmem:[#allocation4 + $0x5e4] sm:$0xf] }
 0x1f8   :  { %3571 = vmatpush.bf16.msra.mxu2 %v6054_v53  ;;  %v6082_v53 = vor.u32 %v6911_v26, %v6079_v2  ;;  %v6119_v26 = vld [vmem:[#allocation4 + $0x5a8] sm:$0xf0]  ;;  %v6245_v2 = vld [vmem:[#allocation4 + $0x6a0] sm:$0xf] }
 0x1fa   :  { %3584 = vmatpush.bf16.msra.mxu3 %v6126_v32  ;;  %v7409_v32 = vld [vmem:[%s7527_s4] sm:$0x3] }
 0x1fb   :  { %3612 = vmatpush.bf16.msrb.mxu1 %v6002_v10  ;;  %3600 = vmatpush.bf16.msrb.mxu0 %v5922_v24  ;;  %v6154_v10 = vor.u32 %v6929_v36, %v6151_v9  ;;  %v6278_v24 = vor.u32 %v6962_v29, %v6277_v27  ;;  %v7414_v43 = vperm.slane %v7409_v32, 0  ;;  %v6934_v36 = vld [vmem:[#allocation4 + $0x604] sm:$0xf0]  ;;  %v6947_v29 = vld [vmem:[#allocation4 + $0x674] sm:$0xf] }
 0x1fc   :  { %3572 = vmatpush.bf16.msra.mxu2 %v6046_v31  ;;  %v6189_v31 = vld [vmem:[#allocation4 + $0x630] sm:$0xf] }
 0x1fe   :  { %3585 = vmatpush.bf16.msra.mxu3 %v6118_v54  ;;  %v2541_v39 = vpop.f32.mrf.mxu0  ;;  %v6074_v54 = vor.u32 %v6909_v34, %v6071_v37  ;;  %v6039_v34 = vld [vmem:[#allocation4 + $0x508] sm:$0xf0]  ;;  %v6349_v37 = vld [vmem:[#allocation4 + $0x770] sm:$0xf] }
 0x1ff   :  { %3613 = vmatpush.bf16.msrb.mxu1 %v5994_v45  ;;  %3601 = vmatpush.bf16.msrb.mxu0 %v5914_v49  ;;  %v6146_v45 = vor.u32 %v6927_v33, %v6143_v56  ;;  %v6190_v49 = vor.u32 %v6940_v6, %v6189_v31  ;;  %v6980_v56 = vld [vmem:[#allocation4 + $0x774] sm:$0xf0]  ;;  %v6226_v31 = vor.u32 %v6947_v29, %v6223_v30  ;;  %v6237_v6 = vld [vmem:[#allocation4 + $0x690] sm:$0xf]  ;;  %v6974_v29 = vld [vmem:[#allocation4 + $0x744] sm:$0xf0] }
 0x200   :  { %3573 = vmatpush.bf16.msra.mxu2 %v6038_v5  ;;  %v2542_v5 = vadd.f32 %v2541_v39, %v7414_v43 }
 0x202   :  { %3586 = vmatpush.bf16.msra.mxu3 %v6110_v35  ;;  %3602 = vmatmul.bf16.vlgmr.msrb.gmra.mxu0 %v7347_v18  ;;  %v6905_v35 = vld [vmem:[#allocation4 + $0x524] sm:$0xf] }
 0x203   :  { %4043 = vmatpush.bf16.msra.mxu0 %v6222_v38  ;;  %3614 = vmatpush.bf16.msrb.mxu1 %v5986_v1  ;;  %v6958_v38 = vld [vmem:[#allocation4 + $0x6c4] sm:$0xf0]  ;;  %v6058_v55 = vor.u32 %v6905_v35, %v6055_v4  ;;  %v6963_v35 = vld [vmem:[#allocation4 + $0x6f4] sm:$0xf] }
 0x204   :  { %3622 = vmatpush.bf16.msrb.mxu2 %v6098_v60  ;;  %v6138_v60 = vor.u32 %v6925_v7, %v6135_v23  ;;  %v6262_v1 = vor.u32 %v6958_v38, %v6261_v62  ;;  %v6114_v7 = vor.u32 %v6919_v16, %v6111_v42  ;;  %v6341_v23 = vld [vmem:[#allocation4 + $0x760] sm:$0xf]  ;;  %v6978_v62 = vld [vmem:[#allocation4 + $0x764] sm:$0xf0]  ;;  %v6917_v38 = vld [vmem:[#allocation4 + $0x584] sm:$0xf] }
 0x205   :  { %3574 = vmatmul.bf16.vlgmr.msra.gmra.mxu2 %v7385_v0  ;;  %v6342_v21 = vor.u32 %v6978_v62, %v6341_v23  ;;  %v6263_v23 = vld [vmem:[#allocation4 + $0x6c8] sm:$0xf0]  ;;  %v6937_v62 = vld [vmem:[#allocation4 + $0x624] sm:$0xf] }
 0x206   :  { %3587 = vmatpush.bf16.msra.mxu3 %v6102_v12  ;;  %v2555_v51 = vpop.f32.mrf.mxu1  ;;  %v2543_v46 = vpop.f32.mrf.mxu0 }
 0x207   :  { %4044 = vmatpush.bf16.msra.mxu0 %v6214_v28  ;;  %3615 = vmatpush.bf16.msrb.mxu1 %v5978_v41  ;;  %v7417_v58 = vadd.f32 %v2555_v51, %v2542_v5  ;;  %v6253_v28 = vld [vmem:[#allocation4 + $0x6b0] sm:$0xf]  ;;  %v6174_v41 = vor.u32 %v6936_v13, %v6173_v11  ;;  %v2544_v9 = vadd.f32 %v2543_v46, %v7414_v43  ;;  %v6229_v5 = vld [vmem:[#allocation4 + $0x680] sm:$0xf]  ;;  %v6287_v46 = vld [vmem:[#allocation4 + $0x6f8] sm:$0xf0] }
 0x208   :  { %3623 = vmatpush.bf16.msrb.mxu2 %v6090_v25  ;;  %v6047_v25 = vld [vmem:[#allocation4 + $0x518] sm:$0xf0]  ;;  %v6254_v12 = vor.u32 %v6956_v15, %v6253_v28  ;;  %v6106_v28 = vor.u32 %v6917_v38, %v6103_v57  ;;  %v6183_v38 = vld [vmem:[#allocation4 + $0x628] sm:$0xf0] }
 0x209   :  { %3588 = vmatmul.bf16.vlgmr.msra.gmra.mxu3 %v7390_v63  ;;  %v6050_v27 = vor.u32 %v6903_v19, %v6047_v25  ;;  %v6290_v25 = vor.u32 %v6963_v35, %v6287_v46  ;;  %v6381_v46 = vld [vmem:[#allocation4 + $0x7b0] sm:$0xf] }
 0x20a   :  { %3636 = vmatpush.bf16.msrb.mxu3 %v6162_v59  ;;  %3616 = vmatmul.bf16.vlgmr.msrb.gmra.mxu1 %v7351_v40  ;;  %v6921_v59 = vld [vmem:[#allocation4 + $0x5a4] sm:$0xf] }
 0x20b   :  { %4057 = vmatpush.bf16.msra.mxu1 %v6286_v17  ;;  %4045 = vmatpush.bf16.msra.mxu0 %v6206_v52  ;;  %v6954_v17 = vld [vmem:[#allocation4 + $0x6a4] sm:$0xf0]  ;;  %v6165_v52 = vld [vmem:[#allocation4 + $0x600] sm:$0xf] }
 0x20c   :  { %3624 = vmatpush.bf16.msrb.mxu2 %v6082_v53  ;;  %v6122_v53 = vor.u32 %v6921_v59, %v6119_v26  ;;  %v6166_v33 = vor.u32 %v6934_v36, %v6165_v52  ;;  %v6994_v59 = vld [vmem:[#allocation4 + $0x7e4] sm:$0xf0]  ;;  %v6961_v26 = vld [vmem:[#allocation4 + $0x6e4] sm:$0xf]  ;;  %v6199_v52 = vld [vmem:[#allocation4 + $0x648] sm:$0xf0] }
 0x20e   :  { %3637 = vmatpush.bf16.msrb.mxu3 %v6154_v10  ;;  %v2557_v3 = vpop.f32.mrf.mxu1  ;;  %v6901_v10 = vld [vmem:[#allocation4 + $0x504] sm:$0xf] }
 0x20f   :  { %4058 = vmatpush.bf16.msra.mxu1 %v6278_v24  ;;  %4046 = vmatpush.bf16.msra.mxu0 %v6198_v22  ;;  %v7420_v39 = vadd.f32 %v2557_v3, %v2544_v9  ;;  %v2597_v24 = vpop.f32.mrf.mxu0  ;;  %v6246_v22 = vor.u32 %v6954_v17, %v6245_v2  ;;  %v6042_v44 = vor.u32 %v6901_v10, %v6039_v34  ;;  %v6279_v2 = vld [vmem:[#allocation4 + $0x6e8] sm:$0xf0]  ;;  %v6941_v17 = vld [vmem:[#allocation4 + $0x644] sm:$0xf]  ;;  %v6992_v10 = vld [vmem:[#allocation4 + $0x7d4] sm:$0xf0] }
 0x210   :  { %3625 = vmatpush.bf16.msrb.mxu2 %v6074_v54  ;;  %v6952_v54 = vld [vmem:[#allocation4 + $0x694] sm:$0xf0]  ;;  %v6282_v30 = vor.u32 %v6961_v26, %v6279_v2  ;;  %v6202_v3 = vor.u32 %v6941_v17, %v6199_v52  ;;  %v6959_v34 = vld [vmem:[#allocation4 + $0x6d4] sm:$0xf]  ;;  %v6986_v26 = vld [vmem:[#allocation4 + $0x7a4] sm:$0xf0] }
 0x211   :  { %v6238_v50 = vor.u32 %v6952_v54, %v6237_v6  ;;  %v6317_v6 = vld [vmem:[#allocation4 + $0x730] sm:$0xf]  ;;  %v6972_v54 = vld [vmem:[#allocation4 + $0x734] sm:$0xf0]  ;;  %v6953_v2 = vld [vmem:[#allocation4 + $0x6a4] sm:$0xf] }
 0x212   :  { %3638 = vmatpush.bf16.msrb.mxu3 %v6146_v45  ;;  %v7423_v45 = vperm.slane %v7409_v32, 1  ;;  %v6996_v32 = vld [vmem:[#allocation4 + $0x7f4] sm:$0xf0]  ;;  %v6247_v52 = vld [vmem:[#allocation4 + $0x6a8] sm:$0xf0] }
 0x213   :  { %4059 = vmatpush.bf16.msra.mxu1 %v6270_v48  ;;  %4047 = vmatpush.bf16.msra.mxu0 %v6190_v49  ;;  %v6215_v48 = vld [vmem:[#allocation4 + $0x668] sm:$0xf0]  ;;  %v6350_v49 = vor.u32 %v6980_v56, %v6349_v37 }
 0x214   :  { %3626 = vmatpush.bf16.msrb.mxu2 %v6066_v61  ;;  %v6950_v61 = vld [vmem:[#allocation4 + $0x684] sm:$0xf0]  ;;  %v6218_v51 = vor.u32 %v6945_v47, %v6215_v48  ;;  %v2598_v4 = vadd.f32 %v2597_v24, %v7423_v45  ;;  %v6271_v24 = vld [vmem:[#allocation4 + $0x6d8] sm:$0xf0]  ;;  %v6389_v48 = vld [vmem:[#allocation4 + $0x7c0] sm:$0xf] }
 0x215   :  { %v6230_v11 = vor.u32 %v6950_v61, %v6229_v5  ;;  %v6318_v5 = vor.u32 %v6972_v54, %v6317_v6  ;;  %v6239_v6 = vld [vmem:[#allocation4 + $0x698] sm:$0xf0] }
 0x216   :  { %3639 = vmatpush.bf16.msrb.mxu3 %v6138_v60  ;;  %v6413_v60 = vld [vmem:[#allocation4 + $0x7f0] sm:$0xf]  ;;  %v2611_v20 = vpop.f32.mrf.mxu1 }
 0x217   :  { %4060 = vmatpush.bf16.msra.mxu1 %v6262_v1  ;;  %4048 = vmatpush.bf16.msra.mxu0 %v6182_v8  ;;  %v6943_v1 = vld [vmem:[#allocation4 + $0x654] sm:$0xf]  ;;  %v6207_v8 = vld [vmem:[#allocation4 + $0x658] sm:$0xf0]  ;;  %v7426_v15 = vadd.f32 %v2611_v20, %v2598_v4  ;;  %v6414_v13 = vor.u32 %v6996_v32, %v6413_v60  ;;  %v2599_v19 = vpop.f32.mrf.mxu0  ;;  %v6309_v60 = vld [vmem:[#allocation4 + $0x720] sm:$0xf]  ;;  %v6186_v4 = vor.u32 %v6937_v62, %v6183_v38 }
 0x218   :  { %3627 = vmatpush.bf16.msrb.mxu2 %v6058_v55  ;;  %v6333_v55 = vld [vmem:[#allocation4 + $0x750] sm:$0xf]  ;;  %v2600_v37 = vadd.f32 %v2599_v19, %v7423_v45  ;;  %v6970_v32 = vld [vmem:[#allocation4 + $0x724] sm:$0xf0]  ;;  %v6949_v62 = vld [vmem:[#allocation4 + $0x684] sm:$0xf] }
 0x219   :  { %v6301_v19 = vld [vmem:[#allocation4 + $0x710] sm:$0xf] }
 0x21a   :  { %3640 = vmatpush.bf16.msrb.mxu3 %v6130_v14  ;;  %v6976_v14 = vld [vmem:[#allocation4 + $0x754] sm:$0xf0] }
 0x21b   :  { %4061 = vmatpush.bf16.msra.mxu1 %v6254_v12  ;;  %4049 = vmatpush.bf16.msra.mxu0 %v6174_v41  ;;  %v6210_v12 = vor.u32 %v6943_v1, %v6207_v8  ;;  %v6405_v41 = vld [vmem:[#allocation4 + $0x7e0] sm:$0xf]  ;;  %v6334_v36 = vor.u32 %v6976_v14, %v6333_v55  ;;  %v6988_v1 = vld [vmem:[#allocation4 + $0x7b4] sm:$0xf0]  ;;  %v6955_v8 = vld [vmem:[#allocation4 + $0x6b4] sm:$0xf]  ;;  %v6310_v55 = vor.u32 %v6970_v32, %v6309_v60 }
 0x21c   :  { %3628 = vmatpush.bf16.msrb.mxu2 %v6050_v27  ;;  %v6406_v9 = vor.u32 %v6994_v59, %v6405_v41  ;;  %v6325_v27 = vld [vmem:[#allocation4 + $0x740] sm:$0xf] }
 0x21d   :  { %v6326_v16 = vor.u32 %v6974_v29, %v6325_v27  ;;  %v6373_v59 = vld [vmem:[#allocation4 + $0x7a0] sm:$0xf] }
 0x21e   :  { %3641 = vmatpush.bf16.msrb.mxu3 %v6122_v53  ;;  %v6397_v53 = vld [vmem:[#allocation4 + $0x7d0] sm:$0xf]  ;;  %v2613_v56 = vpop.f32.mrf.mxu1 }
 0x21f   :  { %4062 = vmatpush.bf16.msra.mxu1 %v6246_v22  ;;  %4050 = vmatpush.bf16.msra.mxu0 %v6166_v33  ;;  %v6939_v22 = vld [vmem:[#allocation4 + $0x634] sm:$0xf]  ;;  %v6191_v33 = vld [vmem:[#allocation4 + $0x638] sm:$0xf0]  ;;  %v7433_v42 = vadd.f32 %v2613_v56, %v2600_v37  ;;  %v6365_v56 = vld [vmem:[#allocation4 + $0x790] sm:$0xf] }
 0x220   :  { %3629 = vmatpush.bf16.msrb.mxu2 %v6042_v44  ;;  %v6274_v44 = vor.u32 %v6959_v34, %v6271_v24  ;;  %v6194_v47 = vor.u32 %v6939_v22, %v6191_v33  ;;  %v6966_v34 = vld [vmem:[#allocation4 + $0x704] sm:$0xf0]  ;;  %v6979_v37 = vld [vmem:[#allocation4 + $0x774] sm:$0xf]  ;;  %v6250_v24 = vor.u32 %v6953_v2, %v6247_v52  ;;  %v6351_v33 = vld [vmem:[#allocation4 + $0x778] sm:$0xf0] }
 0x221   :  { %v6319_v52 = vld [vmem:[#allocation4 + $0x738] sm:$0xf0] }
 0x222   :  { %3642 = vmatpush.bf16.msrb.mxu3 %v6114_v7  ;;  %4051 = vmatmul.bf16.vlgmr.msra.gmra.mxu0 %v7347_v18  ;;  %v6957_v7 = vld [vmem:[#allocation4 + $0x6c4] sm:$0xf] }
 0x223   :  { %4099 = vmatpush.bf16.msrb.mxu0 %v6226_v31  ;;  %4063 = vmatpush.bf16.msra.mxu1 %v6238_v50  ;;  %v6398_v31 = vor.u32 %v6992_v10, %v6397_v53  ;;  %v3042_v50 = vpop.f32.mrf.mxu0  ;;  %v6266_v35 = vor.u32 %v6957_v7, %v6263_v23  ;;  %v6374_v53 = vor.u32 %v6986_v26, %v6373_v59  ;;  %v6293_v10 = vld [vmem:[#allocation4 + $0x700] sm:$0xf]  ;;  %v6982_v23 = vld [vmem:[#allocation4 + $0x784] sm:$0xf0] }
 0x224   :  { %4071 = vmatpush.bf16.msra.mxu2 %v6350_v49  ;;  %v6990_v49 = vld [vmem:[#allocation4 + $0x7c4] sm:$0xf0]  ;;  %v2569_v57 = vpop.f32.mrf.mxu2  ;;  %v3043_v20 = vadd.f32 %v3042_v50, %v7414_v43  ;;  %v6294_v54 = vor.u32 %v6966_v34, %v6293_v10  ;;  %v6357_v7 = vld [vmem:[#allocation4 + $0x780] sm:$0xf]  ;;  %v6231_v50 = vld [vmem:[#allocation4 + $0x688] sm:$0xf0] }
 0x225   :  { %3630 = vmatmul.bf16.vlgmr.msrb.gmra.mxu2 %v7385_v0  ;;  %v2570_v61 = vadd.f32 %v2569_v57, %v7417_v58  ;;  %v6382_v58 = vor.u32 %v6988_v1, %v6381_v46  ;;  %v6995_v57 = vld [vmem:[#allocation4 + $0x7f4] sm:$0xf]  ;;  %v6358_v32 = vor.u32 %v6982_v23, %v6357_v7  ;;  %v6311_v10 = vld [vmem:[#allocation4 + $0x728] sm:$0xf0]  ;;  %v6965_v23 = vld [vmem:[#allocation4 + $0x704] sm:$0xf] }
 0x226   :  { %3643 = vmatpush.bf16.msrb.mxu3 %v6106_v28  ;;  %v6935_v28 = vld [vmem:[#allocation4 + $0x614] sm:$0xf] }
 0x227   :  { %4100 = vmatpush.bf16.msrb.mxu0 %v6218_v51  ;;  %4064 = vmatpush.bf16.msra.mxu1 %v6230_v11  ;;  %v6390_v51 = vor.u32 %v6990_v49, %v6389_v48  ;;  %v6175_v11 = vld [vmem:[#allocation4 + $0x618] sm:$0xf0]  ;;  %v6977_v48 = vld [vmem:[#allocation4 + $0x764] sm:$0xf]  ;;  %v6975_v1 = vld [vmem:[#allocation4 + $0x754] sm:$0xf] }
 0x228   :  { %4072 = vmatpush.bf16.msra.mxu2 %v6342_v21  ;;  %v6255_v21 = vld [vmem:[#allocation4 + $0x6b8] sm:$0xf0]  ;;  %v6178_v41 = vor.u32 %v6935_v28, %v6175_v11  ;;  %v6407_v28 = vld [vmem:[#allocation4 + $0x7e8] sm:$0xf0] }
 0x229   :  { %3644 = vmatmul.bf16.vlgmr.msrb.gmra.mxu3 %v7390_v63 }
 0x22a   :  { %4085 = vmatpush.bf16.msra.mxu3 %v6414_v13  ;;  %4065 = vmatmul.bf16.vlgmr.msra.gmra.mxu1 %v7351_v40  ;;  %v3056_v13 = vpop.f32.mrf.mxu1 }
 0x22b   :  { %4113 = vmatpush.bf16.msrb.mxu1 %v6290_v25  ;;  %4101 = vmatpush.bf16.msrb.mxu0 %v6210_v12  ;;  %v7437_v14 = vadd.f32 %v3056_v13, %v3043_v20  ;;  %v6968_v25 = vld [vmem:[#allocation4 + $0x714] sm:$0xf0]  ;;  %v6258_v12 = vor.u32 %v6955_v8, %v6255_v21  ;;  %v6335_v8 = vld [vmem:[#allocation4 + $0x758] sm:$0xf0]  ;;  %v7446_v20 = vpop.f32.mrf.mxu0  ;;  %v6993_v21 = vld [vmem:[#allocation4 + $0x7e4] sm:$0xf] }
 0x22c   :  { %4073 = vmatpush.bf16.msra.mxu2 %v6334_v36  ;;  %v2583_v17 = vpop.f32.mrf.mxu3  ;;  %v6933_v36 = vld [vmem:[#allocation4 + $0x604] sm:$0xf]  ;;  %v2571_v29 = vpop.f32.mrf.mxu2  ;;  %v6338_v11 = vor.u32 %v6975_v1, %v6335_v8  ;;  %v6410_v13 = vor.u32 %v6993_v21, %v6407_v28  ;;  %v6359_v8 = vld [vmem:[#allocation4 + $0x788] sm:$0xf0] }
 0x22d   :  { %v7439_v27 = vadd.f32 %v2583_v17, %v2570_v61  ;;  %v6971_v17 = vld [vmem:[#allocation4 + $0x734] sm:$0xf]  ;;  %v6981_v1 = vld [vmem:[#allocation4 + $0x784] sm:$0xf] }
 0x22e   :  { %4086 = vmatpush.bf16.msra.mxu3 %v6406_v9  ;;  %v6167_v9 = vld [vmem:[#allocation4 + $0x608] sm:$0xf0]  ;;  %v6362_v28 = vor.u32 %v6981_v1, %v6359_v8 }
 0x22f   :  { %4114 = vmatpush.bf16.msrb.mxu1 %v6282_v30  ;;  %4102 = vmatpush.bf16.msrb.mxu0 %v6202_v3  ;;  %v6302_v30 = vor.u32 %v6968_v25, %v6301_v19  ;;  %v2572_v3 = vadd.f32 %v2571_v29, %v7420_v39  ;;  %v6170_v22 = vor.u32 %v6933_v36, %v6167_v9  ;;  %v6343_v39 = vld [vmem:[#allocation4 + $0x768] sm:$0xf0]  ;;  %v6399_v19 = vld [vmem:[#allocation4 + $0x7d8] sm:$0xf0]  ;;  %v6989_v9 = vld [vmem:[#allocation4 + $0x7c4] sm:$0xf] }
 0x230   :  { %4074 = vmatpush.bf16.msra.mxu2 %v6326_v16  ;;  %v6984_v16 = vld [vmem:[#allocation4 + $0x794] sm:$0xf0]  ;;  %v6346_v60 = vor.u32 %v6977_v48, %v6343_v39  ;;  %v6391_v29 = vld [vmem:[#allocation4 + $0x7c8] sm:$0xf0] }
 0x231   :  { %v6375_v48 = vld [vmem:[#allocation4 + $0x7a8] sm:$0xf0] }
 0x232   :  { %4087 = vmatpush.bf16.msra.mxu3 %v6398_v31  ;;  %v6951_v31 = vld [vmem:[#allocation4 + $0x694] sm:$0xf] }
 0x233   :  { %4115 = vmatpush.bf16.msrb.mxu1 %v6274_v44  ;;  %4103 = vmatpush.bf16.msrb.mxu0 %v6194_v47  ;;  %v6354_v44 = vor.u32 %v6979_v37, %v6351_v33  ;;  %v6366_v47 = vor.u32 %v6984_v16, %v6365_v56  ;;  %v6242_v49 = vor.u32 %v6951_v31, %v6239_v6  ;;  %v6383_v37 = vld [vmem:[#allocation4 + $0x7b8] sm:$0xf0] }
 0x234   :  { %4075 = vmatpush.bf16.msra.mxu2 %v6318_v5  ;;  %v2585_v38 = vpop.f32.mrf.mxu3  ;;  %v6415_v5 = vld [vmem:[#allocation4 + $0x7f8] sm:$0xf0] }
 0x235   :  { %v7442_v61 = vadd.f32 %v2585_v38, %v2572_v3  ;;  %v6418_v46 = vor.u32 %v6995_v57, %v6415_v5  ;;  %v6394_v3 = vor.u32 %v6989_v9, %v6391_v29  ;;  %v6983_v38 = vld [vmem:[#allocation4 + $0x794] sm:$0xf] }
 0x236   :  { %4088 = vmatpush.bf16.msra.mxu3 %v6390_v51  ;;  %v2625_v51 = vpop.f32.mrf.mxu2 }
 0x237   :  { %4116 = vmatpush.bf16.msrb.mxu1 %v6266_v35  ;;  %4104 = vmatpush.bf16.msrb.mxu0 %v6186_v4  ;;  %v2626_v35 = vadd.f32 %v2625_v51, %v7426_v15  ;;  %v6234_v4 = vor.u32 %v6949_v62, %v6231_v50  ;;  %v6327_v15 = vld [vmem:[#allocation4 + $0x748] sm:$0xf0]  ;;  %v6367_v50 = vld [vmem:[#allocation4 + $0x798] sm:$0xf0] }
 0x238   :  { %4076 = vmatpush.bf16.msra.mxu2 %v6310_v55  ;;  %v6973_v55 = vld [vmem:[#allocation4 + $0x744] sm:$0xf]  ;;  %v6295_v62 = vld [vmem:[#allocation4 + $0x708] sm:$0xf0] }
 0x239   :  { %v6330_v59 = vor.u32 %v6973_v55, %v6327_v15 }
 0x23a   :  { %4089 = vmatpush.bf16.msra.mxu3 %v6382_v58 }
 0x23b   :  { %4117 = vmatpush.bf16.msrb.mxu1 %v6258_v12  ;;  %4105 = vmatpush.bf16.msrb.mxu0 %v6178_v41  ;;  %v7452_v12 = vpop.f32.mrf.mxu1 }
 0x23c   :  { %4077 = vmatpush.bf16.msra.mxu2 %v6302_v30  ;;  %v2639_v58 = vpop.f32.mrf.mxu3  ;;  %v6322_v30 = vor.u32 %v6971_v17, %v6319_v52 }
 0x23d   :  { %v7449_v25 = vadd.f32 %v2639_v58, %v2626_v35  ;;  %v6370_v35 = vor.u32 %v6983_v38, %v6367_v50  ;;  %v7009_v50 = vld [vmem:[#allocation6 + $0x60] sm:$0xff] }
 0x23e   :  { %4090 = vmatpush.bf16.msra.mxu3 %v6374_v53  ;;  %v2627_v41 = vpop.f32.mrf.mxu2  ;;  %v6969_v53 = vld [vmem:[#allocation4 + $0x724] sm:$0xf] }
 0x23f   :  { %4118 = vmatpush.bf16.msrb.mxu1 %v6250_v24  ;;  %4106 = vmatpush.bf16.msrb.mxu0 %v6170_v22  ;;  %v2628_v26 = vadd.f32 %v2627_v41, %v7433_v42  ;;  %v6314_v56 = vor.u32 %v6969_v53, %v6311_v10  ;;  %v7002_v53 = vld [vmem:[#allocation6 + $0x28] sm:$0xff] }
 0x240   :  { %4078 = vmatpush.bf16.msra.mxu2 %v6294_v54  ;;  %v6967_v54 = vld [vmem:[#allocation4 + $0x714] sm:$0xf] }
 0x241   :  { %v3098_v36 = vpop.f32.mrf.mxu0 }
 0x242   :  { %4091 = vmatpush.bf16.msra.mxu3 %v6366_v47  ;;  %4107 = vmatmul.bf16.vlgmr.msrb.gmra.mxu0 %v7347_v18  ;;  %v6991_v18 = vld [vmem:[#allocation4 + $0x7d4] sm:$0xf]  ;;  %v3099_v24 = vadd.f32 %v3098_v36, %v7423_v45  ;;  %v6985_v47 = vld [vmem:[#allocation4 + $0x7a4] sm:$0xf]  ;;  %v7004_v36 = vld [vmem:[#allocation6 + $0x38] sm:$0xff] }
 0x243   :  { %4119 = vmatpush.bf16.msrb.mxu1 %v6242_v49  ;;  %4079 = vmatmul.bf16.vlgmr.msra.gmra.mxu2 %v7385_v0  ;;  %v6402_v2 = vor.u32 %v6991_v18, %v6399_v19  ;;  %v6378_v7 = vor.u32 %v6985_v47, %v6375_v48  ;;  %v2645_v19 = vmax.f32 %v7449_v25, 0.0  ;;  %v7012_v47 = vld [vmem:[#allocation6 + $0x78] sm:$0xff] }
 0x244   :  { %4127 = vmatpush.bf16.msrb.mxu2 %v6354_v44  ;;  %v2641_v34 = vpop.f32.mrf.mxu3  ;;  %v6303_v44 = vld [vmem:[#allocation4 + $0x718] sm:$0xf0]  ;;  %4297 = vmatpush.bf16.msra.mxu0 %v7004_v36  ;;  %v2646_v36 = vmax.f32 %v7442_v61, 0.0 }
 0x245   :  { %v2642_v22 = vadd.f32 %v2641_v34, %v2628_v26  ;;  %v6306_v49 = vor.u32 %v6967_v54, %v6303_v44  ;;  %v7001_v34 = vld [vmem:[#allocation6 + $0x20] sm:$0xff] }
 0x246   :  { %4092 = vmatpush.bf16.msra.mxu3 %v6358_v32  ;;  %v3070_v33 = vpop.f32.mrf.mxu2 }
 0x247   :  { %4120 = vmatpush.bf16.msrb.mxu1 %v6234_v4  ;;  %v3112_v42 = vpop.f32.mrf.mxu1  ;;  %v3071_v31 = vadd.f32 %v3070_v33, %v7437_v14  ;;  %v2644_v4 = vmax.f32 %v7439_v27, 0.0  ;;  %v2647_v17 = vmax.f32 %v2642_v22, 0.0 }
 0x248   :  { %4128 = vmatpush.bf16.msrb.mxu2 %v6346_v60  ;;  %v3113_v16 = vadd.f32 %v3112_v42, %v3099_v24  ;;  %v6298_v60 = vor.u32 %v6965_v23, %v6295_v62  ;;  %v7000_v24 = vld [vmem:[#allocation6 + $0x18] sm:$0xff]  ;;  %v6999_v42 = vld [vmem:[#allocation6 + $0x10] sm:$0xff]  ;;  %v7010_v23 = vld [vmem:[#allocation6 + $0x68] sm:$0xff] }
 0x249   :  { %4093 = vmatmul.bf16.vlgmr.msra.gmra.mxu3 %v7390_v63  ;;  %v3100_v39 = vpop.f32.mrf.mxu0 }
 0x24a   :  { %4141 = vmatpush.bf16.msrb.mxu3 %v6418_v46  ;;  %4121 = vmatmul.bf16.vlgmr.msrb.gmra.mxu1 %v7351_v40  ;;  %v6987_v40 = vld [vmem:[#allocation4 + $0x7b4] sm:$0xf]  ;;  %v3101_v57 = vadd.f32 %v3100_v39, %v7423_v45 }
 0x24b   :  { %v6386_v6 = vor.u32 %v6987_v40, %v6383_v37  ;;  %4311 = vmatpush.bf16.msra.mxu1 %v7012_v47  ;;  %v7011_v39 = vld [vmem:[#allocation6 + $0x70] sm:$0xff] }
 0x24c   :  { %4129 = vmatpush.bf16.msrb.mxu2 %v6338_v11  ;;  %v3084_v5 = vpop.f32.mrf.mxu3 }
 0x24d   :  { %v3085_v51 = vadd.f32 %v3084_v5, %v3071_v31  ;;  %v6998_v31 = vld [vmem:[#allocation6 + $0x8] sm:$0xff] }
 0x24e   :  { %4142 = vmatpush.bf16.msrb.mxu3 %v6410_v13  ;;  %v7464_v11 = vpop.f32.mrf.mxu2 }
 0x24f   :  { %v3114_v14 = vpop.f32.mrf.mxu1  ;;  %v3145_v46 = vmax.f32 %v3085_v51, 0.0  ;;  %4312 = vmatpush.bf16.msra.mxu1 %v7011_v39 }
 0x250   :  { %4130 = vmatpush.bf16.msrb.mxu2 %v6330_v59  ;;  %v3115_v32 = vadd.f32 %v3114_v14, %v3101_v57  ;;  %v3045_v57 = vadd.f32 %v7446_v20, %v7414_v43 }
 0x251   :  { %v7460_v21 = vmax.f32 %v2644_v4, %v3145_v46 }
 0x252   :  { %4143 = vmatpush.bf16.msrb.mxu3 %v6402_v2  ;;  %v3059_v51 = vadd.f32 %v7452_v12, %v3045_v57 }
 0x253   :  { %4313 = vmatpush.bf16.msra.mxu1 %v7010_v23 }
 0x254   :  { %4131 = vmatpush.bf16.msrb.mxu2 %v6322_v30  ;;  %v7466_v13 = vpop.f32.mrf.mxu3  ;;  %v7003_v30 = vld [vmem:[#allocation6 + $0x30] sm:$0xff] }
 0x255   :  { %4298 = vmatpush.bf16.msra.mxu0 %v7003_v30 }
 0x256   :  { %4144 = vmatpush.bf16.msrb.mxu3 %v6394_v3 }
 0x257   :  { %4314 = vmatpush.bf16.msra.mxu1 %v7009_v50 }
 0x258   :  { %4132 = vmatpush.bf16.msrb.mxu2 %v6314_v56 }
 0x259   :  { %4299 = vmatpush.bf16.msra.mxu0 %v7002_v53 }
 0x25a   :  { %4145 = vmatpush.bf16.msrb.mxu3 %v6386_v6  ;;  %v6997_v6 = vld [vmem:[#allocation6] sm:$0xff] }
 0x25c   :  { %4133 = vmatpush.bf16.msrb.mxu2 %v6306_v49 }
 0x25d   :  { %4300 = vmatpush.bf16.msra.mxu0 %v7001_v34 }
 0x25e   :  { %4146 = vmatpush.bf16.msrb.mxu3 %v6378_v7 }
 0x25f   :  { %v3547_v9 = vpop.f32.mrf.mxu0 }
 0x260   :  { %4134 = vmatpush.bf16.msrb.mxu2 %v6298_v60  ;;  %v3548_v14 = vadd.f32 %v3547_v9, %v7414_v43 }
 0x261   :  { %4301 = vmatpush.bf16.msra.mxu0 %v7000_v24 }
 0x262   :  { %4147 = vmatpush.bf16.msrb.mxu3 %v6370_v35  ;;  %v3073_v35 = vadd.f32 %v7464_v11, %v3059_v51 }
 0x263   :  { %4135 = vmatmul.bf16.vlgmr.msrb.gmra.mxu2 %v7385_v0 }
 0x264   :  { %v3087_v20 = vadd.f32 %v7466_v13, %v3073_v35 }
 0x265   :  { %4302 = vmatpush.bf16.msra.mxu0 %v6999_v42 }
 0x266   :  { %4148 = vmatpush.bf16.msrb.mxu3 %v6362_v28 }
 0x267   :  { %v3561_v29 = vpop.f32.mrf.mxu1  ;;  %v3549_v25 = vpop.f32.mrf.mxu0 }
 0x268   :  { %v3126_v55 = vpop.f32.mrf.mxu2  ;;  %v3550_v60 = vadd.f32 %v3549_v25, %v7414_v43  ;;  %v3562_v4 = vadd.f32 %v3561_v29, %v3548_v14 }
 0x269   :  { %4149 = vmatmul.bf16.vlgmr.msrb.gmra.mxu3 %v7390_v63  ;;  %v3127_v15 = vadd.f32 %v3126_v55, %v3113_v16  ;;  %4303 = vmatpush.bf16.msra.mxu0 %v6998_v31 }
 0x26c   :  { %v3140_v27 = vpop.f32.mrf.mxu3 }
 0x26d   :  { %v3141_v58 = vadd.f32 %v3140_v27, %v3127_v15  ;;  %4304 = vmatpush.bf16.msra.mxu0 %v6997_v6 }
 0x26f   :  { %v3146_v41 = vmax.f32 %v3141_v58, 0.0  ;;  %v3563_v40 = vpop.f32.mrf.mxu1  ;;  %v7007_v58 = vld [vmem:[#allocation6 + $0x50] sm:$0xff] }
 0x270   :  { %v3128_v18 = vpop.f32.mrf.mxu2  ;;  %v3564_v46 = vadd.f32 %v3563_v40, %v3550_v60 }
 0x271   :  { %v3129_v59 = vadd.f32 %v3128_v18, %v3115_v32  ;;  %v7469_v26 = vmax.f32 %v2645_v19, %v3146_v41  ;;  %v7008_v32 = vld [vmem:[#allocation6 + $0x58] sm:$0xff] }
 0x272   :  { %4315 = vmatpush.bf16.msra.mxu1 %v7008_v32 }
 0x274   :  { %v3142_v2 = vpop.f32.mrf.mxu3 }
 0x275   :  { %v3143_v0 = vadd.f32 %v3142_v2, %v3129_v59  ;;  %v3147_v2 = vmax.f32 %v3087_v20, 0.0 }
 0x276   :  { %4316 = vmatpush.bf16.msra.mxu1 %v7007_v58 }
 0x277   :  { %v3148_v52 = vmax.f32 %v3143_v0, 0.0 }
 0x279   :  { %v7471_v63 = vmax.f32 %v2647_v17, %v3148_v52  ;;  %v7006_v52 = vld [vmem:[#allocation6 + $0x48] sm:$0xff] }
 0x27a   :  { %4317 = vmatpush.bf16.msra.mxu1 %v7006_v52 }
 0x27f   :  { %v7473_v22 = vpop.f32.mrf.mxu0 }
 0x280   :  { %v3604_v6 = vadd.f32 %v7473_v22, %v7423_v45 }
 0x287   :  { %v7475_v33 = vpop.f32.mrf.mxu1  ;;  %v7479_v54 = vpop.f32.mrf.mxu0 }
 0x288   :  { %v3575_v3 = vpop.f32.mrf.mxu2  ;;  %v3606_v47 = vadd.f32 %v7479_v54, %v7423_v45  ;;  %v3618_v39 = vadd.f32 %v7475_v33, %v3604_v6 }
 0x289   :  { %v3576_v55 = vadd.f32 %v3575_v3, %v3562_v4  ;;  %v3151_v3 = vmax.f32 %v2646_v36, %v3147_v2 }
 0x28c   :  { %v3589_v10 = vpop.f32.mrf.mxu3 }
 0x28d   :  { %v3590_v18 = vadd.f32 %v3589_v10, %v3576_v55  ;;  %v7005_v10 = vld [vmem:[#allocation6 + $0x40] sm:$0xff] }
 0x28e   :  { %4318 = vmatpush.bf16.msra.mxu1 %v7005_v10 }
 0x28f   :  { %v7483_v48 = vpop.f32.mrf.mxu1  ;;  %v3650_v9 = vmax.f32 %v3590_v18, 0.0 }
 0x290   :  { %v3577_v37 = vpop.f32.mrf.mxu2 }
 0x291   :  { %v3578_v15 = vadd.f32 %v3577_v37, %v3564_v46 }
 0x294   :  { %v3591_v56 = vpop.f32.mrf.mxu3 }
 0x295   :  { %v3592_v19 = vadd.f32 %v3591_v56, %v3578_v15  ;;  %v7022_v15 = vld [vmem:[%s7529_s6] ss:$0 sm:$0xff] }
 0x297   :  { %v3652_v13 = vmax.f32 %v3592_v19, 0.0 }
 0x299   :  { %v3656_v34 = vmax.f32 %v3151_v3, %v3652_v13 }
 0x29f   :  { %v4052_v7 = vpop.f32.mrf.mxu0 }
 0x2a0   :  { %v4053_v1 = vadd.f32 %v4052_v7, %v7414_v43 }
 0x2a7   :  { %v4066_v62 = vpop.f32.mrf.mxu1  ;;  %v4054_v8 = vpop.f32.mrf.mxu0 }
 0x2a8   :  { %v7477_v16 = vpop.f32.mrf.mxu2  ;;  %v4067_v27 = vadd.f32 %v4066_v62, %v4053_v1  ;;  %v4055_v41 = vadd.f32 %v4054_v8, %v7414_v43  ;;  %v3654_v43 = vmax.f32 %v7460_v21, %v3650_v9  ;;  %v3620_v21 = vadd.f32 %v7483_v48, %v3606_v47 }
 0x2a9   :  { %v3632_v50 = vadd.f32 %v7477_v16, %v3618_v39 }
 0x2ac   :  { %v7481_v44 = vpop.f32.mrf.mxu3 }
 0x2ad   :  { %v3646_v14 = vadd.f32 %v7481_v44, %v3632_v50 }
 0x2af   :  { %v4068_v12 = vpop.f32.mrf.mxu1  ;;  %v3651_v35 = vmax.f32 %v3646_v14, 0.0 }
 0x2b0   :  { %v7485_v49 = vpop.f32.mrf.mxu2  ;;  %v4069_v0 = vadd.f32 %v4068_v12, %v4055_v41 }
 0x2b1   :  { %v3634_v57 = vadd.f32 %v7485_v49, %v3620_v21  ;;  %v3655_v49 = vmax.f32 %v7469_v26, %v3651_v35 }
 0x2b4   :  { %v7487_v38 = vpop.f32.mrf.mxu3 }
 0x2b5   :  { %v3648_v22 = vadd.f32 %v7487_v38, %v3634_v57 }
 0x2b7   :  { %v3653_v4 = vmax.f32 %v3648_v22, 0.0 }
 0x2bf   :  { %v4108_v56 = vpop.f32.mrf.mxu0 }
 0x2c0   :  { %v4109_v7 = vadd.f32 %v4108_v56, %v7423_v45 }
 0x2c6   :  { %v4080_v5 = vpop.f32.mrf.mxu2 }
 0x2c7   :  { %v4081_v59 = vadd.f32 %v4080_v5, %v4067_v27  ;;  %v4122_v61 = vpop.f32.mrf.mxu1  ;;  %v4110_v23 = vpop.f32.mrf.mxu0 }
 0x2c8   :  { %v4123_v5 = vadd.f32 %v4122_v61, %v4109_v7  ;;  %v4111_v54 = vadd.f32 %v4110_v23, %v7423_v45 }
 0x2cc   :  { %v4094_v28 = vpop.f32.mrf.mxu3 }
 0x2cd   :  { %v4095_v17 = vadd.f32 %v4094_v28, %v4081_v59  ;;  %v3657_v28 = vmax.f32 %v7471_v63, %v3653_v4 }
 0x2ce   :  { %v4082_v11 = vpop.f32.mrf.mxu2 }
 0x2cf   :  { %v4083_v29 = vadd.f32 %v4082_v11, %v4069_v0  ;;  %v4155_v53 = vmax.f32 %v4095_v17, 0.0  ;;  %v4124_v51 = vpop.f32.mrf.mxu1 }
 0x2d0   :  { %v4125_v32 = vadd.f32 %v4124_v51, %v4111_v54 }
 0x2d1   :  { %v4159_v37 = vmax.f32 %v3654_v43, %v4155_v53 }
 0x2d4   :  { %v4096_v30 = vpop.f32.mrf.mxu3 }
 0x2d5   :  { %v4097_v25 = vadd.f32 %v4096_v30, %v4083_v29 }
 0x2d7   :  { %v4157_v40 = vmax.f32 %v4097_v25, 0.0 }
 0x2d9   :  { %v4161_v24 = vmax.f32 %v3656_v34, %v4157_v40 }
 0x2db   :  { %v4163_v42 = vpack.c.bf16 %v4161_v24, %v4159_v37 }
 0x2dd   :  { %4305 = vmatmul.bf16.vlgmr.msra.gmra.mxu0 %v4163_v42 }
 0x2e6   :  { %v4136_v31 = vpop.f32.mrf.mxu2 }
 0x2e7   :  { %v4137_v60 = vadd.f32 %v4136_v31, %v4123_v5 }
 0x2ec   :  { %v4150_v62 = vpop.f32.mrf.mxu3 }
 0x2ed   :  { %v4151_v48 = vadd.f32 %v4150_v62, %v4137_v60 }
 0x2ee   :  { %v4138_v33 = vpop.f32.mrf.mxu2 }
 0x2ef   :  { %v4139_v46 = vadd.f32 %v4138_v33, %v4125_v32  ;;  %v4156_v8 = vmax.f32 %v4151_v48, 0.0 }
 0x2f1   :  { %v4160_v44 = vmax.f32 %v3655_v49, %v4156_v8 }
 0x2f4   :  { %v4152_v1 = vpop.f32.mrf.mxu3 }
 0x2f5   :  { %v4153_v16 = vadd.f32 %v4152_v1, %v4139_v46 }
 0x2f7   :  { %v4158_v20 = vmax.f32 %v4153_v16, 0.0 }
 0x2f9   :  { %v4162_v55 = vmax.f32 %v3657_v28, %v4158_v20 }
 0x2fb   :  { %v4164_v38 = vpack.c.bf16 %v4162_v55, %v4160_v44 }
 0x2fd   :  { %4319 = vmatmul.bf16.vlgmr.msra.gmra.mxu1 %v4164_v38 }
 0x35a   :  { %v4306_v45 = vpop.f32.mrf.mxu0 }
 0x35b   :  { %v4307_v27 = vadd.f32 %v7022_v15, %v4306_v45 }
 0x362   :  { %v4308_v19 = vpop.f32.mrf.mxu0 }
 0x363   :  { %v4309_v41 = vadd.f32 %v7022_v15, %v4308_v19 }
 0x37a   :  { %v4320_v12 = vpop.f32.mrf.mxu1 }
 0x37b   :  { %v4321_v58 = vadd.f32 %v4320_v12, %v4307_v27 }
 0x37d   :  { %v4325_v18 = vmul.f32 %v4321_v58, %v4321_v58 }
 0x37f   :  { %4327 = vadd.xlane.f32.xlu0 %v4325_v18 }
 0x382   :  { %v4322_v26 = vpop.f32.mrf.mxu1 }
 0x383   :  { %v4323_v59 = vadd.f32 %v4322_v26, %v4309_v41 }
 0x385   :  { %v4326_v63 = vmul.f32 %v4323_v59, %v4323_v59 }
 0x387   :  { %4329 = vadd.xlane.f32.xlu0 %v4326_v63 }
 0x3f2   :  { %v4328_v11 = vpop.xlane.xlu0 %4327 }
 0x3f3   :  { %v4331_v2 = vmax.f32 %v4328_v11, 1e-24 }
 0x3f5   :  { %7023 = vrsqrt.f32 %v4331_v2  ;;  %vm4339_vm1 = vweird.f32 %v4331_v2 }
 0x3fa   :  { %v4330_v0 = vpop.xlane.xlu0 %4329 }
 0x3fb   :  { %v7024_v17 = vpop.eup %7023  ;;  %v4332_v52 = vmax.f32 %v4330_v0, 1e-24 }
 0x3fc   :  { %v4334_v36 = vmul.f32 %v7024_v17, %v4331_v2  ;;  %vm4340_vm0 = vweird.f32 %v7024_v17 }
 0x3fd   :  { %7025 = vrsqrt.f32 %v4332_v52  ;;  %vm4341_vm2 = vmor %vm4339_vm1, %vm4340_vm0  ;;  %vm4349_vm4 = vweird.f32 %v4332_v52 }
 0x3fe   :  { %v4335_v9 = vmul.f32 %v7024_v17, %v4334_v36 }
 0x400   :  { %v4336_v13 = vmul.f32 0.5, %v4335_v9 }
 0x402   :  { %v4337_v29 = vsub.f32 1.5, %v4336_v13 }
 0x403   :  { %v7026_v30 = vpop.eup %7025 }
 0x404   :  { %v4338_v3 = vmul.f32 %v7024_v17, %v4337_v29  ;;  %v4344_v53 = vmul.f32 %v7026_v30, %v4332_v52  ;;  %vm4350_vm3 = vweird.f32 %v7026_v30 }
 0x405   :  { %vm4351_vm5 = vmor %vm4349_vm4, %vm4350_vm3 }
 0x406   :  { %v4342_v25 = vsel %vm4341_vm2, %v7024_v17, %v4338_v3  ;;  %v4345_v10 = vmul.f32 %v7026_v30, %v4344_v53 }
 0x407   :  { %v4353_v43 = vmul.f32 %v4342_v25, %v4321_v58 }
 0x408   :  { %v4346_v34 = vmul.f32 0.5, %v4345_v10 }
 0x409   :  { %4355 = vst [vmem:[%s7530_s7] sm:$0xff] %v4353_v43 }
 0x40a   :  { %v4347_v40 = vsub.f32 1.5, %v4346_v34 }
 0x40c   :  { %v4348_v37 = vmul.f32 %v7026_v30, %v4347_v40 }
 0x40e   :  { %v4352_v24 = vsel %vm4351_vm5, %v7026_v30, %v4348_v37 }
 0x40f   :  { %v4354_v42 = vmul.f32 %v4352_v24, %v4323_v59 }
 0x411   :  { %4356 = vst [vmem:[%s7530_s7 + $0x8] sm:$0xff] %v4354_v42 }
 0x412   :  { %4361 = vsyncpa [#allocation3], 1 }
 0x413   :  { %4362 = vsyncpa [#allocation5], 1 }

</bundles_post_ra>
